<compile_context>
chip_gen: v6e
topology: v6e:2x2x1
jax: 0.10.0
libtpu: 0.0.40
codegen_flags: <defaults>
</compile_context>

<pallas_src>
import functools

import jax
import jax.numpy as jnp
import numpy as np
from jax import lax
from jax.experimental import pallas as pl
from jax.experimental.pallas import tpu as pltpu


# --------------------------------------------------------------------------------------
# Kernel 1: Conv2d(1, K, (1, ksize)) fused with the GCNConv linear, graph aggregation over
# the first C node indices, GCN bias and ELU.
#
#   x_ref    : (B*C, n_times) f32 VMEM  -- row = (b, c), time on lanes
#   wf_ref   : (ksize, K)     f32 SMEM  -- fused weight  conv_w^T @ gcn_w^T
#   bf_ref   : (K,)           f32 SMEM  -- fused bias    conv_b  @ gcn_w^T
#   gb_ref   : (K,)           f32 SMEM  -- GCN bias (added after aggregation)
#   adjT_ref : (C, C)         f32 VMEM  -- adjT[i, j] = normalized weight of edge i -> j
#   out_ref  : (B*C, K*T)     f32 VMEM  -- lane block [k*T:(k+1)*T] = feature k
# --------------------------------------------------------------------------------------
def conv_gcn_elu_kernel(x_ref, wf_ref, bf_ref, gb_ref, adjT_ref, out_ref, *, C, K, ksize, T):
    BC = x_ref.shape[0]
    xv = x_ref[...]

    # Graph nodes 0..C-1 (the only node indices with edges) live at (b=0, c=0, t < C).
    bc_idx = lax.broadcasted_iota(jnp.int32, (BC, T), 0)
    t_idx = lax.broadcasted_iota(jnp.int32, (BC, T), 1)
    head_mask = jnp.logical_and(bc_idx == 0, t_idx < C)

    # Temporal conv fused with the GCN linear: ksize shifted FMAs per output feature
    # (pure VPU work on a lane-dense time axis; no im2col, no tiny MXU contractions).
    accs = [jnp.full((BC, T), bf_ref[k], dtype=jnp.float32) for k in range(K)]
    for s in range(ksize):
        xs = xv[:, s:s + T]
        for k in range(K):
            accs[k] = accs[k] + wf_ref[s, k] * xs

    # Symmetric-normalized aggregation restricted to the C graph nodes: one (K,C)@(C,C).
    heads = jnp.concatenate([accs[k][0:1, 0:C] for k in range(K)], axis=0)        # (K, C)
    new_heads = jnp.dot(heads, adjT_ref[...], preferred_element_type=jnp.float32)
    if T > C:
        new_heads = jnp.concatenate(
            [new_heads, jnp.zeros((K, T - C), jnp.float32)], axis=1)              # (K, T)

    for k in range(K):
        g = jnp.where(head_mask, new_heads[k:k + 1, :], accs[k]) + gb_ref[k]
        # ELU(alpha=1); exp only ever sees the non-positive branch values.
        out_ref[:, k * T:(k + 1) * T] = jnp.where(
            g > 0, g, jnp.exp(jnp.minimum(g, 0.0)) - 1.0)


# --------------------------------------------------------------------------------------
# Kernel 2: BatchNorm2d (train-mode batch statistics) + AvgPool2d + flatten + Linear, with
# torch's `.view(B,K,C,T).transpose(1,2)` channel scramble folded into host-built matrices.
#
#   z_ref      : (B, R)        f32 VMEM -- R = C*K*T, lane l = c*K*T + k*T + t (kernel-1 order)
#   gamma/beta : (1, C)        f32 VMEM
#   h_ref      : (R, C)        f32 VMEM -- one-hot lane -> BN channel map
#   ht_ref     : (C, R)        f32 VMEM -- transpose of h_ref
#   m_ref      : (R, out_pad)  f32 VMEM -- pool + flatten + fc folded into one matrix
#   fcb_ref    : (1, out_pad)  f32 VMEM
#   out_ref    : (B, out_pad)  f32 VMEM
# --------------------------------------------------------------------------------------
def bn_pool_fc_kernel(z_ref, gamma_ref, beta_ref, h_ref, ht_ref, m_ref, fcb_ref, out_ref,
                      *, n_red, eps):
    z = z_ref[...]
    h = h_ref[...]
    ht = ht_ref[...]

    # Per-channel batch statistics via one-hot matmuls (each channel has n_red = B*K*T elems).
    mean = jnp.sum(jnp.dot(z, h, preferred_element_type=jnp.float32),
                   axis=0, keepdims=True) / n_red                                   # (1, C)
    mean_map = jnp.dot(mean, ht, preferred_element_type=jnp.float32)                # (1, R)
    d = z - mean_map
    var = jnp.sum(jnp.dot(d * d, h, preferred_element_type=jnp.float32),
                  axis=0, keepdims=True) / n_red                # biased var (PyTorch BN train)
    scale = gamma_ref[...] * lax.rsqrt(var + eps)                                   # (1, C)
    scale_map = jnp.dot(scale, ht, preferred_element_type=jnp.float32)              # (1, R)
    shift_map = jnp.dot(beta_ref[...], ht, preferred_element_type=jnp.float32)      # (1, R)
    zn = d * scale_map + shift_map

    out_ref[...] = jnp.dot(zn, m_ref[...],
                           preferred_element_type=jnp.float32) + fcb_ref[...]


@functools.partial(
    jax.jit,
    static_argnames=("n_chans", "num_kernels", "kernel_size", "pool_size", "n_outputs"))
def shallow_gnn_forward(params, x, *, n_chans, num_kernels, kernel_size, pool_size, n_outputs):
    B, C, n_times = x.shape
    assert C == n_chans
    K = num_kernels
    T = n_times - kernel_size + 1
    P = T // pool_size
    assert P >= 1, "pool_size larger than conv output length"
    assert T >= C, "first n_chans graph nodes must fall inside (b=0, c=0)"
    KT = K * T
    R = C * KT
    out_pad = ((n_outputs + 127) // 128) * 128
    f32 = jnp.float32
    vmem = pltpu.MemorySpace.VMEM
    smem = pltpu.MemorySpace.SMEM

    x2d = x.reshape(B * C, n_times).astype(f32)

    # ---- fuse temporal-conv weights with the (bias-free) GCN linear ----
    conv_w = params["conv_w"].reshape(K, kernel_size).astype(f32)
    gcn_wT = params["gcn_w"].astype(f32).T                         # (K_in, K_out)
    wf = conv_w.T @ gcn_wT                                         # (ksize, K)
    bf = params["conv_b"].astype(f32) @ gcn_wT                     # (K,)
    gb = params["gcn_b"].astype(f32)                               # (K,)

    # ---- gcn_norm'd adjacency on the C graph node indices ----
    w = params["edge_weights"].reshape(C, C).astype(f32)           # w[i, j]: edge i -> j
    deg = jnp.sum(w, axis=0)                                       # target degree (self-loops incl.)
    safe = jnp.where(deg > 0, deg, 1.0)
    dinv = jnp.where(deg > 0, lax.rsqrt(safe), 0.0)                # inf -> 0 guard
    adjT = dinv[:, None] * w * dinv[None, :]                       # [i, j] = d_i^-1/2 w_ij d_j^-1/2

    k1_out = pl.pallas_call(
        functools.partial(conv_gcn_elu_kernel, C=C, K=K, ksize=kernel_size, T=T),
        in_specs=[
            pl.BlockSpec(memory_space=vmem),    # x2d
            pl.BlockSpec(memory_space=smem),    # wf
            pl.BlockSpec(memory_space=smem),    # bf
            pl.BlockSpec(memory_space=smem),    # gb
            pl.BlockSpec(memory_space=vmem),    # adjT
        ],
        out_specs=pl.BlockSpec(memory_space=vmem),
        out_shape=jax.ShapeDtypeStruct((B * C, KT), f32),
    )(x2d, wf, bf, gb, adjT)

    # Free row-major reshape: row (b, c), lane (k, t)  ->  row b, lane l = c*K*T + k*T + t.
    z2d = k1_out.reshape(B, R)

    # ---- fold torch's view(B,K,C,T).transpose(1,2) scramble + AvgPool2d((1,pool)) +
    #      flatten + Linear into host-built matrices indexed by kernel-1's lane order ----
    c_i = jnp.arange(C).reshape(C, 1, 1)
    k_i = jnp.arange(K).reshape(1, K, 1)
    t_i = jnp.arange(T).reshape(1, 1, T)
    f = c_i * (T * K) + t_i * K + k_i                    # flat within-batch offset of (b,k,c,t)
    k2 = f // (C * T)
    c2 = (f % (C * T)) // T                              # BatchNorm2d channel of each element
    t2 = f % T
    p_i = jnp.minimum(t2 // pool_size, P - 1)
    valid = (t2 < P * pool_size).astype(f32)
    feat_idx = c2 * (K * P) + k2 * P + p_i               # torch flatten order (c2, k2, p)
    fc_wT = params["fc_w"].astype(f32).T                 # (C*K*P, n_out)
    m = fc_wT[feat_idx] * (valid[..., None] / float(pool_size))    # (C, K, T, n_out)
    m = m.reshape(R, n_outputs)
    m = jnp.pad(m, ((0, 0), (0, out_pad - n_outputs)))
    fcb = jnp.pad(params["fc_b"].astype(f32), (0, out_pad - n_outputs)).reshape(1, out_pad)

    h_map = (c2.reshape(R, 1) == jnp.arange(C)[None, :]).astype(f32)   # (R, C) one-hot channel
    ht_map = h_map.T                                                   # (C, R)

    gamma = params["bn_gamma"].astype(f32).reshape(1, C)
    beta = params["bn_beta"].astype(f32).reshape(1, C)

    # TODO(synk): nn.Dropout(0.8) is stochastic in train mode and BatchNorm running-stat
    # updates are a stateful side effect; dropout is applied as identity (eval semantics)
    # while normalization itself uses train-mode batch statistics.
    out = pl.pallas_call(
        functools.partial(bn_pool_fc_kernel, n_red=float(B * K * T), eps=1e-5),
        in_specs=[pl.BlockSpec(memory_space=vmem)] * 7,
        out_specs=pl.BlockSpec(memory_space=vmem),
        out_shape=jax.ShapeDtypeStruct((B, out_pad), f32),
    )(z2d, gamma, beta, h_map, ht_map, m, fcb)

    return out[:, :n_outputs]


def reference_forward(params, x, *, n_chans, num_kernels, kernel_size, pool_size, n_outputs):
    """Pure NumPy (float64) reference of the PyTorch forward pass."""
    x = np.asarray(x, np.float64)
    B, C, n_times = x.shape
    K = num_kernels
    T = n_times - kernel_size + 1
    P = T // pool_size

    cw = np.asarray(params["conv_w"], np.float64).reshape(K, kernel_size)
    cb = np.asarray(params["conv_b"], np.float64)
    conv = np.zeros((B, K, C, T))
    for s in range(kernel_size):
        conv += cw[:, s][None, :, None, None] * x[:, None, :, s:s + T]
    conv += cb[None, :, None, None]

    nodes = conv.reshape(B, K, C * T).transpose(0, 2, 1).reshape(B * C * T, K)

    gw = np.asarray(params["gcn_w"], np.float64)
    gbias = np.asarray(params["gcn_b"], np.float64)
    h = nodes @ gw.T
    w = np.asarray(params["edge_weights"], np.float64).reshape(C, C)
    deg = w.sum(axis=0)
    dinv = np.where(deg > 0, 1.0 / np.sqrt(np.where(deg > 0, deg, 1.0)), 0.0)
    norm = dinv[:, None] * w * dinv[None, :]
    agg = h.copy()
    agg[:C] = norm.T @ h[:C]
    agg = agg + gbias[None, :]

    z = agg.reshape(B, K, C, T).transpose(0, 2, 1, 3)             # (B, C, K, T)
    z = np.where(z > 0, z, np.exp(np.minimum(z, 0.0)) - 1.0)      # ELU
    mean = z.mean(axis=(0, 2, 3), keepdims=True)
    var = z.var(axis=(0, 2, 3), keepdims=True)
    gamma = np.asarray(params["bn_gamma"], np.float64)[None, :, None, None]
    beta = np.asarray(params["bn_beta"], np.float64)[None, :, None, None]
    zn = (z - mean) / np.sqrt(var + 1e-5) * gamma + beta
    pooled = zn[:, :, :, :P * pool_size].reshape(B, C, K, P, pool_size).mean(axis=-1)
    flat = pooled.reshape(B, C * K * P)
    fw = np.asarray(params["fc_w"], np.float64)
    fb = np.asarray(params["fc_b"], np.float64)
    return flat @ fw.T + fb[None, :]


if __name__ == "__main__":
    # Small, consistent shapes: batch=2, n_chans=4, n_times=36,
    # num_kernels=8, kernel_size=5 -> T=32, pool_size=8 -> pool_out=4, n_outputs=3.
    B, n_chans, n_times = 2, 4, 36
    num_kernels, kernel_size, pool_size, n_outputs = 8, 5, 8, 3
    pool_out = (n_times - kernel_size + 1) // pool_size
    feat_size = num_kernels * n_chans * pool_out

    keys = jax.random.split(jax.random.PRNGKey(0), 8)
    params = dict(
        conv_w=jax.random.uniform(keys[0], (num_kernels, kernel_size), jnp.float32, -0.3, 0.3),
        conv_b=jax.random.uniform(keys[1], (num_kernels,), jnp.float32, -0.1, 0.1),
        gcn_w=jax.random.uniform(keys[2], (num_kernels, num_kernels), jnp.float32, -0.3, 0.3),
        gcn_b=jax.random.uniform(keys[3], (num_kernels,), jnp.float32, -0.1, 0.1),
        edge_weights=jax.random.uniform(keys[4], (n_chans * n_chans,), jnp.float32, 0.0, 1.0),
        bn_gamma=jnp.ones((n_chans,), jnp.float32),
        bn_beta=jnp.zeros((n_chans,), jnp.float32),
        fc_w=jax.random.uniform(keys[5], (n_outputs, feat_size), jnp.float32, -0.1, 0.1),
        fc_b=jax.random.uniform(keys[6], (n_outputs,), jnp.float32, -0.1, 0.1),
    )
    x = jax.random.normal(keys[7], (B, n_chans, n_times), jnp.float32)

    out = shallow_gnn_forward(
        params, x,
        n_chans=n_chans, num_kernels=num_kernels, kernel_size=kernel_size,
        pool_size=pool_size, n_outputs=n_outputs,
    )
    out = jax.block_until_ready(out)
    assert out.shape == (B, n_outputs) and out.dtype == jnp.float32

    ref = reference_forward(
        params, np.asarray(x),
        n_chans=n_chans, num_kernels=num_kernels, kernel_size=kernel_size,
        pool_size=pool_size, n_outputs=n_outputs,
    )
    err = np.max(np.abs(np.asarray(out, np.float64) - ref))
    assert np.allclose(np.asarray(out), ref, rtol=5e-3, atol=5e-3), f"max abs err {err}"
    print("KERNEL_OK")
</pallas_src>

<mosaic_0001>
module attributes {stable_mosaic.version = 11 : i64} {
  func.func @conv_gcn_elu_kernel(%arg0: memref<8x36xf32, #tpu.memory_space<vmem>>, %arg1: memref<5x8xf32, #tpu.memory_space<smem>>, %arg2: memref<8xf32, #tpu.memory_space<smem>>, %arg3: memref<8xf32, #tpu.memory_space<smem>>, %arg4: memref<4x4xf32, #tpu.memory_space<vmem>>, %arg5: memref<8x256xf32, #tpu.memory_space<vmem>>) attributes {dimension_semantics = [], scalar_prefetch = 0 : i64, scratch_operands = 0 : i64, tpu.core_type = #tpu.core_type<tc>} {
    %c0 = arith.constant 0 : index
    %c0_0 = arith.constant 0 : index
    %0 = vector.load %arg0[%c0, %c0_0] : memref<8x36xf32, #tpu.memory_space<vmem>>, vector<8x36xf32>
    %1 = tpu.iota {dimensions = array<i32: 0>} : vector<8x32xi32>
    %2 = tpu.iota {dimensions = array<i32: 1>} : vector<8x32xi32>
    %c0_i32 = arith.constant 0 : i32
    %3 = vector.broadcast %c0_i32 : i32 to vector<8x32xi32>
    %4 = arith.cmpi eq, %1, %3 : vector<8x32xi32>
    %c4_i32 = arith.constant 4 : i32
    %5 = vector.broadcast %c4_i32 : i32 to vector<8x32xi32>
    %6 = arith.cmpi slt, %2, %5 : vector<8x32xi32>
    %7 = arith.andi %4, %6 : vector<8x32xi1>
    %c0_1 = arith.constant 0 : index
    %8 = memref.load %arg2[%c0_1] : memref<8xf32, #tpu.memory_space<smem>>
    %9 = vector.broadcast %8 : f32 to vector<8x32xf32>
    %c1 = arith.constant 1 : index
    %10 = memref.load %arg2[%c1] : memref<8xf32, #tpu.memory_space<smem>>
    %11 = vector.broadcast %10 : f32 to vector<8x32xf32>
    %c2 = arith.constant 2 : index
    %12 = memref.load %arg2[%c2] : memref<8xf32, #tpu.memory_space<smem>>
    %13 = vector.broadcast %12 : f32 to vector<8x32xf32>
    %c3 = arith.constant 3 : index
    %14 = memref.load %arg2[%c3] : memref<8xf32, #tpu.memory_space<smem>>
    %15 = vector.broadcast %14 : f32 to vector<8x32xf32>
    %c4 = arith.constant 4 : index
    %16 = memref.load %arg2[%c4] : memref<8xf32, #tpu.memory_space<smem>>
    %17 = vector.broadcast %16 : f32 to vector<8x32xf32>
    %c5 = arith.constant 5 : index
    %18 = memref.load %arg2[%c5] : memref<8xf32, #tpu.memory_space<smem>>
    %19 = vector.broadcast %18 : f32 to vector<8x32xf32>
    %c6 = arith.constant 6 : index
    %20 = memref.load %arg2[%c6] : memref<8xf32, #tpu.memory_space<smem>>
    %21 = vector.broadcast %20 : f32 to vector<8x32xf32>
    %c7 = arith.constant 7 : index
    %22 = memref.load %arg2[%c7] : memref<8xf32, #tpu.memory_space<smem>>
    %23 = vector.broadcast %22 : f32 to vector<8x32xf32>
    %24 = vector.extract_strided_slice %0 {offsets = [0, 0], sizes = [8, 32], strides = [1, 1]} : vector<8x36xf32> to vector<8x32xf32>
    %c0_2 = arith.constant 0 : index
    %c0_3 = arith.constant 0 : index
    %25 = memref.load %arg1[%c0_2, %c0_3] : memref<5x8xf32, #tpu.memory_space<smem>>
    %26 = vector.broadcast %25 : f32 to vector<8x32xf32>
    %27 = arith.mulf %26, %24 : vector<8x32xf32>
    %28 = arith.addf %9, %27 : vector<8x32xf32>
    %c0_4 = arith.constant 0 : index
    %c1_5 = arith.constant 1 : index
    %29 = memref.load %arg1[%c0_4, %c1_5] : memref<5x8xf32, #tpu.memory_space<smem>>
    %30 = vector.broadcast %29 : f32 to vector<8x32xf32>
    %31 = arith.mulf %30, %24 : vector<8x32xf32>
    %32 = arith.addf %11, %31 : vector<8x32xf32>
    %c0_6 = arith.constant 0 : index
    %c2_7 = arith.constant 2 : index
    %33 = memref.load %arg1[%c0_6, %c2_7] : memref<5x8xf32, #tpu.memory_space<smem>>
    %34 = vector.broadcast %33 : f32 to vector<8x32xf32>
    %35 = arith.mulf %34, %24 : vector<8x32xf32>
    %36 = arith.addf %13, %35 : vector<8x32xf32>
    %c0_8 = arith.constant 0 : index
    %c3_9 = arith.constant 3 : index
    %37 = memref.load %arg1[%c0_8, %c3_9] : memref<5x8xf32, #tpu.memory_space<smem>>
    %38 = vector.broadcast %37 : f32 to vector<8x32xf32>
    %39 = arith.mulf %38, %24 : vector<8x32xf32>
    %40 = arith.addf %15, %39 : vector<8x32xf32>
    %c0_10 = arith.constant 0 : index
    %c4_11 = arith.constant 4 : index
    %41 = memref.load %arg1[%c0_10, %c4_11] : memref<5x8xf32, #tpu.memory_space<smem>>
    %42 = vector.broadcast %41 : f32 to vector<8x32xf32>
    %43 = arith.mulf %42, %24 : vector<8x32xf32>
    %44 = arith.addf %17, %43 : vector<8x32xf32>
    %c0_12 = arith.constant 0 : index
    %c5_13 = arith.constant 5 : index
    %45 = memref.load %arg1[%c0_12, %c5_13] : memref<5x8xf32, #tpu.memory_space<smem>>
    %46 = vector.broadcast %45 : f32 to vector<8x32xf32>
    %47 = arith.mulf %46, %24 : vector<8x32xf32>
    %48 = arith.addf %19, %47 : vector<8x32xf32>
    %c0_14 = arith.constant 0 : index
    %c6_15 = arith.constant 6 : index
    %49 = memref.load %arg1[%c0_14, %c6_15] : memref<5x8xf32, #tpu.memory_space<smem>>
    %50 = vector.broadcast %49 : f32 to vector<8x32xf32>
    %51 = arith.mulf %50, %24 : vector<8x32xf32>
    %52 = arith.addf %21, %51 : vector<8x32xf32>
    %c0_16 = arith.constant 0 : index
    %c7_17 = arith.constant 7 : index
    %53 = memref.load %arg1[%c0_16, %c7_17] : memref<5x8xf32, #tpu.memory_space<smem>>
    %54 = vector.broadcast %53 : f32 to vector<8x32xf32>
    %55 = arith.mulf %54, %24 : vector<8x32xf32>
    %56 = arith.addf %23, %55 : vector<8x32xf32>
    %57 = vector.extract_strided_slice %0 {offsets = [0, 1], sizes = [8, 32], strides = [1, 1]} : vector<8x36xf32> to vector<8x32xf32>
    %c1_18 = arith.constant 1 : index
    %c0_19 = arith.constant 0 : index
    %58 = memref.load %arg1[%c1_18, %c0_19] : memref<5x8xf32, #tpu.memory_space<smem>>
    %59 = vector.broadcast %58 : f32 to vector<8x32xf32>
    %60 = arith.mulf %59, %57 : vector<8x32xf32>
    %61 = arith.addf %28, %60 : vector<8x32xf32>
    %c1_20 = arith.constant 1 : index
    %c1_21 = arith.constant 1 : index
    %62 = memref.load %arg1[%c1_20, %c1_21] : memref<5x8xf32, #tpu.memory_space<smem>>
    %63 = vector.broadcast %62 : f32 to vector<8x32xf32>
    %64 = arith.mulf %63, %57 : vector<8x32xf32>
    %65 = arith.addf %32, %64 : vector<8x32xf32>
    %c1_22 = arith.constant 1 : index
    %c2_23 = arith.constant 2 : index
    %66 = memref.load %arg1[%c1_22, %c2_23] : memref<5x8xf32, #tpu.memory_space<smem>>
    %67 = vector.broadcast %66 : f32 to vector<8x32xf32>
    %68 = arith.mulf %67, %57 : vector<8x32xf32>
    %69 = arith.addf %36, %68 : vector<8x32xf32>
    %c1_24 = arith.constant 1 : index
    %c3_25 = arith.constant 3 : index
    %70 = memref.load %arg1[%c1_24, %c3_25] : memref<5x8xf32, #tpu.memory_space<smem>>
    %71 = vector.broadcast %70 : f32 to vector<8x32xf32>
    %72 = arith.mulf %71, %57 : vector<8x32xf32>
    %73 = arith.addf %40, %72 : vector<8x32xf32>
    %c1_26 = arith.constant 1 : index
    %c4_27 = arith.constant 4 : index
    %74 = memref.load %arg1[%c1_26, %c4_27] : memref<5x8xf32, #tpu.memory_space<smem>>
    %75 = vector.broadcast %74 : f32 to vector<8x32xf32>
    %76 = arith.mulf %75, %57 : vector<8x32xf32>
    %77 = arith.addf %44, %76 : vector<8x32xf32>
    %c1_28 = arith.constant 1 : index
    %c5_29 = arith.constant 5 : index
    %78 = memref.load %arg1[%c1_28, %c5_29] : memref<5x8xf32, #tpu.memory_space<smem>>
    %79 = vector.broadcast %78 : f32 to vector<8x32xf32>
    %80 = arith.mulf %79, %57 : vector<8x32xf32>
    %81 = arith.addf %48, %80 : vector<8x32xf32>
    %c1_30 = arith.constant 1 : index
    %c6_31 = arith.constant 6 : index
    %82 = memref.load %arg1[%c1_30, %c6_31] : memref<5x8xf32, #tpu.memory_space<smem>>
    %83 = vector.broadcast %82 : f32 to vector<8x32xf32>
    %84 = arith.mulf %83, %57 : vector<8x32xf32>
    %85 = arith.addf %52, %84 : vector<8x32xf32>
    %c1_32 = arith.constant 1 : index
    %c7_33 = arith.constant 7 : index
    %86 = memref.load %arg1[%c1_32, %c7_33] : memref<5x8xf32, #tpu.memory_space<smem>>
    %87 = vector.broadcast %86 : f32 to vector<8x32xf32>
    %88 = arith.mulf %87, %57 : vector<8x32xf32>
    %89 = arith.addf %56, %88 : vector<8x32xf32>
    %90 = vector.extract_strided_slice %0 {offsets = [0, 2], sizes = [8, 32], strides = [1, 1]} : vector<8x36xf32> to vector<8x32xf32>
    %c2_34 = arith.constant 2 : index
    %c0_35 = arith.constant 0 : index
    %91 = memref.load %arg1[%c2_34, %c0_35] : memref<5x8xf32, #tpu.memory_space<smem>>
    %92 = vector.broadcast %91 : f32 to vector<8x32xf32>
    %93 = arith.mulf %92, %90 : vector<8x32xf32>
    %94 = arith.addf %61, %93 : vector<8x32xf32>
    %c2_36 = arith.constant 2 : index
    %c1_37 = arith.constant 1 : index
    %95 = memref.load %arg1[%c2_36, %c1_37] : memref<5x8xf32, #tpu.memory_space<smem>>
    %96 = vector.broadcast %95 : f32 to vector<8x32xf32>
    %97 = arith.mulf %96, %90 : vector<8x32xf32>
    %98 = arith.addf %65, %97 : vector<8x32xf32>
    %c2_38 = arith.constant 2 : index
    %c2_39 = arith.constant 2 : index
    %99 = memref.load %arg1[%c2_38, %c2_39] : memref<5x8xf32, #tpu.memory_space<smem>>
    %100 = vector.broadcast %99 : f32 to vector<8x32xf32>
    %101 = arith.mulf %100, %90 : vector<8x32xf32>
    %102 = arith.addf %69, %101 : vector<8x32xf32>
    %c2_40 = arith.constant 2 : index
    %c3_41 = arith.constant 3 : index
    %103 = memref.load %arg1[%c2_40, %c3_41] : memref<5x8xf32, #tpu.memory_space<smem>>
    %104 = vector.broadcast %103 : f32 to vector<8x32xf32>
    %105 = arith.mulf %104, %90 : vector<8x32xf32>
    %106 = arith.addf %73, %105 : vector<8x32xf32>
    %c2_42 = arith.constant 2 : index
    %c4_43 = arith.constant 4 : index
    %107 = memref.load %arg1[%c2_42, %c4_43] : memref<5x8xf32, #tpu.memory_space<smem>>
    %108 = vector.broadcast %107 : f32 to vector<8x32xf32>
    %109 = arith.mulf %108, %90 : vector<8x32xf32>
    %110 = arith.addf %77, %109 : vector<8x32xf32>
    %c2_44 = arith.constant 2 : index
    %c5_45 = arith.constant 5 : index
    %111 = memref.load %arg1[%c2_44, %c5_45] : memref<5x8xf32, #tpu.memory_space<smem>>
    %112 = vector.broadcast %111 : f32 to vector<8x32xf32>
    %113 = arith.mulf %112, %90 : vector<8x32xf32>
    %114 = arith.addf %81, %113 : vector<8x32xf32>
    %c2_46 = arith.constant 2 : index
    %c6_47 = arith.constant 6 : index
    %115 = memref.load %arg1[%c2_46, %c6_47] : memref<5x8xf32, #tpu.memory_space<smem>>
    %116 = vector.broadcast %115 : f32 to vector<8x32xf32>
    %117 = arith.mulf %116, %90 : vector<8x32xf32>
    %118 = arith.addf %85, %117 : vector<8x32xf32>
    %c2_48 = arith.constant 2 : index
    %c7_49 = arith.constant 7 : index
    %119 = memref.load %arg1[%c2_48, %c7_49] : memref<5x8xf32, #tpu.memory_space<smem>>
    %120 = vector.broadcast %119 : f32 to vector<8x32xf32>
    %121 = arith.mulf %120, %90 : vector<8x32xf32>
    %122 = arith.addf %89, %121 : vector<8x32xf32>
    %123 = vector.extract_strided_slice %0 {offsets = [0, 3], sizes = [8, 32], strides = [1, 1]} : vector<8x36xf32> to vector<8x32xf32>
    %c3_50 = arith.constant 3 : index
    %c0_51 = arith.constant 0 : index
    %124 = memref.load %arg1[%c3_50, %c0_51] : memref<5x8xf32, #tpu.memory_space<smem>>
    %125 = vector.broadcast %124 : f32 to vector<8x32xf32>
    %126 = arith.mulf %125, %123 : vector<8x32xf32>
    %127 = arith.addf %94, %126 : vector<8x32xf32>
    %c3_52 = arith.constant 3 : index
    %c1_53 = arith.constant 1 : index
    %128 = memref.load %arg1[%c3_52, %c1_53] : memref<5x8xf32, #tpu.memory_space<smem>>
    %129 = vector.broadcast %128 : f32 to vector<8x32xf32>
    %130 = arith.mulf %129, %123 : vector<8x32xf32>
    %131 = arith.addf %98, %130 : vector<8x32xf32>
    %c3_54 = arith.constant 3 : index
    %c2_55 = arith.constant 2 : index
    %132 = memref.load %arg1[%c3_54, %c2_55] : memref<5x8xf32, #tpu.memory_space<smem>>
    %133 = vector.broadcast %132 : f32 to vector<8x32xf32>
    %134 = arith.mulf %133, %123 : vector<8x32xf32>
    %135 = arith.addf %102, %134 : vector<8x32xf32>
    %c3_56 = arith.constant 3 : index
    %c3_57 = arith.constant 3 : index
    %136 = memref.load %arg1[%c3_56, %c3_57] : memref<5x8xf32, #tpu.memory_space<smem>>
    %137 = vector.broadcast %136 : f32 to vector<8x32xf32>
    %138 = arith.mulf %137, %123 : vector<8x32xf32>
    %139 = arith.addf %106, %138 : vector<8x32xf32>
    %c3_58 = arith.constant 3 : index
    %c4_59 = arith.constant 4 : index
    %140 = memref.load %arg1[%c3_58, %c4_59] : memref<5x8xf32, #tpu.memory_space<smem>>
    %141 = vector.broadcast %140 : f32 to vector<8x32xf32>
    %142 = arith.mulf %141, %123 : vector<8x32xf32>
    %143 = arith.addf %110, %142 : vector<8x32xf32>
    %c3_60 = arith.constant 3 : index
    %c5_61 = arith.constant 5 : index
    %144 = memref.load %arg1[%c3_60, %c5_61] : memref<5x8xf32, #tpu.memory_space<smem>>
    %145 = vector.broadcast %144 : f32 to vector<8x32xf32>
    %146 = arith.mulf %145, %123 : vector<8x32xf32>
    %147 = arith.addf %114, %146 : vector<8x32xf32>
    %c3_62 = arith.constant 3 : index
    %c6_63 = arith.constant 6 : index
    %148 = memref.load %arg1[%c3_62, %c6_63] : memref<5x8xf32, #tpu.memory_space<smem>>
    %149 = vector.broadcast %148 : f32 to vector<8x32xf32>
    %150 = arith.mulf %149, %123 : vector<8x32xf32>
    %151 = arith.addf %118, %150 : vector<8x32xf32>
    %c3_64 = arith.constant 3 : index
    %c7_65 = arith.constant 7 : index
    %152 = memref.load %arg1[%c3_64, %c7_65] : memref<5x8xf32, #tpu.memory_space<smem>>
    %153 = vector.broadcast %152 : f32 to vector<8x32xf32>
    %154 = arith.mulf %153, %123 : vector<8x32xf32>
    %155 = arith.addf %122, %154 : vector<8x32xf32>
    %156 = vector.extract_strided_slice %0 {offsets = [0, 4], sizes = [8, 32], strides = [1, 1]} : vector<8x36xf32> to vector<8x32xf32>
    %c4_66 = arith.constant 4 : index
    %c0_67 = arith.constant 0 : index
    %157 = memref.load %arg1[%c4_66, %c0_67] : memref<5x8xf32, #tpu.memory_space<smem>>
    %158 = vector.broadcast %157 : f32 to vector<8x32xf32>
    %159 = arith.mulf %158, %156 : vector<8x32xf32>
    %160 = arith.addf %127, %159 : vector<8x32xf32>
    %c4_68 = arith.constant 4 : index
    %c1_69 = arith.constant 1 : index
    %161 = memref.load %arg1[%c4_68, %c1_69] : memref<5x8xf32, #tpu.memory_space<smem>>
    %162 = vector.broadcast %161 : f32 to vector<8x32xf32>
    %163 = arith.mulf %162, %156 : vector<8x32xf32>
    %164 = arith.addf %131, %163 : vector<8x32xf32>
    %c4_70 = arith.constant 4 : index
    %c2_71 = arith.constant 2 : index
    %165 = memref.load %arg1[%c4_70, %c2_71] : memref<5x8xf32, #tpu.memory_space<smem>>
    %166 = vector.broadcast %165 : f32 to vector<8x32xf32>
    %167 = arith.mulf %166, %156 : vector<8x32xf32>
    %168 = arith.addf %135, %167 : vector<8x32xf32>
    %c4_72 = arith.constant 4 : index
    %c3_73 = arith.constant 3 : index
    %169 = memref.load %arg1[%c4_72, %c3_73] : memref<5x8xf32, #tpu.memory_space<smem>>
    %170 = vector.broadcast %169 : f32 to vector<8x32xf32>
    %171 = arith.mulf %170, %156 : vector<8x32xf32>
    %172 = arith.addf %139, %171 : vector<8x32xf32>
    %c4_74 = arith.constant 4 : index
    %c4_75 = arith.constant 4 : index
    %173 = memref.load %arg1[%c4_74, %c4_75] : memref<5x8xf32, #tpu.memory_space<smem>>
    %174 = vector.broadcast %173 : f32 to vector<8x32xf32>
    %175 = arith.mulf %174, %156 : vector<8x32xf32>
    %176 = arith.addf %143, %175 : vector<8x32xf32>
    %c4_76 = arith.constant 4 : index
    %c5_77 = arith.constant 5 : index
    %177 = memref.load %arg1[%c4_76, %c5_77] : memref<5x8xf32, #tpu.memory_space<smem>>
    %178 = vector.broadcast %177 : f32 to vector<8x32xf32>
    %179 = arith.mulf %178, %156 : vector<8x32xf32>
    %180 = arith.addf %147, %179 : vector<8x32xf32>
    %c4_78 = arith.constant 4 : index
    %c6_79 = arith.constant 6 : index
    %181 = memref.load %arg1[%c4_78, %c6_79] : memref<5x8xf32, #tpu.memory_space<smem>>
    %182 = vector.broadcast %181 : f32 to vector<8x32xf32>
    %183 = arith.mulf %182, %156 : vector<8x32xf32>
    %184 = arith.addf %151, %183 : vector<8x32xf32>
    %c4_80 = arith.constant 4 : index
    %c7_81 = arith.constant 7 : index
    %185 = memref.load %arg1[%c4_80, %c7_81] : memref<5x8xf32, #tpu.memory_space<smem>>
    %186 = vector.broadcast %185 : f32 to vector<8x32xf32>
    %187 = arith.mulf %186, %156 : vector<8x32xf32>
    %188 = arith.addf %155, %187 : vector<8x32xf32>
    %189 = vector.extract_strided_slice %160 {offsets = [0, 0], sizes = [1, 4], strides = [1, 1]} : vector<8x32xf32> to vector<1x4xf32>
    %190 = vector.extract_strided_slice %164 {offsets = [0, 0], sizes = [1, 4], strides = [1, 1]} : vector<8x32xf32> to vector<1x4xf32>
    %191 = vector.extract_strided_slice %168 {offsets = [0, 0], sizes = [1, 4], strides = [1, 1]} : vector<8x32xf32> to vector<1x4xf32>
    %192 = vector.extract_strided_slice %172 {offsets = [0, 0], sizes = [1, 4], strides = [1, 1]} : vector<8x32xf32> to vector<1x4xf32>
    %193 = vector.extract_strided_slice %176 {offsets = [0, 0], sizes = [1, 4], strides = [1, 1]} : vector<8x32xf32> to vector<1x4xf32>
    %194 = vector.extract_strided_slice %180 {offsets = [0, 0], sizes = [1, 4], strides = [1, 1]} : vector<8x32xf32> to vector<1x4xf32>
    %195 = vector.extract_strided_slice %184 {offsets = [0, 0], sizes = [1, 4], strides = [1, 1]} : vector<8x32xf32> to vector<1x4xf32>
    %196 = vector.extract_strided_slice %188 {offsets = [0, 0], sizes = [1, 4], strides = [1, 1]} : vector<8x32xf32> to vector<1x4xf32>
    %197 = tpu.concatenate %189, %190, %191, %192, %193, %194, %195, %196 in 0 : vector<1x4xf32>, vector<1x4xf32>, vector<1x4xf32>, vector<1x4xf32>, vector<1x4xf32>, vector<1x4xf32>, vector<1x4xf32>, vector<1x4xf32> -> vector<8x4xf32>
    %c0_82 = arith.constant 0 : index
    %c0_83 = arith.constant 0 : index
    %198 = vector.load %arg4[%c0_82, %c0_83] : memref<4x4xf32, #tpu.memory_space<vmem>>, vector<4x4xf32>
    %cst = arith.constant dense<0.000000e+00> : vector<8x4xf32>
    %199 = tpu.matmul %197, %198, %cst {dimension_numbers = #tpu.dot_dimension_numbers<[1], [0], [0], [1], [0, 0, 1, 1], [], []>} : vector<8x4xf32>, vector<4x4xf32>, vector<8x4xf32> -> vector<8x4xf32>
    %cst_84 = arith.constant 0.000000e+00 : f32
    %200 = vector.broadcast %cst_84 : f32 to vector<8x28xf32>
    %201 = tpu.concatenate %199, %200 in 1 : vector<8x4xf32>, vector<8x28xf32> -> vector<8x32xf32>
    %202 = vector.extract_strided_slice %201 {offsets = [0, 0], sizes = [1, 32], strides = [1, 1]} : vector<8x32xf32> to vector<1x32xf32>
    %203 = vector.shape_cast %202 : vector<1x32xf32> to vector<1x32xf32>
    %204 = vector.broadcast %203 : vector<1x32xf32> to vector<8x32xf32>
    %205 = arith.select %7, %204, %160 : vector<8x32xi1>, vector<8x32xf32>
    %c0_85 = arith.constant 0 : index
    %206 = memref.load %arg3[%c0_85] : memref<8xf32, #tpu.memory_space<smem>>
    %207 = vector.broadcast %206 : f32 to vector<8x32xf32>
    %208 = arith.addf %205, %207 : vector<8x32xf32>
    %cst_86 = arith.constant 0.000000e+00 : f32
    %209 = vector.broadcast %cst_86 : f32 to vector<8x32xf32>
    %210 = arith.cmpf ogt, %208, %209 : vector<8x32xf32>
    %cst_87 = arith.constant 0.000000e+00 : f32
    %211 = vector.broadcast %cst_87 : f32 to vector<8x32xf32>
    %212 = arith.minimumf %208, %211 : vector<8x32xf32>
    %213 = math.exp %212 : vector<8x32xf32>
    %cst_88 = arith.constant 1.000000e+00 : f32
    %214 = vector.broadcast %cst_88 : f32 to vector<8x32xf32>
    %215 = arith.subf %213, %214 : vector<8x32xf32>
    %216 = arith.select %210, %208, %215 : vector<8x32xi1>, vector<8x32xf32>
    %c0_89 = arith.constant 0 : index
    %c0_90 = arith.constant 0 : index
    %217 = vector.load %arg5[%c0_89, %c0_90] : memref<8x256xf32, #tpu.memory_space<vmem>>, vector<8x32xf32>
    tpu.vector_store %arg5[%c0_89, %c0_90], %216 {strides = array<i32>} : memref<8x256xf32, #tpu.memory_space<vmem>>, vector<8x32xf32>,
    %218 = vector.extract_strided_slice %201 {offsets = [1, 0], sizes = [1, 32], strides = [1, 1]} : vector<8x32xf32> to vector<1x32xf32>
    %219 = vector.shape_cast %218 : vector<1x32xf32> to vector<1x32xf32>
    %220 = vector.broadcast %219 : vector<1x32xf32> to vector<8x32xf32>
    %221 = arith.select %7, %220, %164 : vector<8x32xi1>, vector<8x32xf32>
    %c1_91 = arith.constant 1 : index
    %222 = memref.load %arg3[%c1_91] : memref<8xf32, #tpu.memory_space<smem>>
    %223 = vector.broadcast %222 : f32 to vector<8x32xf32>
    %224 = arith.addf %221, %223 : vector<8x32xf32>
    %cst_92 = arith.constant 0.000000e+00 : f32
    %225 = vector.broadcast %cst_92 : f32 to vector<8x32xf32>
    %226 = arith.cmpf ogt, %224, %225 : vector<8x32xf32>
    %cst_93 = arith.constant 0.000000e+00 : f32
    %227 = vector.broadcast %cst_93 : f32 to vector<8x32xf32>
    %228 = arith.minimumf %224, %227 : vector<8x32xf32>
    %229 = math.exp %228 : vector<8x32xf32>
    %cst_94 = arith.constant 1.000000e+00 : f32
    %230 = vector.broadcast %cst_94 : f32 to vector<8x32xf32>
    %231 = arith.subf %229, %230 : vector<8x32xf32>
    %232 = arith.select %226, %224, %231 : vector<8x32xi1>, vector<8x32xf32>
    %c0_95 = arith.constant 0 : index
    %c32 = arith.constant 32 : index
    %233 = vector.load %arg5[%c0_95, %c32] : memref<8x256xf32, #tpu.memory_space<vmem>>, vector<8x32xf32>
    tpu.vector_store %arg5[%c0_95, %c32], %232 {strides = array<i32>} : memref<8x256xf32, #tpu.memory_space<vmem>>, vector<8x32xf32>,
    %234 = vector.extract_strided_slice %201 {offsets = [2, 0], sizes = [1, 32], strides = [1, 1]} : vector<8x32xf32> to vector<1x32xf32>
    %235 = vector.shape_cast %234 : vector<1x32xf32> to vector<1x32xf32>
    %236 = vector.broadcast %235 : vector<1x32xf32> to vector<8x32xf32>
    %237 = arith.select %7, %236, %168 : vector<8x32xi1>, vector<8x32xf32>
    %c2_96 = arith.constant 2 : index
    %238 = memref.load %arg3[%c2_96] : memref<8xf32, #tpu.memory_space<smem>>
    %239 = vector.broadcast %238 : f32 to vector<8x32xf32>
    %240 = arith.addf %237, %239 : vector<8x32xf32>
    %cst_97 = arith.constant 0.000000e+00 : f32
    %241 = vector.broadcast %cst_97 : f32 to vector<8x32xf32>
    %242 = arith.cmpf ogt, %240, %241 : vector<8x32xf32>
    %cst_98 = arith.constant 0.000000e+00 : f32
    %243 = vector.broadcast %cst_98 : f32 to vector<8x32xf32>
    %244 = arith.minimumf %240, %243 : vector<8x32xf32>
    %245 = math.exp %244 : vector<8x32xf32>
    %cst_99 = arith.constant 1.000000e+00 : f32
    %246 = vector.broadcast %cst_99 : f32 to vector<8x32xf32>
    %247 = arith.subf %245, %246 : vector<8x32xf32>
    %248 = arith.select %242, %240, %247 : vector<8x32xi1>, vector<8x32xf32>
    %c0_100 = arith.constant 0 : index
    %c64 = arith.constant 64 : index
    %249 = vector.load %arg5[%c0_100, %c64] : memref<8x256xf32, #tpu.memory_space<vmem>>, vector<8x32xf32>
    tpu.vector_store %arg5[%c0_100, %c64], %248 {strides = array<i32>} : memref<8x256xf32, #tpu.memory_space<vmem>>, vector<8x32xf32>,
    %250 = vector.extract_strided_slice %201 {offsets = [3, 0], sizes = [1, 32], strides = [1, 1]} : vector<8x32xf32> to vector<1x32xf32>
    %251 = vector.shape_cast %250 : vector<1x32xf32> to vector<1x32xf32>
    %252 = vector.broadcast %251 : vector<1x32xf32> to vector<8x32xf32>
    %253 = arith.select %7, %252, %172 : vector<8x32xi1>, vector<8x32xf32>
    %c3_101 = arith.constant 3 : index
    %254 = memref.load %arg3[%c3_101] : memref<8xf32, #tpu.memory_space<smem>>
    %255 = vector.broadcast %254 : f32 to vector<8x32xf32>
    %256 = arith.addf %253, %255 : vector<8x32xf32>
    %cst_102 = arith.constant 0.000000e+00 : f32
    %257 = vector.broadcast %cst_102 : f32 to vector<8x32xf32>
    %258 = arith.cmpf ogt, %256, %257 : vector<8x32xf32>
    %cst_103 = arith.constant 0.000000e+00 : f32
    %259 = vector.broadcast %cst_103 : f32 to vector<8x32xf32>
    %260 = arith.minimumf %256, %259 : vector<8x32xf32>
    %261 = math.exp %260 : vector<8x32xf32>
    %cst_104 = arith.constant 1.000000e+00 : f32
    %262 = vector.broadcast %cst_104 : f32 to vector<8x32xf32>
    %263 = arith.subf %261, %262 : vector<8x32xf32>
    %264 = arith.select %258, %256, %263 : vector<8x32xi1>, vector<8x32xf32>
    %c0_105 = arith.constant 0 : index
    %c96 = arith.constant 96 : index
    %265 = vector.load %arg5[%c0_105, %c96] : memref<8x256xf32, #tpu.memory_space<vmem>>, vector<8x32xf32>
    tpu.vector_store %arg5[%c0_105, %c96], %264 {strides = array<i32>} : memref<8x256xf32, #tpu.memory_space<vmem>>, vector<8x32xf32>,
    %266 = vector.extract_strided_slice %201 {offsets = [4, 0], sizes = [1, 32], strides = [1, 1]} : vector<8x32xf32> to vector<1x32xf32>
    %267 = vector.shape_cast %266 : vector<1x32xf32> to vector<1x32xf32>
    %268 = vector.broadcast %267 : vector<1x32xf32> to vector<8x32xf32>
    %269 = arith.select %7, %268, %176 : vector<8x32xi1>, vector<8x32xf32>
    %c4_106 = arith.constant 4 : index
    %270 = memref.load %arg3[%c4_106] : memref<8xf32, #tpu.memory_space<smem>>
    %271 = vector.broadcast %270 : f32 to vector<8x32xf32>
    %272 = arith.addf %269, %271 : vector<8x32xf32>
    %cst_107 = arith.constant 0.000000e+00 : f32
    %273 = vector.broadcast %cst_107 : f32 to vector<8x32xf32>
    %274 = arith.cmpf ogt, %272, %273 : vector<8x32xf32>
    %cst_108 = arith.constant 0.000000e+00 : f32
    %275 = vector.broadcast %cst_108 : f32 to vector<8x32xf32>
    %276 = arith.minimumf %272, %275 : vector<8x32xf32>
    %277 = math.exp %276 : vector<8x32xf32>
    %cst_109 = arith.constant 1.000000e+00 : f32
    %278 = vector.broadcast %cst_109 : f32 to vector<8x32xf32>
    %279 = arith.subf %277, %278 : vector<8x32xf32>
    %280 = arith.select %274, %272, %279 : vector<8x32xi1>, vector<8x32xf32>
    %c0_110 = arith.constant 0 : index
    %c128 = arith.constant 128 : index
    %281 = vector.load %arg5[%c0_110, %c128] : memref<8x256xf32, #tpu.memory_space<vmem>>, vector<8x32xf32>
    tpu.vector_store %arg5[%c0_110, %c128], %280 {strides = array<i32>} : memref<8x256xf32, #tpu.memory_space<vmem>>, vector<8x32xf32>,
    %282 = vector.extract_strided_slice %201 {offsets = [5, 0], sizes = [1, 32], strides = [1, 1]} : vector<8x32xf32> to vector<1x32xf32>
    %283 = vector.shape_cast %282 : vector<1x32xf32> to vector<1x32xf32>
    %284 = vector.broadcast %283 : vector<1x32xf32> to vector<8x32xf32>
    %285 = arith.select %7, %284, %180 : vector<8x32xi1>, vector<8x32xf32>
    %c5_111 = arith.constant 5 : index
    %286 = memref.load %arg3[%c5_111] : memref<8xf32, #tpu.memory_space<smem>>
    %287 = vector.broadcast %286 : f32 to vector<8x32xf32>
    %288 = arith.addf %285, %287 : vector<8x32xf32>
    %cst_112 = arith.constant 0.000000e+00 : f32
    %289 = vector.broadcast %cst_112 : f32 to vector<8x32xf32>
    %290 = arith.cmpf ogt, %288, %289 : vector<8x32xf32>
    %cst_113 = arith.constant 0.000000e+00 : f32
    %291 = vector.broadcast %cst_113 : f32 to vector<8x32xf32>
    %292 = arith.minimumf %288, %291 : vector<8x32xf32>
    %293 = math.exp %292 : vector<8x32xf32>
    %cst_114 = arith.constant 1.000000e+00 : f32
    %294 = vector.broadcast %cst_114 : f32 to vector<8x32xf32>
    %295 = arith.subf %293, %294 : vector<8x32xf32>
    %296 = arith.select %290, %288, %295 : vector<8x32xi1>, vector<8x32xf32>
    %c0_115 = arith.constant 0 : index
    %c160 = arith.constant 160 : index
    %297 = vector.load %arg5[%c0_115, %c160] : memref<8x256xf32, #tpu.memory_space<vmem>>, vector<8x32xf32>
    tpu.vector_store %arg5[%c0_115, %c160], %296 {strides = array<i32>} : memref<8x256xf32, #tpu.memory_space<vmem>>, vector<8x32xf32>,
    %298 = vector.extract_strided_slice %201 {offsets = [6, 0], sizes = [1, 32], strides = [1, 1]} : vector<8x32xf32> to vector<1x32xf32>
    %299 = vector.shape_cast %298 : vector<1x32xf32> to vector<1x32xf32>
    %300 = vector.broadcast %299 : vector<1x32xf32> to vector<8x32xf32>
    %301 = arith.select %7, %300, %184 : vector<8x32xi1>, vector<8x32xf32>
    %c6_116 = arith.constant 6 : index
    %302 = memref.load %arg3[%c6_116] : memref<8xf32, #tpu.memory_space<smem>>
    %303 = vector.broadcast %302 : f32 to vector<8x32xf32>
    %304 = arith.addf %301, %303 : vector<8x32xf32>
    %cst_117 = arith.constant 0.000000e+00 : f32
    %305 = vector.broadcast %cst_117 : f32 to vector<8x32xf32>
    %306 = arith.cmpf ogt, %304, %305 : vector<8x32xf32>
    %cst_118 = arith.constant 0.000000e+00 : f32
    %307 = vector.broadcast %cst_118 : f32 to vector<8x32xf32>
    %308 = arith.minimumf %304, %307 : vector<8x32xf32>
    %309 = math.exp %308 : vector<8x32xf32>
    %cst_119 = arith.constant 1.000000e+00 : f32
    %310 = vector.broadcast %cst_119 : f32 to vector<8x32xf32>
    %311 = arith.subf %309, %310 : vector<8x32xf32>
    %312 = arith.select %306, %304, %311 : vector<8x32xi1>, vector<8x32xf32>
    %c0_120 = arith.constant 0 : index
    %c192 = arith.constant 192 : index
    %313 = vector.load %arg5[%c0_120, %c192] : memref<8x256xf32, #tpu.memory_space<vmem>>, vector<8x32xf32>
    tpu.vector_store %arg5[%c0_120, %c192], %312 {strides = array<i32>} : memref<8x256xf32, #tpu.memory_space<vmem>>, vector<8x32xf32>,
    %314 = vector.extract_strided_slice %201 {offsets = [7, 0], sizes = [1, 32], strides = [1, 1]} : vector<8x32xf32> to vector<1x32xf32>
    %315 = vector.shape_cast %314 : vector<1x32xf32> to vector<1x32xf32>
    %316 = vector.broadcast %315 : vector<1x32xf32> to vector<8x32xf32>
    %317 = arith.select %7, %316, %188 : vector<8x32xi1>, vector<8x32xf32>
    %c7_121 = arith.constant 7 : index
    %318 = memref.load %arg3[%c7_121] : memref<8xf32, #tpu.memory_space<smem>>
    %319 = vector.broadcast %318 : f32 to vector<8x32xf32>
    %320 = arith.addf %317, %319 : vector<8x32xf32>
    %cst_122 = arith.constant 0.000000e+00 : f32
    %321 = vector.broadcast %cst_122 : f32 to vector<8x32xf32>
    %322 = arith.cmpf ogt, %320, %321 : vector<8x32xf32>
    %cst_123 = arith.constant 0.000000e+00 : f32
    %323 = vector.broadcast %cst_123 : f32 to vector<8x32xf32>
    %324 = arith.minimumf %320, %323 : vector<8x32xf32>
    %325 = math.exp %324 : vector<8x32xf32>
    %cst_124 = arith.constant 1.000000e+00 : f32
    %326 = vector.broadcast %cst_124 : f32 to vector<8x32xf32>
    %327 = arith.subf %325, %326 : vector<8x32xf32>
    %328 = arith.select %322, %320, %327 : vector<8x32xi1>, vector<8x32xf32>
    %c0_125 = arith.constant 0 : index
    %c224 = arith.constant 224 : index
    %329 = vector.load %arg5[%c0_125, %c224] : memref<8x256xf32, #tpu.memory_space<vmem>>, vector<8x32xf32>
    tpu.vector_store %arg5[%c0_125, %c224], %328 {strides = array<i32>} : memref<8x256xf32, #tpu.memory_space<vmem>>, vector<8x32xf32>,
    return
  }
}

module attributes {stable_mosaic.version = 11 : i64} {
  func.func @bn_pool_fc_kernel(%arg0: memref<2x1024xf32, #tpu.memory_space<vmem>>, %arg1: memref<1x4xf32, #tpu.memory_space<vmem>>, %arg2: memref<1x4xf32, #tpu.memory_space<vmem>>, %arg3: memref<1024x4xf32, #tpu.memory_space<vmem>>, %arg4: memref<4x1024xf32, #tpu.memory_space<vmem>>, %arg5: memref<1024x128xf32, #tpu.memory_space<vmem>>, %arg6: memref<1x128xf32, #tpu.memory_space<vmem>>, %arg7: memref<2x128xf32, #tpu.memory_space<vmem>>) attributes {dimension_semantics = [], scalar_prefetch = 0 : i64, scratch_operands = 0 : i64, tpu.core_type = #tpu.core_type<tc>} {
    %c0 = arith.constant 0 : index
    %c0_0 = arith.constant 0 : index
    %0 = vector.load %arg0[%c0, %c0_0] : memref<2x1024xf32, #tpu.memory_space<vmem>>, vector<2x1024xf32>
    %c0_1 = arith.constant 0 : index
    %c0_2 = arith.constant 0 : index
    %1 = vector.load %arg3[%c0_1, %c0_2] : memref<1024x4xf32, #tpu.memory_space<vmem>>, vector<1024x4xf32>
    %c0_3 = arith.constant 0 : index
    %c0_4 = arith.constant 0 : index
    %2 = vector.load %arg4[%c0_3, %c0_4] : memref<4x1024xf32, #tpu.memory_space<vmem>>, vector<4x1024xf32>
    %cst = arith.constant dense<0.000000e+00> : vector<2x4xf32>
    %3 = tpu.matmul %0, %1, %cst {dimension_numbers = #tpu.dot_dimension_numbers<[1], [0], [0], [1], [0, 0, 1, 1], [], []>} : vector<2x1024xf32>, vector<1024x4xf32>, vector<2x4xf32> -> vector<2x4xf32>
    %cst_5 = arith.constant dense<0.000000e+00> : vector<4xf32>
    %4 = vector.multi_reduction <add>, %3, %cst_5 [0] : vector<2x4xf32> to vector<4xf32>
    %5 = vector.shape_cast %4 : vector<4xf32> to vector<1x4xf32>
    %cst_6 = arith.constant 5.120000e+02 : f32
    %6 = vector.broadcast %cst_6 : f32 to vector<1x4xf32>
    %7 = arith.divf %5, %6 : vector<1x4xf32>
    %cst_7 = arith.constant dense<0.000000e+00> : vector<1x1024xf32>
    %8 = tpu.matmul %7, %2, %cst_7 {dimension_numbers = #tpu.dot_dimension_numbers<[1], [0], [0], [1], [0, 0, 1, 1], [], []>} : vector<1x4xf32>, vector<4x1024xf32>, vector<1x1024xf32> -> vector<1x1024xf32>
    %9 = vector.broadcast %8 : vector<1x1024xf32> to vector<2x1024xf32>
    %10 = arith.subf %0, %9 : vector<2x1024xf32>
    %11 = arith.mulf %10, %10 : vector<2x1024xf32>
    %cst_8 = arith.constant dense<0.000000e+00> : vector<2x4xf32>
    %12 = tpu.matmul %11, %1, %cst_8 {dimension_numbers = #tpu.dot_dimension_numbers<[1], [0], [0], [1], [0, 0, 1, 1], [], []>} : vector<2x1024xf32>, vector<1024x4xf32>, vector<2x4xf32> -> vector<2x4xf32>
    %cst_9 = arith.constant dense<0.000000e+00> : vector<4xf32>
    %13 = vector.multi_reduction <add>, %12, %cst_9 [0] : vector<2x4xf32> to vector<4xf32>
    %14 = vector.shape_cast %13 : vector<4xf32> to vector<1x4xf32>
    %cst_10 = arith.constant 5.120000e+02 : f32
    %15 = vector.broadcast %cst_10 : f32 to vector<1x4xf32>
    %16 = arith.divf %14, %15 : vector<1x4xf32>
    %c0_11 = arith.constant 0 : index
    %c0_12 = arith.constant 0 : index
    %17 = vector.load %arg1[%c0_11, %c0_12] : memref<1x4xf32, #tpu.memory_space<vmem>>, vector<1x4xf32>
    %cst_13 = arith.constant 9.99999974E-6 : f32
    %18 = vector.broadcast %cst_13 : f32 to vector<1x4xf32>
    %19 = arith.addf %16, %18 : vector<1x4xf32>
    %20 = math.rsqrt %19 : vector<1x4xf32>
    %21 = arith.mulf %17, %20 : vector<1x4xf32>
    %cst_14 = arith.constant dense<0.000000e+00> : vector<1x1024xf32>
    %22 = tpu.matmul %21, %2, %cst_14 {dimension_numbers = #tpu.dot_dimension_numbers<[1], [0], [0], [1], [0, 0, 1, 1], [], []>} : vector<1x4xf32>, vector<4x1024xf32>, vector<1x1024xf32> -> vector<1x1024xf32>
    %c0_15 = arith.constant 0 : index
    %c0_16 = arith.constant 0 : index
    %23 = vector.load %arg2[%c0_15, %c0_16] : memref<1x4xf32, #tpu.memory_space<vmem>>, vector<1x4xf32>
    %cst_17 = arith.constant dense<0.000000e+00> : vector<1x1024xf32>
    %24 = tpu.matmul %23, %2, %cst_17 {dimension_numbers = #tpu.dot_dimension_numbers<[1], [0], [0], [1], [0, 0, 1, 1], [], []>} : vector<1x4xf32>, vector<4x1024xf32>, vector<1x1024xf32> -> vector<1x1024xf32>
    %25 = vector.broadcast %22 : vector<1x1024xf32> to vector<2x1024xf32>
    %26 = arith.mulf %10, %25 : vector<2x1024xf32>
    %27 = vector.broadcast %24 : vector<1x1024xf32> to vector<2x1024xf32>
    %28 = arith.addf %26, %27 : vector<2x1024xf32>
    %c0_18 = arith.constant 0 : index
    %c0_19 = arith.constant 0 : index
    %29 = vector.load %arg5[%c0_18, %c0_19] : memref<1024x128xf32, #tpu.memory_space<vmem>>, vector<1024x128xf32>
    %cst_20 = arith.constant dense<0.000000e+00> : vector<2x128xf32>
    %30 = tpu.matmul %28, %29, %cst_20 {dimension_numbers = #tpu.dot_dimension_numbers<[1], [0], [0], [1], [0, 0, 1, 1], [], []>} : vector<2x1024xf32>, vector<1024x128xf32>, vector<2x128xf32> -> vector<2x128xf32>
    %c0_21 = arith.constant 0 : index
    %c0_22 = arith.constant 0 : index
    %31 = vector.load %arg6[%c0_21, %c0_22] : memref<1x128xf32, #tpu.memory_space<vmem>>, vector<1x128xf32>
    %32 = vector.broadcast %31 : vector<1x128xf32> to vector<2x128xf32>
    %33 = arith.addf %30, %32 : vector<2x128xf32>
    %c0_23 = arith.constant 0 : index
    %c0_24 = arith.constant 0 : index
    %34 = vector.load %arg7[%c0_23, %c0_24] : memref<2x128xf32, #tpu.memory_space<vmem>>, vector<2x128xf32>
    tpu.vector_store %arg7[%c0_23, %c0_24], %33 {strides = array<i32>} : memref<2x128xf32, #tpu.memory_space<vmem>>, vector<2x128xf32>,
    return
  }
}

</mosaic_0001>

<bundles_post_ra>
// kernel: shallow_gnn_forward.2
= control target key start
LH: loop header
LB: loop body
LE: loop exit
PB: predicated region body
PF: predicated region fallthrough
CT: control target
= control target key end

     0   :  { %10 = vsyncpa [#allocation3], 0  ;;  %s1098_s0 = inlined_call_operand.vmem [shape: f32[8,36], index: 0, kind: input, shape index: {}]   ;;  %s1099_s1 = inlined_call_operand.vmem [shape: f32[5,8], index: 1, kind: input, shape index: {}]   ;;  %s1100_s2 = inlined_call_operand.vmem [shape: f32[8], index: 2, kind: input, shape index: {}]   ;;  %s1101_s3 = inlined_call_operand.vmem [shape: f32[8], index: 3, kind: input, shape index: {}]   ;;  %s1102_s4 = inlined_call_operand.vmem [shape: f32[4,4], index: 4, kind: input, shape index: {}]   ;;  %s1103_s5 = inlined_call_operand.vmem [shape: f32[8,256], index: 5, kind: output, shape index: {}]  }
   0x1   :  { %11 = vsyncpa [#allocation5], 0  ;;  %s30_s20 = sshll.u32 %s1100_s2, 4  ;;  %s20_s23 = sshll.u32 %s1099_s1, 4  ;;  %s31_s20 = int_to_ptr.vmem [resolvable:$true] %s30_s20  ;;  %s21_s23 = int_to_ptr.vmem [resolvable:$true] %s20_s23 }
   0x2   :  { %s734_s24 = scalar_lea.vmem %s31_s20, 16  ;;  %p739_p1 = scmp.lt.s32.totalorder %s31_s20, %s31_s20 }
   0x3   :  { %p735_p0 = scmp.ne.s32.totalorder %s31_s20, %s734_s24  ;;  %p740_p2 = scmp.lt.s32.totalorder %s734_s24, %s734_s24 }
   0x5   :  { %p741_p3 = por %p740_p2, %p739_p1 }
   0x7   :  { %p742_p4 = pnand %p741_p3, %p735_p0 }
   0x9   :  { %745 = shalt.err (!%p742_p4)
}
   0xa   :  { %s774_s25 = smov [#allocation4]   ;;  %s746_s26 = scalar_lea.vmem %s21_s23, 128 }
   0xb   :  { %33 = dma.vmem_to_smem %s31_s20, 16, %s774_s25, [#allocation5]  }
   0xc   :  { %p747_p5 = scmp.ne.s32.totalorder %s21_s23, %s746_s26  ;;  %p751_p6 = scmp.lt.s32.totalorder %s21_s23, %s21_s23 }
   0xd   :  { %p752_p7 = scmp.lt.s32.totalorder %s746_s26, %s746_s26 }
   0xf   :  { %p753_p8 = por %p752_p7, %p751_p6 }
  0x11   :  { %p754_p9 = pnand %p753_p8, %p747_p5 }
  0x13   :  { %757 = shalt.err (!%p754_p9)
}
  0x14   :  { %s775_s2 = smov [#allocation2]   ;;  %s40_s28 = sshll.u32 %s1101_s3, 4  ;;  %s41_s28 = int_to_ptr.vmem [resolvable:$true] %s40_s28 }
  0x15   :  { %23 = dma.vmem_to_smem %s21_s23, 128, %s775_s2, [#allocation3]  }
  0x16   :  { %s758_s29 = scalar_lea.vmem %s41_s28, 16  ;;  %p763_p11 = scmp.lt.s32.totalorder %s41_s28, %s41_s28 }
  0x17   :  { %p759_p10 = scmp.ne.s32.totalorder %s41_s28, %s758_s29  ;;  %p764_p12 = scmp.lt.s32.totalorder %s758_s29, %s758_s29 }
  0x19   :  { %p765_p13 = por %p764_p12, %p763_p11 }
  0x1b   :  { %p766_p0 = pnand %p765_p13, %p759_p10 }
  0x1d   :  { %769 = shalt.err (!%p766_p0)
}
  0x1e   :  { %s776_s30 = smov [#allocation6]  }
  0x1f   :  { %43 = dma.vmem_to_smem %s41_s28, 16, %s776_s30, [#allocation5]  }
  0x20   :  { %770 = dma.done.wait [#allocation3], 128  }
  0x21   :  { %771 = vsyncadd [#allocation3], 4294967168 }
  0x22   :  { %772 = dma.done.wait [#allocation5], 32  }
  0x23   :  { %773 = vsyncadd [#allocation5], 4294967264 }
  0x24   :  { %55 = sfence }
  0x25   :  { %s651_s6 = sld [smem:[#allocation2 + $0x81]]  ;;  %v828_v0 = vld [vmem:[%s1098_s0] sm:$0xff]  ;;  %s777_s15 = smov 127   ;;  %v781_v60 = vmov 0.0   ;;  %vm395_vm0 = vcmask 1043456   ;;  %vm782_vm1 = vmmov 0  }
  0x26   :  { %s650_s7 = sld [smem:[#allocation2 + $0x80]]  ;;  %s778_s19 = smov 126   ;;  %v403_v59 = vld [vmem:[%s1102_s4] sm:$0xf]  ;;  %701 = vmatprep.subr.mxu0 %v781_v60  ;;  %703 = vmatprep.mubr.msk.f32.mxu0 %vm782_vm1, %v781_v60  ;;  %vm389_vm2 = vcmask 1040384   ;;  %vm391_vm3 = vcmask 1041408  }
  0x27   :  { %s652_s8 = sld [smem:[#allocation2 + $0x82]]  ;;  %s779_s26 = smov 125   ;;  %702 = vmatpush3.msk.msra.mxu0 %vm395_vm0, %v403_v59  ;;  %vm393_vm4 = vcmask 1042432   ;;  %vm397_vm5 = vcmask 1044480   ;;  %vm399_vm6 = vcmask 1045504   ;;  %vm401_vm7 = vcmask 1046528  }
  0x28   :  { %s653_s9 = sld [smem:[#allocation2 + $0x83]]  ;;  %vm404_vm8 = vcmask 31744   ;;  %vm496_vm15 = vcmask 261120  }
  0x29   :  { %s659_s11 = sld [smem:[#allocation2 + $0x101]] }
  0x2a   :  { %s654_s12 = sld [smem:[#allocation2 + $0x84]] }
  0x2b   :  { %v121_v1 = vstv %s651_s6  ;;  %s660_s13 = sld [smem:[#allocation2 + $0x102]] }
  0x2c   :  { %v122_v2 = vmul.f32 %v121_v1, %v828_v0  ;;  %v113_v3 = vstv %s650_s7  ;;  %s655_s14 = sld [smem:[#allocation2 + $0x85]] }
  0x2d   :  { %v114_v4 = vmul.f32 %v113_v3, %v828_v0  ;;  %v129_v5 = vstv %s652_s8  ;;  %s658_s0 = sld [smem:[#allocation2 + $0x100]]  ;;  %s780_s8 = smov 124  }
  0x2e   :  { %124 = vrot.lane.b32.xlu0 %v122_v2, %s777_s15  ;;  %v130_v6 = vmul.f32 %v129_v5, %v828_v0  ;;  %v137_v7 = vstv %s653_s9  ;;  %s661_s16 = sld [smem:[#allocation2 + $0x103]] }
  0x2f   :  { %116 = vrot.lane.b32.xlu1 %v114_v4, %s777_s15  ;;  %v138_v8 = vmul.f32 %v137_v7, %v828_v0  ;;  %v185_v9 = vstv %s659_s11  ;;  %s667_s17 = sld [smem:[#allocation2 + $0x181]] }
  0x30   :  { %v145_v10 = vstv %s654_s12  ;;  %v186_v11 = vmul.f32 %v185_v9, %v828_v0  ;;  %s656_s18 = sld [smem:[#allocation2 + $0x86]] }
  0x31   :  { %v146_v12 = vmul.f32 %v145_v10, %v828_v0  ;;  %v193_v13 = vstv %s660_s13  ;;  %s662_s20 = sld [smem:[#allocation2 + $0x104]] }
  0x32   :  { %132 = vrot.lane.b32.xlu0 %v130_v6, %s777_s15  ;;  %v153_v14 = vstv %s655_s14  ;;  %v194_v15 = vmul.f32 %v193_v13, %v828_v0  ;;  %s668_s21 = sld [smem:[#allocation2 + $0x182]] }
  0x33   :  { %140 = vrot.lane.b32.xlu1 %v138_v8, %s777_s15  ;;  %v154_v16 = vmul.f32 %v153_v14, %v828_v0  ;;  %v177_v17 = vstv %s658_s0  ;;  %s657_s22 = sld [smem:[#allocation2 + $0x87]] }
  0x34   :  { %v201_v18 = vstv %s661_s16  ;;  %v178_v19 = vmul.f32 %v177_v17, %v828_v0  ;;  %s663_s23 = sld [smem:[#allocation2 + $0x105]] }
  0x35   :  { %v202_v20 = vmul.f32 %v201_v18, %v828_v0  ;;  %v249_v21 = vstv %s667_s17  ;;  %s666_s24 = sld [smem:[#allocation2 + $0x180]] }
  0x36   :  { %188 = vrot.lane.b32.xlu0 %v186_v11, %s778_s19  ;;  %v161_v22 = vstv %s656_s18  ;;  %v250_v23 = vmul.f32 %v249_v21, %v828_v0  ;;  %s669_s25 = sld [smem:[#allocation2 + $0x183]] }
  0x37   :  { %148 = vrot.lane.b32.xlu1 %v146_v12, %s777_s15  ;;  %v162_v24 = vmul.f32 %v161_v22, %v828_v0  ;;  %v209_v25 = vstv %s662_s20  ;;  %s675_s2 = sld [smem:[#allocation2 + $0x201]] }
  0x38   :  { %v257_v26 = vstv %s668_s21  ;;  %v210_v27 = vmul.f32 %v209_v25, %v828_v0  ;;  %s664_s1 = sld [smem:[#allocation2 + $0x106]] }
  0x39   :  { %v258_v28 = vmul.f32 %v257_v26, %v828_v0  ;;  %v169_v29 = vstv %s657_s22  ;;  %s670_s27 = sld [smem:[#allocation2 + $0x184]] }
  0x3a   :  { %196 = vrot.lane.b32.xlu0 %v194_v15, %s778_s19  ;;  %v217_v30 = vstv %s663_s23  ;;  %v170_v31 = vmul.f32 %v169_v29, %v828_v0  ;;  %s676_s28 = sld [smem:[#allocation2 + $0x202]] }
  0x3b   :  { %156 = vrot.lane.b32.xlu1 %v154_v16, %s777_s15  ;;  %v218_v32 = vmul.f32 %v217_v30, %v828_v0  ;;  %v241_v33 = vstv %s666_s24  ;;  %s665_s29 = sld [smem:[#allocation2 + $0x107]] }
  0x3c   :  { %v265_v34 = vstv %s669_s25  ;;  %v242_v35 = vmul.f32 %v241_v33, %v828_v0  ;;  %s671_s30 = sld [smem:[#allocation2 + $0x185]] }
  0x3d   :  { %v266_v36 = vmul.f32 %v265_v34, %v828_v0  ;;  %v313_v37 = vstv %s675_s2  ;;  %s674_s6 = sld [smem:[#allocation2 + $0x200]] }
  0x3e   :  { %180 = vrot.lane.b32.xlu0 %v178_v19, %s778_s19  ;;  %v225_v38 = vstv %s664_s1  ;;  %v314_v39 = vmul.f32 %v313_v37, %v828_v0  ;;  %s677_s7 = sld [smem:[#allocation2 + $0x203]] }
  0x3f   :  { %204 = vrot.lane.b32.xlu1 %v202_v20, %s778_s19  ;;  %v226_v40 = vmul.f32 %v225_v38, %v828_v0  ;;  %v273_v41 = vstv %s670_s27  ;;  %s672_s9 = sld [smem:[#allocation2 + $0x186]] }
  0x40   :  { %v321_v42 = vstv %s676_s28  ;;  %v274_v43 = vmul.f32 %v273_v41, %v828_v0  ;;  %s678_s3 = sld [smem:[#allocation2 + $0x204]] }
  0x41   :  { %v322_v44 = vmul.f32 %v321_v42, %v828_v0  ;;  %v233_v45 = vstv %s665_s29  ;;  %s673_s10 = sld [smem:[#allocation2 + $0x187]] }
  0x42   :  { %252 = vrot.lane.b32.xlu0 %v250_v23, %s779_s26  ;;  %v281_v46 = vstv %s671_s30  ;;  %v234_v47 = vmul.f32 %v233_v45, %v828_v0  ;;  %s679_s11 = sld [smem:[#allocation2 + $0x205]] }
  0x43   :  { %164 = vrot.lane.b32.xlu1 %v162_v24, %s777_s15  ;;  %v282_v48 = vmul.f32 %v281_v46, %v828_v0  ;;  %v305_v49 = vstv %s674_s6  ;;  %s680_s12 = sld [smem:[#allocation2 + $0x206]] }
  0x44   :  { %v329_v50 = vstv %s677_s7  ;;  %v306_v51 = vmul.f32 %v305_v49, %v828_v0  ;;  %s681_s13 = sld [smem:[#allocation2 + $0x207]] }
  0x45   :  { %v330_v52 = vmul.f32 %v329_v50, %v828_v0  ;;  %v289_v53 = vstv %s672_s9  ;;  %s920_s4 = sld [smem:[#allocation4 + $0x1]] }
  0x46   :  { %212 = vrot.lane.b32.xlu0 %v210_v27, %s778_s19  ;;  %v337_v54 = vstv %s678_s3  ;;  %v290_v55 = vmul.f32 %v289_v53, %v828_v0  ;;  %s643_s0 = sld [smem:[#allocation2 + $0x1]] }
  0x47   :  { %260 = vrot.lane.b32.xlu1 %v258_v28, %s779_s26  ;;  %v338_v56 = vmul.f32 %v337_v54, %v828_v0  ;;  %v297_v57 = vstv %s673_s10  ;;  %s926_s16 = sld [smem:[#allocation4]]  ;;  %s783_s10 = smov 32  }
  0x48   :  { %v345_v58 = vstv %s679_s11  ;;  %v298_v61 = vmul.f32 %v297_v57, %v828_v0  ;;  %s80_s17 = sld [smem:[#allocation2]]  ;;  %s784_s11 = smov 64  }
  0x49   :  { %v346_v62 = vmul.f32 %v345_v58, %v828_v0  ;;  %v353_v63 = vstv %s680_s12  ;;  %s644_s18 = sld [smem:[#allocation2 + $0x2]] }
  0x4a   :  { %172 = vrot.lane.b32.xlu0 %v170_v31, %s777_s15  ;;  %v361_v1 = vstv %s681_s13  ;;  %v354_v2 = vmul.f32 %v353_v63, %v828_v0  ;;  %s646_s20 = sld [smem:[#allocation2 + $0x4]] }
  0x4b   :  { %220 = vrot.lane.b32.xlu1 %v218_v32, %s778_s19  ;;  %v362_v3 = vmul.f32 %v361_v1, %v828_v0  ;;  %s932_s21 = sld [smem:[#allocation4 + $0x2]]  ;;  %v67_v27 = vstv %s920_s4  ;;  %s785_s4 = smov 96  }
  0x4c   :  { %s934_s22 = sld [smem:[#allocation2 + $0x5]]  ;;  %v85_v21 = vstv %s643_s0 }
  0x4d   :  { %s936_s23 = sld [smem:[#allocation4 + $0x3]]  ;;  %v86_v24 = vmul.f32 %v85_v21, %v828_v0  ;;  %v65_v32 = vstv %s926_s16 }
  0x4e   :  { %244 = vrot.lane.b32.xlu0 %v242_v35, %s779_s26  ;;  %s938_s24 = sld [smem:[#allocation4 + $0x4]]  ;;  %v81_v23 = vstv %s80_s17 }
  0x4f   :  { %268 = vrot.lane.b32.xlu1 %v266_v36, %s779_s26  ;;  %s940_s25 = sld [smem:[#allocation4 + $0x5]]  ;;  %v89_v25 = vstv %s644_s18  ;;  %v82_v30 = vmul.f32 %v81_v23, %v828_v0  ;;  %v87_v34 = vadd.f32 %v86_v24, %v67_v27 }
  0x50   :  { %s946_s2 = sld [smem:[#allocation2 + $0x7]]  ;;  %v97_v31 = vstv %s646_s20  ;;  %v90_v33 = vmul.f32 %v89_v25, %v828_v0 }
  0x51   :  { %s953_s1 = sld [smem:[#allocation4 + $0x6]]  ;;  %v69_v35 = vstv %s932_s21  ;;  %v83_v42 = vadd.f32 %v82_v30, %v65_v32 }
  0x52   :  { %316 = vrot.lane.b32.xlu0 %v314_v39, %s780_s8  ;;  %v101_v37 = vstv %s934_s22  ;;  %s960_s27 = sld [smem:[#allocation4 + $0x7]] }
  0x53   :  { %228 = vrot.lane.b32.xlu1 %v226_v40, %s778_s19  ;;  %v71_v39 = vstv %s936_s23  ;;  %v98_v40 = vmul.f32 %v97_v31, %v828_v0  ;;  %v102_v45 = vmul.f32 %v101_v37, %v828_v0  ;;  %s1010_s28 = sld [smem:[#allocation6 + $0x5]] }
  0x54   :  { %s1012_s29 = sld [smem:[#allocation6 + $0x1]] }
  0x55   :  { %s1014_s30 = sld [smem:[#allocation6 + $0x6]] }
  0x56   :  { %276 = vrot.lane.b32.xlu0 %v274_v43, %s779_s26  ;;  %v73_v43 = vstv %s938_s24  ;;  %s1016_s6 = sld [smem:[#allocation6 + $0x2]] }
  0x57   :  { %324 = vrot.lane.b32.xlu1 %v322_v44, %s780_s8  ;;  %v91_v44 = vadd.f32 %v90_v33, %v69_v35  ;;  %v77_v58 = vstv %s953_s1  ;;  %s1018_s7 = sld [smem:[#allocation6 + $0x7]] }
  0x58   :  { %s1022_s9 = sld [smem:[#allocation6 + $0x4]] }
  0x59   :  { %s1024_s3 = sld [smem:[#allocation6]] }
  0x5a   :  { %236 = vrot.lane.b32.xlu0 %v234_v47, %s778_s19  ;;  %s645_s19 = sld [smem:[#allocation2 + $0x3]] }
  0x5b   :  { %284 = vrot.lane.b32.xlu1 %v282_v48, %s779_s26  ;;  %v75_v48 = vstv %s940_s25 }
  0x5c   :  { %v103_v57 = vadd.f32 %v102_v45, %v75_v48 }
  0x5e   :  { %308 = vrot.lane.b32.xlu0 %v306_v51, %s780_s8  ;;  %v99_v51 = vadd.f32 %v98_v40, %v73_v43 }
  0x5f   :  { %332 = vrot.lane.b32.xlu1 %v330_v52, %s780_s8  ;;  %v109_v52 = vstv %s946_s2 }
  0x60   :  { %v93_v28 = vstv %s645_s19  ;;  %v110_v63 = vmul.f32 %v109_v52, %v828_v0 }
  0x61   :  { %v94_v36 = vmul.f32 %v93_v28, %v828_v0 }
  0x62   :  { %292 = vrot.lane.b32.xlu0 %v290_v55, %s779_s26 }
  0x63   :  { %340 = vrot.lane.b32.xlu1 %v338_v56, %s780_s8  ;;  %v95_v47 = vadd.f32 %v94_v36, %v71_v39 }
  0x66   :  { %300 = vrot.lane.b32.xlu0 %v298_v61, %s779_s26  ;;  %s943_s26 = sld [smem:[#allocation2 + $0x6]] }
  0x67   :  { %348 = vrot.lane.b32.xlu1 %v346_v62, %s780_s8 }
  0x6a   :  { %356 = vrot.lane.b32.xlu0 %v354_v2, %s780_s8 }
  0x6b   :  { %364 = vrot.lane.b32.xlu1 %v362_v3, %s780_s8  ;;  %s1020_s8 = sld [smem:[#allocation6 + $0x3]] }
  0x6c   :  { %v105_v49 = vstv %s943_s26 }
  0x6d   :  { %v106_v59 = vmul.f32 %v105_v49, %v828_v0 }
  0x6f   :  { %v107_v23 = vadd.f32 %v106_v59, %v77_v58 }
  0xa0   :  { %v125_v4 = vpop.permute.xlu0 %124 }
  0xa1   :  { %v898_v5 = vpop.permute.xlu1 %116  ;;  %v127_v46 = vadd.f32 %v125_v4, %v87_v34  ;;  %v79_v4 = vstv %s960_s27 }
  0xa2   :  { %v119_v54 = vadd.f32 %v898_v5, %v83_v42  ;;  %v111_v0 = vadd.f32 %v110_v63, %v79_v4  ;;  %v504_v63 = vstv %s1012_s29  ;;  %v524_v4 = vstv %s1016_s6 }
  0xa4   :  { %v900_v6 = vpop.permute.xlu0 %132 }
  0xa5   :  { %v902_v7 = vpop.permute.xlu1 %140  ;;  %v135_v56 = vadd.f32 %v900_v6, %v91_v44 }
  0xa6   :  { %v143_v60 = vadd.f32 %v902_v7, %v95_v47 }
  0xa8   :  { %v904_v8 = vpop.permute.xlu0 %188 }
  0xa9   :  { %v906_v9 = vpop.permute.xlu1 %148  ;;  %v191_v55 = vadd.f32 %v904_v8, %v127_v46 }
  0xaa   :  { %v151_v2 = vadd.f32 %v906_v9, %v99_v51 }
  0xac   :  { %v908_v10 = vpop.permute.xlu0 %196 }
  0xad   :  { %v910_v11 = vpop.permute.xlu1 %156  ;;  %v199_v3 = vadd.f32 %v908_v10, %v135_v56 }
  0xb0   :  { %v912_v12 = vpop.permute.xlu0 %180 }
  0xb1   :  { %v914_v13 = vpop.permute.xlu1 %204  ;;  %v183_v61 = vadd.f32 %v912_v12, %v119_v54 }
  0xb2   :  { %v207_v6 = vadd.f32 %v914_v13, %v143_v60 }
  0xb4   :  { %v916_v14 = vpop.permute.xlu0 %252 }
  0xb5   :  { %v918_v15 = vpop.permute.xlu1 %164  ;;  %v255_v62 = vadd.f32 %v916_v14, %v191_v55  ;;  %v159_v14 = vadd.f32 %v910_v11, %v103_v57 }
  0xb8   :  { %v922_v16 = vpop.permute.xlu0 %212 }
  0xb9   :  { %v924_v17 = vpop.permute.xlu1 %260  ;;  %v215_v7 = vadd.f32 %v922_v16, %v151_v2  ;;  %v167_v16 = vadd.f32 %v918_v15, %v107_v23 }
  0xba   :  { %v263_v12 = vadd.f32 %v924_v17, %v199_v3 }
  0xbc   :  { %v928_v18 = vpop.permute.xlu0 %172 }
  0xbd   :  { %v930_v19 = vpop.permute.xlu1 %220  ;;  %v175_v11 = vadd.f32 %v928_v18, %v111_v0 }
  0xc0   :  { %v245_v20 = vpop.permute.xlu0 %244 }
  0xc1   :  { %v269_v22 = vpop.permute.xlu1 %268  ;;  %v247_v8 = vadd.f32 %v245_v20, %v183_v61  ;;  %v223_v20 = vadd.f32 %v930_v19, %v159_v14 }
  0xc2   :  { %v271_v24 = vadd.f32 %v269_v22, %v207_v6  ;;  %v544_v6 = vstv %s1020_s8 }
  0xc4   :  { %v317_v26 = vpop.permute.xlu0 %316 }
  0xc5   :  { %v948_v29 = vpop.permute.xlu1 %228  ;;  %v980_v21 = vadd.f32 %v317_v26, %v255_v62  ;;  %v579_v62 = vstv %s1010_s28 }
  0xc6   :  { %v231_v32 = vadd.f32 %v948_v29, %v167_v16 }
  0xc7   :  { %v369_v26 = vrot.slane %v980_v21, 7 }
  0xc8   :  { %v277_v38 = vpop.permute.xlu0 %276 }
  0xc9   :  { %v325_v41 = vpop.permute.xlu1 %324  ;;  %v279_v10 = vadd.f32 %v277_v38, %v215_v7 }
  0xca   :  { %v987_v27 = vadd.f32 %v325_v41, %v263_v12 }
  0xcc   :  { %v237_v50 = vpop.permute.xlu0 %236  ;;  %v372_v33 = vrot.slane %v987_v27, 6 }
  0xcd   :  { %v285_v53 = vpop.permute.xlu1 %284  ;;  %v239_v34 = vadd.f32 %v237_v50, %v175_v11  ;;  %v57_v50 = vlaneseq }
  0xce   :  { %v287_v22 = vadd.f32 %v285_v53, %v223_v20 }
  0xcf   :  { %v58_v51 = vshrl.u32 %v57_v50, 7  ;;  %v60_v52 = vand.u32 127, %v57_v50 }
  0xd0   :  { %v309_v1 = vpop.permute.xlu0 %308 }
  0xd1   :  { %v333_v5 = vpop.permute.xlu1 %332  ;;  %v985_v25 = vadd.f32 %v309_v1, %v247_v8  ;;  %v575_v53 = vsub.s32 5, %v58_v51  ;;  %v500_v54 = vsub.s32 1, %v58_v51  ;;  %vm61_vm9 = vcmp.eq.s32.totalorder %v58_v51, 0 }
  0xd2   :  { %v991_v28 = vadd.f32 %v333_v5, %v271_v24  ;;  %vm62_vm10 = vcmp.lt.s32.totalorder %v60_v52, 4  ;;  %v594_v55 = vsub.s32 6, %v58_v51  ;;  %v520_v56 = vsub.s32 2, %v58_v51 }
  0xd3   :  { %v390_v30 = vsel %vm389_vm2, %v985_v25, %v369_v26  ;;  %v613_v57 = vsub.s32 7, %v58_v51  ;;  %v540_v58 = vsub.s32 3, %v58_v51  ;;  %v560_v59 = vsub.s32 4, %v58_v51  ;;  %vm1030_vm11 = vmand %vm61_vm9, %vm62_vm10 }
  0xd4   :  { %v293_v9 = vpop.permute.xlu0 %292  ;;  %v375_v35 = vrot.slane %v991_v28, 5  ;;  %v392_v15 = vsel %vm391_vm3, %v390_v30, %v372_v33  ;;  %v484_v60 = vsub.s32 0, %v58_v51  ;;  %v598_v1 = vstv %s1014_s30 }
  0xd5   :  { %v341_v13 = vpop.permute.xlu1 %340  ;;  %v295_v37 = vadd.f32 %v293_v9, %v231_v32  ;;  %v617_v5 = vstv %s1018_s7  ;;  %v564_v33 = vstv %s1022_s9 }
  0xd6   :  { %v994_v17 = vadd.f32 %v341_v13, %v279_v10  ;;  %v394_v43 = vsel %vm393_vm4, %v392_v15, %v375_v35 }
  0xd8   :  { %v301_v31 = vpop.permute.xlu0 %300  ;;  %v378_v38 = vrot.slane %v994_v17, 4 }
  0xd9   :  { %v349_v19 = vpop.permute.xlu1 %348  ;;  %v303_v18 = vadd.f32 %v301_v31, %v239_v34 }
  0xda   :  { %v1001_v36 = vadd.f32 %v349_v19, %v287_v22  ;;  %v396_v45 = vsel %vm395_vm0, %v394_v43, %v378_v38  ;;  %v488_v19 = vstv %s1024_s3 }
  0xdc   :  { %v381_v39 = vrot.slane %v1001_v36, 3  ;;  %v357_v40 = vpop.permute.xlu0 %356 }
  0xdd   :  { %v359_v41 = vadd.f32 %v357_v40, %v295_v37  ;;  %v365_v42 = vpop.permute.xlu1 %364 }
  0xde   :  { %v1005_v29 = vadd.f32 %v365_v42, %v303_v18  ;;  %v398_v47 = vsel %vm397_vm5, %v396_v45, %v381_v39  ;;  %vm516_vm5 = vcmask 523520  }
  0xdf   :  { %v384_v44 = vrot.slane %v359_v41, 2 }
  0xe0   :  { %v387_v46 = vrot.slane %v1005_v29, 1 }
  0xe1   :  { %v400_v48 = vsel %vm399_vm6, %v398_v47, %v384_v44  ;;  %vm536_vm6 = vcmask 785920  }
  0xe2   :  { %v402_v49 = vsel %vm401_vm7, %v400_v48, %v387_v46  ;;  %vm556_vm7 = vcmask 1048320  }
  0xe3   :  { %704 = vmatmul.mubr.msk.f32.vlgmr.msra.gmra.mxu0 %vm404_vm8, %v402_v49 }
 0x1a3   :  { %v477_v61 = vpop.f32.mrf.mxu0 }
 0x1a4   :  { %v481_v2 = vsel %vm404_vm8, %v477_v61, 0.0 }
 0x1a5   :  { %v705_v8 = vpop.f32.mrf.mxu0  ;;  %v576_v23 = vrot.slane %v481_v2, %v575_v53  ;;  %v501_v7 = vrot.slane %v481_v2, %v500_v54  ;;  %v595_v12 = vrot.slane %v481_v2, %v594_v55  ;;  %v521_v14 = vrot.slane %v481_v2, %v520_v56 }
 0x1a6   :  { %v614_v0 = vrot.slane %v481_v2, %v613_v57  ;;  %v541_v24 = vrot.slane %v481_v2, %v540_v58  ;;  %v561_v9 = vrot.slane %v481_v2, %v560_v59  ;;  %v485_v10 = vrot.slane %v481_v2, %v484_v60 }
 0x1a7   :  { %v577_v13 = vsel %vm1030_vm11, %v576_v23, %v1001_v36  ;;  %v502_v20 = vsel %vm1030_vm11, %v501_v7, %v980_v21  ;;  %v596_v26 = vsel %vm1030_vm11, %v595_v12, %v359_v41  ;;  %v522_v16 = vsel %vm1030_vm11, %v521_v14, %v987_v27 }
 0x1a8   :  { %v580_v11 = vadd.f32 %v579_v62, %v577_v13  ;;  %v505_v22 = vadd.f32 %v504_v63, %v502_v20  ;;  %v599_v30 = vadd.f32 %v598_v1, %v596_v26  ;;  %v1048_v31 = vadd.f32 %v524_v4, %v522_v16 }
 0x1a9   :  { %v615_v32 = vsel %vm1030_vm11, %v614_v0, %v1005_v29  ;;  %v542_v21 = vsel %vm1030_vm11, %v541_v24, %v991_v28  ;;  %v562_v27 = vsel %vm1030_vm11, %v561_v9, %v994_v17  ;;  %v486_v36 = vsel %vm1030_vm11, %v485_v10, %v985_v25 }
 0x1aa   :  { %v582_v34 = vmin.f32 %v580_v11, 0.0  ;;  %v507_v35 = vmin.f32 %v505_v22, 0.0  ;;  %v601_v15 = vmin.f32 %v599_v30, 0.0  ;;  %v527_v37 = vmin.f32 %v1048_v31, 0.0 }
 0x1ab   :  { %v618_v39 = vadd.f32 %v617_v5, %v615_v32  ;;  %v1065_v40 = vadd.f32 %v544_v6, %v542_v21  ;;  %v565_v42 = vadd.f32 %v564_v33, %v562_v27  ;;  %v489_v29 = vadd.f32 %v488_v19, %v486_v36 }
 0x1ac   :  { %v583_v38 = vmul.f32 1.442695, %v582_v34  ;;  %v508_v18 = vmul.f32 1.442695, %v507_v35  ;;  %v602_v28 = vmul.f32 1.442695, %v601_v15 }
 0x1ad   :  { %v528_v41 = vmul.f32 1.442695, %v527_v37  ;;  %v620_v43 = vmin.f32 %v618_v39, 0.0  ;;  %v547_v17 = vmin.f32 %v1065_v40, 0.0  ;;  %v567_v44 = vmin.f32 %v565_v42, 0.0 }
 0x1ae   :  { %718 = vpow2.f32 %v583_v38  ;;  %v491_v45 = vmin.f32 %v489_v29, 0.0  ;;  %vm581_vm12 = vcmp.gt.f32.partialorder %v580_v11, 0.0  ;;  %vm506_vm13 = vcmp.gt.f32.partialorder %v505_v22, 0.0 }
 0x1af   :  { %720 = vpow2.f32 %v508_v18  ;;  %v621_v25 = vmul.f32 1.442695, %v620_v43  ;;  %v548_v46 = vmul.f32 1.442695, %v547_v17  ;;  %v568_v47 = vmul.f32 1.442695, %v567_v44 }
 0x1b0   :  { %722 = vpow2.f32 %v602_v28  ;;  %v492_v48 = vmul.f32 1.442695, %v491_v45  ;;  %vm600_vm14 = vcmp.gt.f32.partialorder %v599_v30, 0.0  ;;  %vm526_vm0 = vcmp.gt.f32.partialorder %v1048_v31, 0.0 }
 0x1b1   :  { %724 = vpow2.f32 %v528_v41  ;;  %vm566_vm1 = vcmp.gt.f32.partialorder %v565_v42, 0.0  ;;  %vm490_vm2 = vcmp.gt.f32.partialorder %v489_v29, 0.0  ;;  %vm619_vm3 = vcmp.gt.f32.partialorder %v618_v39, 0.0 }
 0x1b2   :  { %726 = vpow2.f32 %v621_v25  ;;  %vm546_vm4 = vcmp.gt.f32.partialorder %v1065_v40, 0.0 }
 0x1b3   :  { %728 = vpow2.f32 %v548_v46 }
 0x1b4   :  { %730 = vpow2.f32 %v568_v47 }
 0x1b5   :  { %732 = vpow2.f32 %v492_v48 }
 0x1bb   :  { %v719_v49 = vpop.eup %718 }
 0x1bc   :  { %v721_v50 = vpop.eup %720  ;;  %v694_v51 = vadd.f32 -1.0, %v719_v49 }
 0x1bd   :  { %v723_v52 = vpop.eup %722  ;;  %v686_v53 = vadd.f32 -1.0, %v721_v50 }
 0x1be   :  { %v725_v54 = vpop.eup %724  ;;  %v586_v55 = vsel %vm581_vm12, %v580_v11, %v694_v51  ;;  %v696_v56 = vadd.f32 -1.0, %v723_v52 }
 0x1bf   :  { %v727_v57 = vpop.eup %726  ;;  %588 = vrot.lane.b32.xlu1 %v586_v55, %s783_s10  ;;  %v511_v58 = vsel %vm506_vm13, %v505_v22, %v686_v53  ;;  %v688_v59 = vadd.f32 -1.0, %v725_v54 }
 0x1c0   :  { %v729_v60 = vpop.eup %728  ;;  %513 = vrot.lane.b32.xlu0 %v511_v58, %s783_s10  ;;  %v605_v63 = vsel %vm600_vm14, %v599_v30, %v696_v56  ;;  %v698_v1 = vadd.f32 -1.0, %v727_v57 }
 0x1c1   :  { %v731_v61 = vpop.eup %730  ;;  %v531_v3 = vsel %vm526_vm0, %v1048_v31, %v688_v59  ;;  %v690_v4 = vadd.f32 -1.0, %v729_v60 }
 0x1c2   :  { %v733_v62 = vpop.eup %732  ;;  %v692_v2 = vadd.f32 -1.0, %v731_v61  ;;  %v624_v23 = vsel %vm619_vm3, %v618_v39, %v698_v1 }
 0x1c3   :  { %607 = vrot.lane.b32.xlu1 %v605_v63, %s784_s11  ;;  %v684_v5 = vadd.f32 -1.0, %v733_v62  ;;  %v551_v7 = vsel %vm546_vm4, %v1065_v40, %v690_v4 }
 0x1c4   :  { %533 = vrot.lane.b32.xlu0 %v531_v3, %s784_s11  ;;  %v571_v6 = vsel %vm566_vm1, %v565_v42, %v692_v2 }
 0x1c5   :  { %572 = vst.msk [vmem:[%s1103_s5 + $0x8] sm:$0xff] %vm496_vm15, %v571_v6  ;;  %v495_v8 = vsel %vm490_vm2, %v489_v29, %v684_v5 }
 0x1c6   :  { %497 = vst.msk [vmem:[%s1103_s5] sm:$0xff] %vm496_vm15, %v495_v8 }
 0x1c7   :  { %626 = vrot.lane.b32.xlu1 %v624_v23, %s785_s4 }
 0x1c8   :  { %553 = vrot.lane.b32.xlu0 %v551_v7, %s785_s4 }
 0x231   :  { %v589_v12 = vpop.permute.xlu1 %588 }
 0x232   :  { %591 = vst.msk [vmem:[%s1103_s5 + $0x8] sm:$0xff] %vm516_vm5, %v589_v12  ;;  %v514_v14 = vpop.permute.xlu0 %513 }
 0x233   :  { %517 = vst.msk [vmem:[%s1103_s5] sm:$0xff] %vm516_vm5, %v514_v14 }
 0x235   :  { %v608_v0 = vpop.permute.xlu1 %607 }
 0x236   :  { %610 = vst.msk [vmem:[%s1103_s5 + $0x8] sm:$0xff] %vm536_vm6, %v608_v0  ;;  %v534_v24 = vpop.permute.xlu0 %533 }
 0x237   :  { %537 = vst.msk [vmem:[%s1103_s5] sm:$0xff] %vm536_vm6, %v534_v24 }
 0x239   :  { %v627_v9 = vpop.permute.xlu1 %626 }
 0x23a   :  { %629 = vst.msk [vmem:[%s1103_s5 + $0x8] sm:$0xff] %vm556_vm7, %v627_v9  ;;  %v554_v10 = vpop.permute.xlu0 %553 }
 0x23b   :  { %557 = vst.msk [vmem:[%s1103_s5] sm:$0xff] %vm556_vm7, %v554_v10 }
 0x23c   :  { %634 = vsyncpa [#allocation3], 1 }
 0x23d   :  { %635 = vsyncpa [#allocation5], 1 }

// kernel: shallow_gnn_forward.3
= control target key start
LH: loop header
LB: loop body
LE: loop exit
PB: predicated region body
PF: predicated region fallthrough
CT: control target
= control target key end

     0   :  { %v2919_v30 = vmov 1983009808   ;;  %v167_v32 = vlaneseq  ;;  %s4468_s0 = inlined_call_operand.vmem [shape: f32[2,1024], index: 0, kind: input, shape index: {}]   ;;  %s4469_s1 = inlined_call_operand.vmem [shape: f32[1,4], index: 1, kind: input, shape index: {}]   ;;  %s4470_s2 = inlined_call_operand.vmem [shape: f32[1,4], index: 2, kind: input, shape index: {}]   ;;  %s4471_s3 = inlined_call_operand.vmem [shape: f32[1024,4], index: 3, kind: input, shape index: {}]   ;;  %s4472_s4 = inlined_call_operand.vmem [shape: f32[4,1024], index: 4, kind: input, shape index: {}]   ;;  %s4473_s5 = inlined_call_operand.vmem [shape: f32[1024,128], index: 5, kind: input, shape index: {}]   ;;  %s4474_s6 = inlined_call_operand.vmem [shape: f32[1,128], index: 6, kind: input, shape index: {}]   ;;  %s4475_s7 = inlined_call_operand.hbm [shape: f32[2,128], index: 7, kind: output, shape index: {}]  }
   0x1   :  { %v2965_v0 = vld [vmem:[%s4471_s3 + $0xf8] sm:$0xff]  ;;  %v2987_v4 = vld [vmem:[%s4471_s3 + $0xf0] sm:$0xff]  ;;  %v3009_v8 = vld [vmem:[%s4471_s3 + $0xe8] sm:$0xff]  ;;  %v165_v31 = vunpack.c.l.s4 %v2919_v30 }
   0x2   :  { %v2970_v1 = vld [vmem:[%s4471_s3 + $0x1f8] sm:$0xff]  ;;  %2466 = vmatprep.subr.mxu0 %v2965_v0  ;;  %v2992_v5 = vld [vmem:[%s4471_s3 + $0x1f0] sm:$0xff]  ;;  %v3016_v9 = vld [vmem:[%s4471_s3 + $0x1e8] sm:$0xff]  ;;  %v3184_v42 = vshrl.u32 %v167_v32, 7 }
   0x3   :  { %v2975_v2 = vld [vmem:[%s4471_s3 + $0x78] sm:$0xff]  ;;  %2501 = vmatprep.subr.mxu1 %v2970_v1  ;;  %v2999_v6 = vld [vmem:[%s4471_s3 + $0x70] sm:$0xff]  ;;  %v3021_v10 = vld [vmem:[%s4471_s3 + $0x68] sm:$0xff]  ;;  %v166_v41 = vunpack.c.0.s8 %v165_v31 }
   0x4   :  { %v2982_v3 = vld [vmem:[%s4471_s3 + $0x178] sm:$0xff]  ;;  %2467 = vmatpush3.msra.mxu0 %v2975_v2  ;;  %v3004_v7 = vld [vmem:[%s4471_s3 + $0x170] sm:$0xff]  ;;  %v3026_v11 = vld [vmem:[%s4471_s3 + $0x168] sm:$0xff]  ;;  %4583 = vst [vmem:[#allocation5_spill] sm:$0xff] %v3184_v42 }
   0x5   :  { %2502 = vmatpush3.msra.mxu1 %v2982_v3  ;;  %2468 = vmatprep.subr.mxu0 %v2987_v4  ;;  %v3033_v12 = vld [vmem:[%s4471_s3 + $0xe0] sm:$0xff]  ;;  %v3057_v16 = vld [vmem:[%s4471_s3 + $0xd8] sm:$0xff]  ;;  %v3081_v20 = vld [vmem:[%s4471_s3 + $0xd0] sm:$0xff]  ;;  %v3235_v51 = vsub.s32 %v166_v41, %v3184_v42 }
   0x6   :  { %2503 = vmatprep.subr.mxu1 %v2992_v5  ;;  %2469 = vmatpush3.msra.mxu0 %v2999_v6  ;;  %v3038_v13 = vld [vmem:[%s4471_s3 + $0x1e0] sm:$0xff]  ;;  %v3062_v17 = vld [vmem:[%s4471_s3 + $0x1d8] sm:$0xff]  ;;  %v3086_v21 = vld [vmem:[%s4471_s3 + $0x1d0] sm:$0xff] }
   0x7   :  { %2504 = vmatpush3.msra.mxu1 %v3004_v7  ;;  %2470 = vmatprep.subr.mxu0 %v3009_v8  ;;  %v3045_v14 = vld [vmem:[%s4471_s3 + $0x60] sm:$0xff]  ;;  %v3069_v18 = vld [vmem:[%s4471_s3 + $0x58] sm:$0xff]  ;;  %v3093_v22 = vld [vmem:[%s4471_s3 + $0x50] sm:$0xff]  ;;  %4590 = vst [vmem:[#allocation12_spill] sm:$0xff] %v3235_v51 }
   0x8   :  { %2505 = vmatprep.subr.mxu1 %v3016_v9  ;;  %v3050_v15 = vld [vmem:[%s4471_s3 + $0x160] sm:$0xff]  ;;  %2471 = vmatpush3.msra.mxu0 %v3021_v10  ;;  %v3074_v19 = vld [vmem:[%s4471_s3 + $0x158] sm:$0xff]  ;;  %v3098_v23 = vld [vmem:[%s4471_s3 + $0x150] sm:$0xff] }
   0x9   :  { %2506 = vmatpush3.msra.mxu1 %v3026_v11  ;;  %2472 = vmatprep.subr.mxu0 %v3033_v12  ;;  %v3105_v24 = vld [vmem:[%s4471_s3 + $0xc8] sm:$0xff]  ;;  %v3129_v28 = vld [vmem:[%s4471_s3 + $0xc0] sm:$0xff]  ;;  %v3153_v35 = vld [vmem:[%s4471_s3 + $0xb8] sm:$0xff] }
   0xa   :  { %2507 = vmatprep.subr.mxu1 %v3038_v13  ;;  %2473 = vmatpush3.msra.mxu0 %v3045_v14  ;;  %v3110_v25 = vld [vmem:[%s4471_s3 + $0x1c8] sm:$0xff]  ;;  %v3134_v29 = vld [vmem:[%s4471_s3 + $0x1c0] sm:$0xff]  ;;  %v3158_v36 = vld [vmem:[%s4471_s3 + $0x1b8] sm:$0xff] }
   0xb   :  { %2508 = vmatpush3.msra.mxu1 %v3050_v15  ;;  %2474 = vmatprep.subr.mxu0 %v3057_v16  ;;  %v3117_v26 = vld [vmem:[%s4471_s3 + $0x48] sm:$0xff]  ;;  %v3141_v33 = vld [vmem:[%s4471_s3 + $0x40] sm:$0xff]  ;;  %v3165_v37 = vld [vmem:[%s4471_s3 + $0x38] sm:$0xff] }
   0xc   :  { %2509 = vmatprep.subr.mxu1 %v3062_v17  ;;  %2475 = vmatpush3.msra.mxu0 %v3069_v18  ;;  %v3122_v27 = vld [vmem:[%s4471_s3 + $0x148] sm:$0xff]  ;;  %v3146_v34 = vld [vmem:[%s4471_s3 + $0x140] sm:$0xff]  ;;  %v3170_v38 = vld [vmem:[%s4471_s3 + $0x138] sm:$0xff] }
   0xd   :  { %2510 = vmatpush3.msra.mxu1 %v3074_v19  ;;  %2476 = vmatprep.subr.mxu0 %v3081_v20  ;;  %v3177_v39 = vld [vmem:[%s4471_s3 + $0xb0] sm:$0xff]  ;;  %v3203_v45 = vld [vmem:[%s4471_s3 + $0xa8] sm:$0xff]  ;;  %v3227_v49 = vld [vmem:[%s4471_s3 + $0xa0] sm:$0xff] }
   0xe   :  { %2511 = vmatprep.subr.mxu1 %v3086_v21  ;;  %2477 = vmatpush3.msra.mxu0 %v3093_v22  ;;  %v3182_v40 = vld [vmem:[%s4471_s3 + $0x1b0] sm:$0xff]  ;;  %4584 = vst [vmem:[#allocation6_spill] sm:$0xff] %v3203_v45  ;;  %v3208_v46 = vld [vmem:[%s4471_s3 + $0x1a8] sm:$0xff]  ;;  %4588 = vst [vmem:[#allocation10_spill] sm:$0xff] %v3227_v49 }
   0xf   :  { %2512 = vmatpush3.msra.mxu1 %v3098_v23  ;;  %2478 = vmatprep.subr.mxu0 %v3105_v24  ;;  %v3191_v43 = vld [vmem:[%s4471_s3 + $0x30] sm:$0xff]  ;;  %4585 = vst [vmem:[#allocation7_spill] sm:$0xff] %v3208_v46  ;;  %v3215_v47 = vld [vmem:[%s4471_s3 + $0x28] sm:$0xff]  ;;  %v3232_v50 = vld [vmem:[%s4471_s3 + $0x1a0] sm:$0xff] }
  0x10   :  { %2513 = vmatprep.subr.mxu1 %v3110_v25  ;;  %2479 = vmatpush3.msra.mxu0 %v3117_v26  ;;  %v3196_v44 = vld [vmem:[%s4471_s3 + $0x130] sm:$0xff]  ;;  %4586 = vst [vmem:[#allocation8_spill] sm:$0xff] %v3215_v47  ;;  %v3220_v48 = vld [vmem:[%s4471_s3 + $0x128] sm:$0xff]  ;;  %4589 = vst [vmem:[#allocation11_spill] sm:$0xff] %v3232_v50 }
  0x11   :  { %2514 = vmatpush3.msra.mxu1 %v3122_v27  ;;  %2480 = vmatprep.subr.mxu0 %v3129_v28  ;;  %4587 = vst [vmem:[#allocation9_spill] sm:$0xff] %v3220_v48  ;;  %v3242_v52 = vld [vmem:[%s4471_s3 + $0x20] sm:$0xff]  ;;  %v3259_v55 = vld [vmem:[%s4471_s3 + $0x98] sm:$0xff]  ;;  %v3285_v60 = vld [vmem:[%s4471_s3 + $0x90] sm:$0xff] }
  0x12   :  { %2515 = vmatprep.subr.mxu1 %v3134_v29  ;;  %2481 = vmatpush3.msra.mxu0 %v3141_v33  ;;  %4591 = vst [vmem:[#allocation13_spill] sm:$0xff] %v3242_v52  ;;  %v3247_v53 = vld [vmem:[%s4471_s3 + $0x120] sm:$0xff]  ;;  %4594 = vst [vmem:[#allocation16_spill] sm:$0xff] %v3259_v55  ;;  %v3264_v56 = vld [vmem:[%s4471_s3 + $0x198] sm:$0xff] }
  0x13   :  { %2516 = vmatpush3.msra.mxu1 %v3146_v34  ;;  %2482 = vmatprep.subr.mxu0 %v3153_v35  ;;  %4592 = vst [vmem:[#allocation14_spill] sm:$0xff] %v3247_v53  ;;  %v3252_v54 = vld [vmem:[%s4468_s0] sm:$0xff]  ;;  %4595 = vst [vmem:[#allocation17_spill] sm:$0xff] %v3264_v56  ;;  %v3273_v58 = vld [vmem:[%s4471_s3 + $0x18] sm:$0xff] }
  0x14   :  { %2517 = vmatprep.subr.mxu1 %v3158_v36  ;;  %2483 = vmatpush3.msra.mxu0 %v3165_v37  ;;  %4593 = vst [vmem:[#allocation15_spill] sm:$0xff] %v3252_v54  ;;  %v163_v57 = vcombine.high %v3252_v54, %v3252_v54  ;;  %4596 = vst [vmem:[#allocation18_spill] sm:$0xff] %v3273_v58  ;;  %v3278_v59 = vld [vmem:[%s4471_s3 + $0x118] sm:$0xff]  ;;  %v3290_v61 = vld [vmem:[%s4471_s3 + $0x190] sm:$0xff]  ;;  %v170_v62 = vrot.slane %v3252_v54, %v3235_v51 }
  0x15   :  { %2518 = vmatpush3.msra.mxu1 %v3170_v38  ;;  %2484 = vmatprep.subr.mxu0 %v3177_v39  ;;  %4597 = vst [vmem:[#allocation19_spill] sm:$0xff] %v3278_v59  ;;  %4598 = vst [vmem:[#allocation20_spill] sm:$0xff] %v3285_v60  ;;  %v3299_v63 = vld [vmem:[%s4471_s3 + $0x10] sm:$0xff]  ;;  %v3312_v32 = vld [vmem:[%s4471_s3 + $0x88] sm:$0xff] }
  0x16   :  { %2519 = vmatprep.subr.mxu1 %v3182_v40  ;;  %2485 = vmatpush3.msra.mxu0 %v3191_v43  ;;  %4599 = vst [vmem:[#allocation21_spill] sm:$0xff] %v3290_v61  ;;  %4600 = vst [vmem:[#allocation22_spill] sm:$0xff] %v3299_v63  ;;  %v3304_v30 = vld [vmem:[%s4471_s3 + $0x110] sm:$0xff]  ;;  %v177_v31 = vrot.slane %v163_v57, %v3235_v51  ;;  %v3317_v41 = vld [vmem:[%s4471_s3 + $0x188] sm:$0xff] }
  0x17   :  { %2520 = vmatpush3.msra.mxu1 %v3196_v44  ;;  %2486 = vmatprep.subr.mxu0 %v3203_v45  ;;  %4601 = vst [vmem:[#allocation23_spill] sm:$0xff] %v3304_v30  ;;  %4602 = vst [vmem:[#allocation24_spill] sm:$0xff] %v3312_v32  ;;  %v3324_v57 = vld [vmem:[%s4471_s3 + $0x8] sm:$0xff]  ;;  %v3336_v42 = vld [vmem:[%s4471_s3 + $0x80] sm:$0xff] }
  0x18   :  { %2521 = vmatprep.subr.mxu1 %v3208_v46  ;;  %2487 = vmatpush3.msra.mxu0 %v3215_v47  ;;  %4603 = vst [vmem:[#allocation25_spill] sm:$0xff] %v3317_v41  ;;  %4604 = vst [vmem:[#allocation26_spill] sm:$0xff] %v3324_v57  ;;  %v3329_v54 = vld [vmem:[%s4471_s3 + $0x108] sm:$0xff] }
  0x19   :  { %2522 = vmatpush3.msra.mxu1 %v3220_v48  ;;  %2488 = vmatprep.subr.mxu0 %v3227_v49  ;;  %4605 = vst [vmem:[#allocation27_spill] sm:$0xff] %v3329_v54  ;;  %4606 = vst [vmem:[#allocation28_spill] sm:$0xff] %v3336_v42 }
  0x1a   :  { %2523 = vmatprep.subr.mxu1 %v3232_v50  ;;  %2489 = vmatpush3.msra.mxu0 %v3242_v52 }
  0x1b   :  { %2524 = vmatpush3.msra.mxu1 %v3247_v53  ;;  %2490 = vmatprep.subr.mxu0 %v3259_v55 }
  0x1c   :  { %2525 = vmatprep.subr.mxu1 %v3264_v56  ;;  %2491 = vmatpush3.msra.mxu0 %v3273_v58 }
  0x1d   :  { %2526 = vmatpush3.msra.mxu1 %v3278_v59  ;;  %2492 = vmatprep.subr.mxu0 %v3285_v60  ;;  %v178_v60 = vcombine.high %v170_v62, %v170_v62  ;;  %v3355_v59 = vld [vmem:[%s4471_s3 + $0x100] sm:$0xff] }
  0x1e   :  { %2527 = vmatprep.subr.mxu1 %v3290_v61  ;;  %2493 = vmatpush3.msra.mxu0 %v3299_v63  ;;  %v3341_v61 = vld [vmem:[%s4471_s3 + $0x180] sm:$0xff]  ;;  %4609 = vst [vmem:[#allocation31_spill] sm:$0xff] %v3355_v59 }
  0x1f   :  { %2528 = vmatpush3.msra.mxu1 %v3304_v30  ;;  %4607 = vst [vmem:[#allocation29_spill] sm:$0xff] %v3341_v61  ;;  %2494 = vmatprep.subr.mxu0 %v3312_v32  ;;  %v3348_v63 = vld [vmem:[%s4471_s3] sm:$0xff]  ;;  %v179_v30 = vcombine.high %v177_v31, %v177_v31 }
  0x20   :  { %2529 = vmatprep.subr.mxu1 %v3317_v41  ;;  %4608 = vst [vmem:[#allocation30_spill] sm:$0xff] %v3348_v63  ;;  %2495 = vmatpush3.msra.mxu0 %v3324_v57  ;;  %v3363_v41 = vld [vmem:[%s4471_s3 + $0x2f8] sm:$0xff] }
  0x21   :  { %2530 = vmatpush3.msra.mxu1 %v3329_v54  ;;  %2496 = vmatprep.subr.mxu0 %v3336_v42  ;;  %4610 = vst [vmem:[#allocation32_spill] sm:$0xff] %v3363_v41  ;;  %v3368_v54 = vld [vmem:[%s4471_s3 + $0x3f8] sm:$0xff] }
  0x22   :  { %2531 = vmatprep.subr.mxu1 %v3341_v61  ;;  %2497 = vmatpush3.msra.mxu0 %v3348_v63  ;;  %4611 = vst [vmem:[#allocation33_spill] sm:$0xff] %v3368_v54  ;;  %v3374_v61 = vld [vmem:[%s4471_s3 + $0x278] sm:$0xff]  ;;  %v3384_v63 = vld [vmem:[%s4471_s3 + $0x2f0] sm:$0xff] }
  0x23   :  { %269 = vmatprep.mubr.f32.mxu0 %v178_v60  ;;  %2532 = vmatpush3.msra.mxu1 %v3355_v59  ;;  %4612 = vst [vmem:[#allocation34_spill] sm:$0xff] %v3374_v61  ;;  %v3379_v60 = vld [vmem:[%s4471_s3 + $0x378] sm:$0xff]  ;;  %4614 = vst [vmem:[#allocation36_spill] sm:$0xff] %v3384_v63  ;;  %v3396_v59 = vld [vmem:[%s4471_s3 + $0x270] sm:$0xff] }
  0x24   :  { %339 = vmatprep.mubr.f32.mxu1 %v179_v30  ;;  %4613 = vst [vmem:[#allocation35_spill] sm:$0xff] %v3379_v60  ;;  %270 = vmatmul.mubr.f32.vlgmr.msra.gmra.mxu0 %v170_v62  ;;  %v3389_v30 = vld [vmem:[%s4471_s3 + $0x3f0] sm:$0xff]  ;;  %4616 = vst [vmem:[#allocation38_spill] sm:$0xff] %v3396_v59 }
  0x25   :  { %340 = vmatmul.mubr.f32.vlgmr.msra.gmra.mxu1 %v177_v31  ;;  %4615 = vst [vmem:[#allocation37_spill] sm:$0xff] %v3389_v30  ;;  %2536 = vmatprep.subr.mxu0 %v3363_v41  ;;  %v3401_v62 = vld [vmem:[%s4471_s3 + $0x370] sm:$0xff]  ;;  %v3408_v31 = vld [vmem:[%s4471_s3 + $0x2e8] sm:$0xff] }
  0x26   :  { %2571 = vmatprep.subr.mxu1 %v3368_v54  ;;  %4617 = vst [vmem:[#allocation39_spill] sm:$0xff] %v3401_v62  ;;  %2537 = vmatpush3.msra.mxu0 %v3374_v61  ;;  %4618 = vst [vmem:[#allocation40_spill] sm:$0xff] %v3408_v31  ;;  %v3413_v54 = vld [vmem:[%s4471_s3 + $0x3e8] sm:$0xff] }
  0x27   :  { %2572 = vmatpush3.msra.mxu1 %v3379_v60  ;;  %4619 = vst [vmem:[#allocation41_spill] sm:$0xff] %v3413_v54  ;;  %2538 = vmatprep.subr.mxu0 %v3384_v63  ;;  %v3420_v61 = vld [vmem:[%s4471_s3 + $0x268] sm:$0xff]  ;;  %v3432_v63 = vld [vmem:[%s4471_s3 + $0x2e0] sm:$0xff] }
  0x28   :  { %2573 = vmatprep.subr.mxu1 %v3389_v30  ;;  %4620 = vst [vmem:[#allocation42_spill] sm:$0xff] %v3420_v61  ;;  %v3425_v60 = vld [vmem:[%s4471_s3 + $0x368] sm:$0xff]  ;;  %2539 = vmatpush3.msra.mxu0 %v3396_v59  ;;  %4622 = vst [vmem:[#allocation44_spill] sm:$0xff] %v3432_v63  ;;  %v3437_v30 = vld [vmem:[%s4471_s3 + $0x3e0] sm:$0xff] }
  0x29   :  { %4621 = vst [vmem:[#allocation43_spill] sm:$0xff] %v3425_v60  ;;  %2574 = vmatpush3.msra.mxu1 %v3401_v62  ;;  %4623 = vst [vmem:[#allocation45_spill] sm:$0xff] %v3437_v30  ;;  %2540 = vmatprep.subr.mxu0 %v3408_v31  ;;  %v3444_v59 = vld [vmem:[%s4471_s3 + $0x260] sm:$0xff]  ;;  %v3456_v31 = vld [vmem:[%s4471_s3 + $0x2d8] sm:$0xff] }
  0x2a   :  { %2575 = vmatprep.subr.mxu1 %v3413_v54  ;;  %4624 = vst [vmem:[#allocation46_spill] sm:$0xff] %v3444_v59  ;;  %v3449_v62 = vld [vmem:[%s4471_s3 + $0x360] sm:$0xff]  ;;  %2541 = vmatpush3.msra.mxu0 %v3420_v61  ;;  %4626 = vst [vmem:[#allocation48_spill] sm:$0xff] %v3456_v31  ;;  %v3461_v54 = vld [vmem:[%s4471_s3 + $0x3d8] sm:$0xff] }
  0x2b   :  { %4625 = vst [vmem:[#allocation47_spill] sm:$0xff] %v3449_v62  ;;  %2576 = vmatpush3.msra.mxu1 %v3425_v60  ;;  %4627 = vst [vmem:[#allocation49_spill] sm:$0xff] %v3461_v54  ;;  %2542 = vmatprep.subr.mxu0 %v3432_v63  ;;  %v3468_v61 = vld [vmem:[%s4471_s3 + $0x258] sm:$0xff]  ;;  %v3480_v63 = vld [vmem:[%s4471_s3 + $0x2d0] sm:$0xff] }
  0x2c   :  { %2577 = vmatprep.subr.mxu1 %v3437_v30  ;;  %4628 = vst [vmem:[#allocation50_spill] sm:$0xff] %v3468_v61  ;;  %v3473_v60 = vld [vmem:[%s4471_s3 + $0x358] sm:$0xff]  ;;  %2543 = vmatpush3.msra.mxu0 %v3444_v59  ;;  %4630 = vst [vmem:[#allocation52_spill] sm:$0xff] %v3480_v63  ;;  %v3485_v30 = vld [vmem:[%s4471_s3 + $0x3d0] sm:$0xff] }
  0x2d   :  { %4629 = vst [vmem:[#allocation51_spill] sm:$0xff] %v3473_v60  ;;  %2578 = vmatpush3.msra.mxu1 %v3449_v62  ;;  %4631 = vst [vmem:[#allocation53_spill] sm:$0xff] %v3485_v30  ;;  %2544 = vmatprep.subr.mxu0 %v3456_v31  ;;  %v3492_v59 = vld [vmem:[%s4471_s3 + $0x250] sm:$0xff] }
  0x2e   :  { %2579 = vmatprep.subr.mxu1 %v3461_v54  ;;  %4632 = vst [vmem:[#allocation54_spill] sm:$0xff] %v3492_v59  ;;  %v3497_v62 = vld [vmem:[%s4471_s3 + $0x350] sm:$0xff] }
  0x2f   :  { %4633 = vst [vmem:[#allocation55_spill] sm:$0xff] %v3497_v62 }
  0x30   :  { %12 = vsyncpa [#allocation3], 0  ;;  %2545 = vmatpush3.msra.mxu0 %v3468_v61  ;;  %2580 = vmatpush3.msra.mxu1 %v3473_v60  ;;  %v3504_v31 = vld [vmem:[%s4471_s3 + $0x2c8] sm:$0xff]  ;;  %vm507_vm0 = vcmask 1043456   ;;  %vm485_vm1 = vcmask 25600   ;;  %vm503_vm2 = vcmask 31744  }
  0x31   :  { %4634 = vst [vmem:[#allocation56_spill] sm:$0xff] %v3504_v31  ;;  %v3509_v54 = vld [vmem:[%s4471_s3 + $0x3c8] sm:$0xff]  ;;  %2546 = vmatprep.subr.mxu0 %v3480_v63  ;;  %2581 = vmatprep.subr.mxu1 %v3485_v30  ;;  %v3528_v63 = vld [vmem:[%s4471_s3 + $0x2c0] sm:$0xff] }
  0x32   :  { %4635 = vst [vmem:[#allocation57_spill] sm:$0xff] %v3509_v54  ;;  %v3516_v61 = vld [vmem:[%s4471_s3 + $0x248] sm:$0xff]  ;;  %2547 = vmatpush3.msra.mxu0 %v3492_v59  ;;  %2582 = vmatpush3.msra.mxu1 %v3497_v62  ;;  %4638 = vst [vmem:[#allocation60_spill] sm:$0xff] %v3528_v63  ;;  %v3533_v30 = vld [vmem:[%s4471_s3 + $0x3c0] sm:$0xff] }
  0x33   :  { %4636 = vst [vmem:[#allocation58_spill] sm:$0xff] %v3516_v61  ;;  %v3521_v60 = vld [vmem:[%s4471_s3 + $0x348] sm:$0xff]  ;;  %4639 = vst [vmem:[#allocation61_spill] sm:$0xff] %v3533_v30  ;;  %2548 = vmatprep.subr.mxu0 %v3504_v31  ;;  %2583 = vmatprep.subr.mxu1 %v3509_v54  ;;  %v3540_v59 = vld [vmem:[%s4471_s3 + $0x240] sm:$0xff] }
  0x34   :  { %4637 = vst [vmem:[#allocation59_spill] sm:$0xff] %v3521_v60  ;;  %4640 = vst [vmem:[#allocation62_spill] sm:$0xff] %v3540_v59  ;;  %v3545_v62 = vld [vmem:[%s4471_s3 + $0x340] sm:$0xff]  ;;  %2549 = vmatpush3.msra.mxu0 %v3516_v61  ;;  %2584 = vmatpush3.msra.mxu1 %v3521_v60  ;;  %v3552_v31 = vld [vmem:[%s4471_s3 + $0x2b8] sm:$0xff] }
  0x35   :  { %4641 = vst [vmem:[#allocation63_spill] sm:$0xff] %v3545_v62  ;;  %4642 = vst [vmem:[#allocation64_spill] sm:$0xff] %v3552_v31  ;;  %v3557_v54 = vld [vmem:[%s4471_s3 + $0x3b8] sm:$0xff]  ;;  %2550 = vmatprep.subr.mxu0 %v3528_v63  ;;  %2585 = vmatprep.subr.mxu1 %v3533_v30  ;;  %v3576_v63 = vld [vmem:[%s4471_s3 + $0x2b0] sm:$0xff] }
  0x36   :  { %4643 = vst [vmem:[#allocation65_spill] sm:$0xff] %v3557_v54  ;;  %v3564_v61 = vld [vmem:[%s4471_s3 + $0x238] sm:$0xff]  ;;  %2551 = vmatpush3.msra.mxu0 %v3540_v59  ;;  %2586 = vmatpush3.msra.mxu1 %v3545_v62  ;;  %4646 = vst [vmem:[#allocation68_spill] sm:$0xff] %v3576_v63  ;;  %v3581_v30 = vld [vmem:[%s4471_s3 + $0x3b0] sm:$0xff] }
  0x37   :  { %4644 = vst [vmem:[#allocation66_spill] sm:$0xff] %v3564_v61  ;;  %v3569_v60 = vld [vmem:[%s4471_s3 + $0x338] sm:$0xff]  ;;  %4647 = vst [vmem:[#allocation69_spill] sm:$0xff] %v3581_v30  ;;  %2552 = vmatprep.subr.mxu0 %v3552_v31  ;;  %2587 = vmatprep.subr.mxu1 %v3557_v54  ;;  %v3588_v59 = vld [vmem:[%s4471_s3 + $0x230] sm:$0xff] }
  0x38   :  { %4645 = vst [vmem:[#allocation67_spill] sm:$0xff] %v3569_v60  ;;  %4648 = vst [vmem:[#allocation70_spill] sm:$0xff] %v3588_v59  ;;  %v3593_v62 = vld [vmem:[%s4471_s3 + $0x330] sm:$0xff]  ;;  %2553 = vmatpush3.msra.mxu0 %v3564_v61  ;;  %2588 = vmatpush3.msra.mxu1 %v3569_v60  ;;  %v3600_v31 = vld [vmem:[%s4471_s3 + $0x2a8] sm:$0xff] }
  0x39   :  { %4649 = vst [vmem:[#allocation71_spill] sm:$0xff] %v3593_v62  ;;  %4650 = vst [vmem:[#allocation72_spill] sm:$0xff] %v3600_v31  ;;  %v3605_v54 = vld [vmem:[%s4471_s3 + $0x3a8] sm:$0xff]  ;;  %2554 = vmatprep.subr.mxu0 %v3576_v63  ;;  %2589 = vmatprep.subr.mxu1 %v3581_v30  ;;  %v3629_v63 = vld [vmem:[%s4471_s3 + $0x2a0] sm:$0xff] }
  0x3a   :  { %4651 = vst [vmem:[#allocation73_spill] sm:$0xff] %v3605_v54  ;;  %v3610_v41 = vld [vmem:[%s4468_s0 + $0x8] sm:$0xff]  ;;  %2555 = vmatpush3.msra.mxu0 %v3588_v59  ;;  %2590 = vmatpush3.msra.mxu1 %v3593_v62  ;;  %4655 = vst [vmem:[#allocation77_spill] sm:$0xff] %v3629_v63  ;;  %v3634_v30 = vld [vmem:[%s4471_s3 + $0x3a0] sm:$0xff] }
  0x3b   :  { %4652 = vst [vmem:[#allocation74_spill] sm:$0xff] %v3610_v41  ;;  %v3617_v60 = vld [vmem:[%s4471_s3 + $0x228] sm:$0xff]  ;;  %4656 = vst [vmem:[#allocation78_spill] sm:$0xff] %v3634_v30  ;;  %2556 = vmatprep.subr.mxu0 %v3600_v31  ;;  %2591 = vmatprep.subr.mxu1 %v3605_v54  ;;  %v3641_v59 = vld [vmem:[%s4471_s3 + $0x220] sm:$0xff]  ;;  %v180_v42 = vcombine.high %v3610_v41, %v3610_v41  ;;  %v187_v57 = vrot.slane %v3610_v41, %v3235_v51 }
  0x3c   :  { %4653 = vst [vmem:[#allocation75_spill] sm:$0xff] %v3617_v60  ;;  %v3622_v61 = vld [vmem:[%s4471_s3 + $0x328] sm:$0xff]  ;;  %4657 = vst [vmem:[#allocation79_spill] sm:$0xff] %v3641_v59  ;;  %v3646_v62 = vld [vmem:[%s4471_s3 + $0x320] sm:$0xff]  ;;  %2557 = vmatpush3.msra.mxu0 %v3617_v60 }
  0x3d   :  { %4654 = vst [vmem:[#allocation76_spill] sm:$0xff] %v3622_v61  ;;  %4658 = vst [vmem:[#allocation80_spill] sm:$0xff] %v3646_v62  ;;  %2592 = vmatpush3.msra.mxu1 %v3622_v61  ;;  %v3655_v54 = vld [vmem:[%s4471_s3 + $0x298] sm:$0xff]  ;;  %2558 = vmatprep.subr.mxu0 %v3629_v63  ;;  %v3679_v63 = vld [vmem:[%s4471_s3 + $0x290] sm:$0xff]  ;;  %v194_v32 = vrot.slane %v180_v42, %v3235_v51 }
  0x3e   :  { %4659 = vst [vmem:[#allocation81_spill] sm:$0xff] %v3655_v54  ;;  %v3660_v31 = vld [vmem:[%s4471_s3 + $0x398] sm:$0xff]  ;;  %2593 = vmatprep.subr.mxu1 %v3634_v30  ;;  %2559 = vmatpush3.msra.mxu0 %v3641_v59  ;;  %4663 = vst [vmem:[#allocation85_spill] sm:$0xff] %v3679_v63  ;;  %v3684_v30 = vld [vmem:[%s4471_s3 + $0x390] sm:$0xff] }
  0x3f   :  { %4660 = vst [vmem:[#allocation82_spill] sm:$0xff] %v3660_v31  ;;  %v3667_v60 = vld [vmem:[%s4471_s3 + $0x218] sm:$0xff]  ;;  %2594 = vmatpush3.msra.mxu1 %v3646_v62  ;;  %4664 = vst [vmem:[#allocation86_spill] sm:$0xff] %v3684_v30  ;;  %2560 = vmatprep.subr.mxu0 %v3655_v54  ;;  %v3693_v62 = vld [vmem:[%s4471_s3 + $0x210] sm:$0xff] }
  0x40   :  { %4661 = vst [vmem:[#allocation83_spill] sm:$0xff] %v3667_v60  ;;  %v3672_v61 = vld [vmem:[%s4471_s3 + $0x318] sm:$0xff]  ;;  %2595 = vmatprep.subr.mxu1 %v3660_v31  ;;  %4665 = vst [vmem:[#allocation87_spill] sm:$0xff] %v3693_v62  ;;  %v3698_v59 = vld [vmem:[%s4471_s3 + $0x310] sm:$0xff]  ;;  %2561 = vmatpush3.msra.mxu0 %v3667_v60  ;;  %v195_v60 = vcombine.high %v187_v57, %v187_v57 }
  0x41   :  { %4662 = vst [vmem:[#allocation84_spill] sm:$0xff] %v3672_v61  ;;  %4666 = vst [vmem:[#allocation88_spill] sm:$0xff] %v3698_v59  ;;  %2596 = vmatpush3.msra.mxu1 %v3672_v61  ;;  %v3706_v31 = vld [vmem:[%s4471_s3 + $0x288] sm:$0xff]  ;;  %2562 = vmatprep.subr.mxu0 %v3679_v63  ;;  %v3730_v63 = vld [vmem:[%s4471_s3 + $0x280] sm:$0xff] }
  0x42   :  { %4667 = vst [vmem:[#allocation89_spill] sm:$0xff] %v3706_v31  ;;  %v3711_v54 = vld [vmem:[%s4471_s3 + $0x388] sm:$0xff]  ;;  %2597 = vmatprep.subr.mxu1 %v3684_v30  ;;  %2563 = vmatpush3.msra.mxu0 %v3693_v62  ;;  %4671 = vst [vmem:[#allocation93_spill] sm:$0xff] %v3730_v63  ;;  %v3735_v30 = vld [vmem:[%s4471_s3 + $0x380] sm:$0xff] }
  0x43   :  { %4668 = vst [vmem:[#allocation90_spill] sm:$0xff] %v3711_v54  ;;  %v3718_v42 = vld [vmem:[%s4471_s3 + $0x208] sm:$0xff]  ;;  %2598 = vmatpush3.msra.mxu1 %v3698_v59  ;;  %4672 = vst [vmem:[#allocation94_spill] sm:$0xff] %v3735_v30  ;;  %2564 = vmatprep.subr.mxu0 %v3706_v31  ;;  %v3742_v62 = vld [vmem:[%s4471_s3 + $0x200] sm:$0xff]  ;;  %v196_v59 = vcombine.high %v194_v32, %v194_v32 }
  0x44   :  { %4669 = vst [vmem:[#allocation91_spill] sm:$0xff] %v3718_v42  ;;  %v3723_v61 = vld [vmem:[%s4471_s3 + $0x308] sm:$0xff]  ;;  %2599 = vmatprep.subr.mxu1 %v3711_v54  ;;  %4673 = vst [vmem:[#allocation95_spill] sm:$0xff] %v3742_v62  ;;  %2565 = vmatpush3.msra.mxu0 %v3718_v42  ;;  %v3749_v41 = vld [vmem:[%s4471_s3 + $0x300] sm:$0xff] }
  0x45   :  { %4670 = vst [vmem:[#allocation92_spill] sm:$0xff] %v3723_v61  ;;  %2600 = vmatpush3.msra.mxu1 %v3723_v61  ;;  %4674 = vst [vmem:[#allocation96_spill] sm:$0xff] %v3749_v41  ;;  %2566 = vmatprep.subr.mxu0 %v3730_v63  ;;  %v3758_v61 = vld [vmem:[%s4472_s4] sm:$0xff]  ;;  %v3763_v54 = vld [vmem:[%s4472_s4 + $0x8] sm:$0xff] }
  0x46   :  { %2601 = vmatprep.subr.mxu1 %v3735_v30  ;;  %2567 = vmatpush3.msra.mxu0 %v3742_v62  ;;  %4675 = vst [vmem:[#allocation97_spill] sm:$0xff] %v3758_v61  ;;  %4676 = vst [vmem:[#allocation98_spill] sm:$0xff] %v3763_v54  ;;  %v3767_v30 = vcombine.high %v3758_v61, %v3758_v61 }
  0x47   :  { %409 = vmatprep.mubr.f32.mxu0 %v195_v60  ;;  %2602 = vmatpush3.msra.mxu1 %v3749_v41  ;;  %v3771_v60 = vcombine.high %v3763_v54, %v3763_v54 }
  0x48   :  { %479 = vmatprep.mubr.f32.mxu1 %v196_v59  ;;  %410 = vmatmul.mubr.f32.vlgmr.msra.gmra.mxu0 %v187_v57  ;;  %4677 = vst [vmem:[#allocation99_spill] sm:$0xff] %v3767_v30  ;;  %v3784_v59 = vld [vmem:[%s4472_s4 + $0x10] sm:$0xff]  ;;  %v4562_v57 = vmov 0.0  }
  0x49   :  { %480 = vmatmul.mubr.f32.vlgmr.msra.gmra.mxu1 %v194_v32  ;;  %4678 = vst [vmem:[#allocation100_spill] sm:$0xff] %v3771_v60  ;;  %2429 = vmatprep.subr.msk.mxu0 %vm507_vm0, %v3767_v30  ;;  %v3789_v32 = vld [vmem:[%s4472_s4 + $0x18] sm:$0xff] }
  0x4a   :  { %2432 = vmatprep.subr.msk.mxu1 %vm507_vm0, %v3771_v60  ;;  %2430 = vmatpush1.msk.msra.mxu0 %vm507_vm0, %v3758_v61  ;;  %v3795_v61 = vcombine.high %v3784_v59, %v3784_v59 }
  0x4b   :  { %2433 = vmatpush1.msk.msra.mxu1 %vm507_vm0, %v3763_v54  ;;  %588 = vmatprep.mubr.f32.mxu0 %v4562_v57  ;;  %v3799_v54 = vcombine.high %v3789_v32, %v3789_v32 }
  0x4c   :  { %659 = vmatprep.mubr.f32.mxu1 %v4562_v57  ;;  %4679 = vst [vmem:[#allocation101_spill] sm:$0xff] %v3795_v61  ;;  %2435 = vmatprep.subr.msk.mxu0 %vm507_vm0, %v3795_v61 }
  0x4d   :  { %4680 = vst [vmem:[#allocation102_spill] sm:$0xff] %v3799_v54  ;;  %2438 = vmatprep.subr.msk.mxu1 %vm507_vm0, %v3799_v54 }
  0xe4   :  { %v2498_v60 = vpop.f32.mrf.mxu0 }
  0xe5   :  { %v2533_v30 = vpop.f32.mrf.mxu1 }
  0xe6   :  { %v2499_v41 = vpop.f32.mrf.mxu0 }
  0xe7   :  { %v2534_v62 = vpop.f32.mrf.mxu1  ;;  %v2500_v63 = vadd.f32 %v2499_v41, %v2498_v60  ;;  %v4711_v60 = vld [vmem:[#allocation74_spill] sm:$0xff] }
  0xe8   :  { %v2535_v57 = vadd.f32 %v2534_v62, %v2533_v30 }
  0xea   :  { %v342_v56 = vadd.f32 %v2535_v57, %v2500_v63 }
 0x108   :  { %v2568_v42 = vpop.f32.mrf.mxu0 }
 0x109   :  { %v2603_v31 = vpop.f32.mrf.mxu1 }
 0x10a   :  { %v2569_v51 = vpop.f32.mrf.mxu0 }
 0x10b   :  { %v2604_v58 = vpop.f32.mrf.mxu1  ;;  %v2570_v55 = vadd.f32 %v2569_v51, %v2568_v42  ;;  %v4681_v51 = vmov 0.0  }
 0x10c   :  { %v2605_v52 = vadd.f32 %v2604_v58, %v2603_v31 }
 0x10d   :  { %v412_v53 = vadd.f32 %v2570_v55, %v342_v56 }
 0x10f   :  { %v482_v50 = vadd.f32 %v2605_v52, %v412_v53 }
 0x111   :  { %v486_v61 = vsel %vm485_vm1, %v482_v50, 0.0 }
 0x112   :  { %v487_v49 = vrot.slane %v486_v61, 4 }
 0x114   :  { %v488_v54 = vadd.f32 %v487_v49, %v486_v61  ;;  %v4709_v49 = vld [vmem:[#allocation12_spill] sm:$0xff]  ;;  %v4710_v61 = vld [vmem:[#allocation15_spill] sm:$0xff] }
 0x116   :  { %v489_v48 = vrot.slane %v488_v54, 2 }
 0x118   :  { %v490_v47 = vadd.f32 %v489_v48, %v488_v54 }
 0x11a   :  { %v491_v46 = vrot.slane %v490_v47, 1 }
 0x11c   :  { %v492_v45 = vadd.f32 %v491_v46, %v490_v47 }
 0x11e   :  { %v494_v41 = vmul.f32 0.001953125, %v492_v45 }
 0x120   :  { %2431 = vmatmul.mubr.msk.f32.vlgmr.msra.gmra.mxu0 %vm503_vm2, %v494_v41  ;;  %2434 = vmatmul.mubr.msk.f32.vlgmr.msra.gmra.mxu1 %vm503_vm2, %v494_v41 }
 0x121   :  { %2436 = vmatpush1.msk.msra.mxu0 %vm507_vm0, %v3784_v59  ;;  %730 = vmatprep.mubr.f32.mxu0 %v4681_v51 }
 0x122   :  { %2439 = vmatpush1.msk.msra.mxu1 %vm507_vm0, %v3789_v32  ;;  %801 = vmatprep.mubr.f32.mxu1 %v4681_v51 }
 0x123   :  { %2606 = vmatprep.subr.mxu0 %v2965_v0  ;;  %2641 = vmatprep.subr.mxu1 %v2970_v1  ;;  %v4682_v0 = vld [vmem:[#allocation6_spill] sm:$0xff]  ;;  %v4683_v1 = vld [vmem:[#allocation7_spill] sm:$0xff] }
 0x124   :  { %2437 = vmatmul.mubr.msk.f32.vlgmr.msra.gmra.mxu0 %vm503_vm2, %v494_v41  ;;  %2440 = vmatmul.mubr.msk.f32.vlgmr.msra.gmra.mxu1 %vm503_vm2, %v494_v41 }
 0x125   :  { %2607 = vmatpush3.msra.mxu0 %v2975_v2  ;;  %2642 = vmatpush3.msra.mxu1 %v2982_v3  ;;  %v4684_v2 = vld [vmem:[#allocation8_spill] sm:$0xff]  ;;  %v4685_v3 = vld [vmem:[#allocation9_spill] sm:$0xff] }
 0x126   :  { %2608 = vmatprep.subr.mxu0 %v2987_v4  ;;  %2643 = vmatprep.subr.mxu1 %v2992_v5  ;;  %v4686_v4 = vld [vmem:[#allocation10_spill] sm:$0xff]  ;;  %v4687_v5 = vld [vmem:[#allocation11_spill] sm:$0xff] }
 0x127   :  { %2609 = vmatpush3.msra.mxu0 %v2999_v6  ;;  %2644 = vmatpush3.msra.mxu1 %v3004_v7  ;;  %v4688_v6 = vld [vmem:[#allocation13_spill] sm:$0xff]  ;;  %v4689_v7 = vld [vmem:[#allocation14_spill] sm:$0xff] }
 0x128   :  { %2610 = vmatprep.subr.mxu0 %v3009_v8  ;;  %2645 = vmatprep.subr.mxu1 %v3016_v9  ;;  %v4690_v8 = vld [vmem:[#allocation16_spill] sm:$0xff]  ;;  %v4691_v9 = vld [vmem:[#allocation17_spill] sm:$0xff] }
 0x129   :  { %2611 = vmatpush3.msra.mxu0 %v3021_v10  ;;  %2646 = vmatpush3.msra.mxu1 %v3026_v11  ;;  %v4692_v10 = vld [vmem:[#allocation18_spill] sm:$0xff]  ;;  %v4693_v11 = vld [vmem:[#allocation19_spill] sm:$0xff] }
 0x12a   :  { %2612 = vmatprep.subr.mxu0 %v3033_v12  ;;  %2647 = vmatprep.subr.mxu1 %v3038_v13  ;;  %v4694_v12 = vld [vmem:[#allocation20_spill] sm:$0xff]  ;;  %v4695_v13 = vld [vmem:[#allocation21_spill] sm:$0xff] }
 0x12b   :  { %2613 = vmatpush3.msra.mxu0 %v3045_v14  ;;  %2648 = vmatpush3.msra.mxu1 %v3050_v15  ;;  %v4696_v14 = vld [vmem:[#allocation22_spill] sm:$0xff]  ;;  %v4697_v15 = vld [vmem:[#allocation23_spill] sm:$0xff] }
 0x12c   :  { %2614 = vmatprep.subr.mxu0 %v3057_v16  ;;  %2649 = vmatprep.subr.mxu1 %v3062_v17  ;;  %v4698_v16 = vld [vmem:[#allocation24_spill] sm:$0xff]  ;;  %v4699_v17 = vld [vmem:[#allocation25_spill] sm:$0xff] }
 0x12d   :  { %2615 = vmatpush3.msra.mxu0 %v3069_v18  ;;  %2650 = vmatpush3.msra.mxu1 %v3074_v19  ;;  %v4700_v18 = vld [vmem:[#allocation26_spill] sm:$0xff]  ;;  %v4701_v19 = vld [vmem:[#allocation27_spill] sm:$0xff] }
 0x12e   :  { %2616 = vmatprep.subr.mxu0 %v3081_v20  ;;  %2651 = vmatprep.subr.mxu1 %v3086_v21  ;;  %v4702_v20 = vld [vmem:[#allocation28_spill] sm:$0xff]  ;;  %v4703_v21 = vld [vmem:[#allocation29_spill] sm:$0xff] }
 0x12f   :  { %2617 = vmatpush3.msra.mxu0 %v3093_v22  ;;  %2652 = vmatpush3.msra.mxu1 %v3098_v23  ;;  %v4704_v22 = vld [vmem:[#allocation30_spill] sm:$0xff]  ;;  %v4705_v23 = vld [vmem:[#allocation31_spill] sm:$0xff] }
 0x130   :  { %2618 = vmatprep.subr.mxu0 %v3105_v24  ;;  %2653 = vmatprep.subr.mxu1 %v3110_v25  ;;  %v4706_v24 = vld [vmem:[#allocation32_spill] sm:$0xff]  ;;  %v4707_v25 = vld [vmem:[#allocation33_spill] sm:$0xff] }
 0x131   :  { %2619 = vmatpush3.msra.mxu0 %v3117_v26  ;;  %2654 = vmatpush3.msra.mxu1 %v3122_v27  ;;  %v4708_v26 = vld [vmem:[#allocation5_spill] sm:$0xff] }
 0x132   :  { %2620 = vmatprep.subr.mxu0 %v3129_v28  ;;  %2655 = vmatprep.subr.mxu1 %v3134_v29  ;;  %v3883_v27 = vsub.s32 0, %v4708_v26  ;;  %v4728_v26 = vld [vmem:[#allocation52_spill] sm:$0xff] }
 0x133   :  { %2621 = vmatpush3.msra.mxu0 %v3141_v33  ;;  %2656 = vmatpush3.msra.mxu1 %v3146_v34 }
 0x134   :  { %2622 = vmatprep.subr.mxu0 %v3153_v35  ;;  %2657 = vmatprep.subr.mxu1 %v3158_v36 }
 0x135   :  { %2623 = vmatpush3.msra.mxu0 %v3165_v37  ;;  %2658 = vmatpush3.msra.mxu1 %v3170_v38 }
 0x136   :  { %2624 = vmatprep.subr.mxu0 %v3177_v39  ;;  %2659 = vmatprep.subr.mxu1 %v3182_v40 }
 0x137   :  { %2625 = vmatpush3.msra.mxu0 %v3191_v43  ;;  %2660 = vmatpush3.msra.mxu1 %v3196_v44 }
 0x138   :  { %2626 = vmatprep.subr.mxu0 %v4682_v0  ;;  %2661 = vmatprep.subr.mxu1 %v4683_v1 }
 0x139   :  { %2627 = vmatpush3.msra.mxu0 %v4684_v2  ;;  %2662 = vmatpush3.msra.mxu1 %v4685_v3 }
 0x13a   :  { %2628 = vmatprep.subr.mxu0 %v4686_v4  ;;  %2663 = vmatprep.subr.mxu1 %v4687_v5 }
 0x13b   :  { %2629 = vmatpush3.msra.mxu0 %v4688_v6  ;;  %2664 = vmatpush3.msra.mxu1 %v4689_v7  ;;  %v4712_v7 = vld [vmem:[#allocation34_spill] sm:$0xff] }
 0x13c   :  { %2630 = vmatprep.subr.mxu0 %v4690_v8  ;;  %2665 = vmatprep.subr.mxu1 %v4691_v9 }
 0x13d   :  { %2631 = vmatpush3.msra.mxu0 %v4692_v10  ;;  %2666 = vmatpush3.msra.mxu1 %v4693_v11  ;;  %v4713_v10 = vld [vmem:[#allocation36_spill] sm:$0xff]  ;;  %v4714_v11 = vld [vmem:[#allocation38_spill] sm:$0xff] }
 0x13e   :  { %2632 = vmatprep.subr.mxu0 %v4694_v12  ;;  %2667 = vmatprep.subr.mxu1 %v4695_v13  ;;  %v4715_v12 = vld [vmem:[#allocation35_spill] sm:$0xff] }
 0x13f   :  { %2633 = vmatpush3.msra.mxu0 %v4696_v14  ;;  %2668 = vmatpush3.msra.mxu1 %v4697_v15  ;;  %v4716_v14 = vld [vmem:[#allocation40_spill] sm:$0xff]  ;;  %v4717_v15 = vld [vmem:[#allocation37_spill] sm:$0xff] }
 0x140   :  { %2634 = vmatprep.subr.mxu0 %v4698_v16  ;;  %2669 = vmatprep.subr.mxu1 %v4699_v17  ;;  %v4718_v16 = vld [vmem:[#allocation42_spill] sm:$0xff]  ;;  %v4719_v17 = vld [vmem:[#allocation39_spill] sm:$0xff] }
 0x141   :  { %2635 = vmatpush3.msra.mxu0 %v4700_v18  ;;  %2670 = vmatpush3.msra.mxu1 %v4701_v19  ;;  %v4720_v18 = vld [vmem:[#allocation44_spill] sm:$0xff]  ;;  %v4721_v19 = vld [vmem:[#allocation41_spill] sm:$0xff] }
 0x142   :  { %2636 = vmatprep.subr.mxu0 %v4702_v20  ;;  %2671 = vmatprep.subr.mxu1 %v4703_v21  ;;  %v4722_v20 = vld [vmem:[#allocation46_spill] sm:$0xff]  ;;  %v4723_v21 = vld [vmem:[#allocation43_spill] sm:$0xff] }
 0x143   :  { %2637 = vmatpush3.msra.mxu0 %v4704_v22  ;;  %2672 = vmatpush3.msra.mxu1 %v4705_v23  ;;  %v4724_v22 = vld [vmem:[#allocation48_spill] sm:$0xff]  ;;  %v4725_v23 = vld [vmem:[#allocation45_spill] sm:$0xff] }
 0x144   :  { %2676 = vmatprep.subr.mxu0 %v4706_v24  ;;  %2711 = vmatprep.subr.mxu1 %v4707_v25  ;;  %v4726_v24 = vld [vmem:[#allocation50_spill] sm:$0xff]  ;;  %v4727_v25 = vld [vmem:[#allocation47_spill] sm:$0xff] }
 0x1e0   :  { %v590_v28 = vpop.f32.mrf.mxu0  ;;  %v661_v29 = vpop.f32.mrf.mxu1 }
 0x1e1   :  { %v811_v35 = vrot.slane %v590_v28, %v3883_v27  ;;  %v819_v36 = vrot.slane %v661_v29, %v3883_v27  ;;  %v4729_v28 = vld [vmem:[#allocation49_spill] sm:$0xff]  ;;  %v4730_v29 = vld [vmem:[#allocation54_spill] sm:$0xff] }
 0x1e2   :  { %v592_v33 = vpop.f32.mrf.mxu0  ;;  %v663_v34 = vpop.f32.mrf.mxu1 }
 0x1e3   :  { %v815_v37 = vrot.slane %v592_v33, %v3883_v27  ;;  %v823_v38 = vrot.slane %v663_v34, %v3883_v27  ;;  %v4731_v33 = vld [vmem:[#allocation51_spill] sm:$0xff]  ;;  %v4732_v34 = vld [vmem:[#allocation56_spill] sm:$0xff] }
 0x1e4   :  { %v732_v39 = vpop.f32.mrf.mxu0  ;;  %v803_v40 = vpop.f32.mrf.mxu1 }
 0x1e5   :  { %v848_v43 = vcombine.low %v811_v35, %v815_v37  ;;  %v849_v44 = vcombine.low %v819_v36, %v823_v38  ;;  %v827_v45 = vrot.slane %v732_v39, %v3883_v27  ;;  %v835_v46 = vrot.slane %v803_v40, %v3883_v27  ;;  %v4733_v35 = vld [vmem:[#allocation53_spill] sm:$0xff]  ;;  %v4734_v36 = vld [vmem:[#allocation58_spill] sm:$0xff]  ;;  %v4735_v37 = vld [vmem:[#allocation55_spill] sm:$0xff] }
 0x1e6   :  { %v734_v47 = vpop.f32.mrf.mxu0  ;;  %v805_v48 = vpop.f32.mrf.mxu1  ;;  %v4736_v38 = vld [vmem:[#allocation60_spill] sm:$0xff]  ;;  %v4737_v39 = vld [vmem:[#allocation57_spill] sm:$0xff]  ;;  %v4738_v40 = vld [vmem:[#allocation62_spill] sm:$0xff] }
 0x1e7   :  { %v856_v50 = vrot.slane %v848_v43, %v4709_v49  ;;  %v863_v52 = vrot.slane %v849_v44, %v4709_v49  ;;  %v831_v53 = vrot.slane %v734_v47, %v3883_v27  ;;  %v839_v54 = vrot.slane %v805_v48, %v3883_v27  ;;  %v4739_v43 = vld [vmem:[#allocation59_spill] sm:$0xff]  ;;  %v4740_v44 = vld [vmem:[#allocation64_spill] sm:$0xff] }
 0x1e8   :  { %v4743_v47 = vld [vmem:[#allocation63_spill] sm:$0xff]  ;;  %v4744_v48 = vld [vmem:[#allocation68_spill] sm:$0xff] }
 0x1e9   :  { %v864_v55 = vcombine.low %v856_v50, %v863_v52  ;;  %v865_v56 = vcombine.low %v827_v45, %v831_v53  ;;  %v866_v58 = vcombine.low %v835_v46, %v839_v54  ;;  %v4741_v45 = vld [vmem:[#allocation61_spill] sm:$0xff]  ;;  %v4742_v46 = vld [vmem:[#allocation66_spill] sm:$0xff]  ;;  %v4747_v53 = vld [vmem:[#allocation67_spill] sm:$0xff] }
 0x1ea   :  { %v4745_v50 = vld [vmem:[#allocation65_spill] sm:$0xff]  ;;  %v4746_v52 = vld [vmem:[#allocation70_spill] sm:$0xff]  ;;  %v4748_v54 = vld [vmem:[#allocation72_spill] sm:$0xff] }
 0x1eb   :  { %v3896_v63 = vsub.f32 %v4710_v61, %v864_v55  ;;  %v873_v30 = vrot.slane %v865_v56, %v4709_v49  ;;  %v880_v62 = vrot.slane %v866_v58, %v4709_v49  ;;  %v4749_v55 = vld [vmem:[#allocation69_spill] sm:$0xff]  ;;  %v4750_v56 = vld [vmem:[#allocation75_spill] sm:$0xff] }
 0x1ec   :  { %v4751_v58 = vld [vmem:[#allocation71_spill] sm:$0xff]  ;;  %v4752_v61 = vld [vmem:[#allocation77_spill] sm:$0xff] }
 0x1ed   :  { %v881_v31 = vcombine.low %v873_v30, %v880_v62  ;;  %v886_v42 = vmul.f32 %v3896_v63, %v3896_v63  ;;  %v4753_v30 = vld [vmem:[#allocation73_spill] sm:$0xff]  ;;  %v4754_v62 = vld [vmem:[#allocation79_spill] sm:$0xff] }
 0x1ef   :  { %v3903_v57 = vsub.f32 %v4711_v60, %v881_v31  ;;  %v897_v41 = vrot.slane %v886_v42, %v4709_v49  ;;  %v890_v0 = vcombine.high %v886_v42, %v886_v42  ;;  %v4755_v31 = vld [vmem:[#allocation76_spill] sm:$0xff]  ;;  %v4756_v42 = vld [vmem:[#allocation81_spill] sm:$0xff]  ;;  %v4757_v60 = vld [vmem:[#allocation78_spill] sm:$0xff] }
 0x1f1   :  { %v905_v1 = vcombine.high %v897_v41, %v897_v41  ;;  %v904_v2 = vrot.slane %v890_v0, %v4709_v49  ;;  %v887_v3 = vmul.f32 %v3903_v57, %v3903_v57  ;;  %v4759_v0 = vld [vmem:[#allocation80_spill] sm:$0xff] }
 0x1f3   :  { %996 = vmatprep.mubr.f32.mxu0 %v905_v1  ;;  %v906_v4 = vcombine.high %v904_v2, %v904_v2  ;;  %v3910_v5 = vrot.slane %v887_v3, %v4709_v49  ;;  %v907_v6 = vcombine.high %v887_v3, %v887_v3  ;;  %v4760_v1 = vld [vmem:[#allocation85_spill] sm:$0xff]  ;;  %v4762_v3 = vld [vmem:[#allocation87_spill] sm:$0xff] }
 0x1f4   :  { %997 = vmatmul.mubr.f32.vlgmr.msra.gmra.mxu0 %v897_v41  ;;  %v4758_v41 = vld [vmem:[#allocation83_spill] sm:$0xff] }
 0x1f5   :  { %2677 = vmatpush3.msra.mxu0 %v4712_v7  ;;  %1066 = vmatprep.mubr.f32.mxu1 %v906_v4  ;;  %v922_v8 = vcombine.high %v3910_v5, %v3910_v5  ;;  %v3916_v9 = vrot.slane %v907_v6, %v4709_v49  ;;  %v4763_v4 = vld [vmem:[#allocation84_spill] sm:$0xff]  ;;  %v4764_v6 = vld [vmem:[#allocation89_spill] sm:$0xff]  ;;  %v4765_v7 = vld [vmem:[#allocation86_spill] sm:$0xff] }
 0x1f6   :  { %2678 = vmatprep.subr.mxu0 %v4713_v10  ;;  %1067 = vmatmul.mubr.f32.vlgmr.msra.gmra.mxu1 %v904_v2  ;;  %v4761_v2 = vld [vmem:[#allocation82_spill] sm:$0xff]  ;;  %v4767_v10 = vld [vmem:[#allocation88_spill] sm:$0xff] }
 0x1f7   :  { %2679 = vmatpush3.msra.mxu0 %v4714_v11  ;;  %2712 = vmatpush3.msra.mxu1 %v4715_v12  ;;  %v923_v13 = vcombine.high %v3916_v9, %v3916_v9  ;;  %v4768_v11 = vld [vmem:[#allocation93_spill] sm:$0xff]  ;;  %v4769_v12 = vld [vmem:[#allocation90_spill] sm:$0xff] }
 0x1f8   :  { %2680 = vmatprep.subr.mxu0 %v4716_v14  ;;  %1136 = vmatprep.mubr.f32.mxu0 %v922_v8  ;;  %v4766_v8 = vld [vmem:[#allocation91_spill] sm:$0xff]  ;;  %v4771_v14 = vld [vmem:[#allocation92_spill] sm:$0xff] }
 0x1f9   :  { %2713 = vmatprep.subr.mxu1 %v4717_v15  ;;  %2681 = vmatpush3.msra.mxu0 %v4718_v16  ;;  %v4772_v15 = vld [vmem:[#allocation94_spill] sm:$0xff]  ;;  %v4773_v16 = vld [vmem:[#allocation96_spill] sm:$0xff] }
 0x1fa   :  { %2714 = vmatpush3.msra.mxu1 %v4719_v17  ;;  %2682 = vmatprep.subr.mxu0 %v4720_v18  ;;  %v4774_v17 = vld [vmem:[#allocation99_spill] sm:$0xff]  ;;  %v4775_v18 = vld [vmem:[#allocation100_spill] sm:$0xff] }
 0x1fb   :  { %2715 = vmatprep.subr.mxu1 %v4721_v19  ;;  %1206 = vmatprep.mubr.f32.mxu1 %v923_v13  ;;  %v4770_v13 = vld [vmem:[#allocation95_spill] sm:$0xff]  ;;  %v4776_v19 = vld [vmem:[#allocation97_spill] sm:$0xff] }
 0x1fc   :  { %2683 = vmatpush3.msra.mxu0 %v4722_v20  ;;  %2716 = vmatpush3.msra.mxu1 %v4723_v21  ;;  %v4777_v20 = vld [vmem:[#allocation98_spill] sm:$0xff] }
 0x1fd   :  { %2684 = vmatprep.subr.mxu0 %v4724_v22  ;;  %2717 = vmatprep.subr.mxu1 %v4725_v23  ;;  %v4779_v21 = vld [vmem:[#allocation102_spill] sm:$0xff] }
 0x1fe   :  { %2685 = vmatpush3.msra.mxu0 %v4726_v24  ;;  %2718 = vmatpush3.msra.mxu1 %v4727_v25 }
 0x1ff   :  { %2686 = vmatprep.subr.mxu0 %v4728_v26  ;;  %2719 = vmatprep.subr.mxu1 %v4729_v28 }
 0x200   :  { %2687 = vmatpush3.msra.mxu0 %v4730_v29  ;;  %2720 = vmatpush3.msra.mxu1 %v4731_v33 }
 0x201   :  { %2688 = vmatprep.subr.mxu0 %v4732_v34  ;;  %2721 = vmatprep.subr.mxu1 %v4733_v35 }
 0x202   :  { %2689 = vmatpush3.msra.mxu0 %v4734_v36  ;;  %2722 = vmatpush3.msra.mxu1 %v4735_v37 }
 0x203   :  { %2690 = vmatprep.subr.mxu0 %v4736_v38  ;;  %2723 = vmatprep.subr.mxu1 %v4737_v39 }
 0x204   :  { %2691 = vmatpush3.msra.mxu0 %v4738_v40  ;;  %2724 = vmatpush3.msra.mxu1 %v4739_v43 }
 0x205   :  { %2692 = vmatprep.subr.mxu0 %v4740_v44  ;;  %2725 = vmatprep.subr.mxu1 %v4741_v45 }
 0x206   :  { %2693 = vmatpush3.msra.mxu0 %v4742_v46  ;;  %2726 = vmatpush3.msra.mxu1 %v4743_v47 }
 0x207   :  { %2694 = vmatprep.subr.mxu0 %v4744_v48  ;;  %2727 = vmatprep.subr.mxu1 %v4745_v50 }
 0x208   :  { %2695 = vmatpush3.msra.mxu0 %v4746_v52  ;;  %2728 = vmatpush3.msra.mxu1 %v4747_v53  ;;  %v1220_v53 = vld [vmem:[%s4469_s1] sm:$0x1] }
 0x209   :  { %2696 = vmatprep.subr.mxu0 %v4748_v54  ;;  %2729 = vmatprep.subr.mxu1 %v4749_v55 }
 0x20a   :  { %2697 = vmatpush3.msra.mxu0 %v4750_v56  ;;  %2730 = vmatpush3.msra.mxu1 %v4751_v58  ;;  %v1511_v56 = vld [vmem:[%s4470_s2] sm:$0x1]  ;;  %v1986_v58 = vld [vmem:[%s4473_s5 + $0xf8] sm:$0xff] }
 0x20b   :  { %2698 = vmatprep.subr.mxu0 %v4752_v61  ;;  %2731 = vmatprep.subr.mxu1 %v4753_v30  ;;  %v2018_v61 = vld [vmem:[%s4473_s5 + $0x1f8] sm:$0xff] }
 0x20c   :  { %2699 = vmatpush3.msra.mxu0 %v4754_v62  ;;  %2732 = vmatpush3.msra.mxu1 %v4755_v31  ;;  %v1970_v30 = vld [vmem:[%s4473_s5 + $0x78] sm:$0xff]  ;;  %v2001_v31 = vld [vmem:[%s4473_s5 + $0x170] sm:$0xff] }
 0x20d   :  { %2700 = vmatprep.subr.mxu0 %v4756_v42  ;;  %2733 = vmatprep.subr.mxu1 %v4757_v60  ;;  %v2002_v62 = vld [vmem:[%s4473_s5 + $0x178] sm:$0xff]  ;;  %v1984_v42 = vld [vmem:[%s4473_s5 + $0xe8] sm:$0xff] }
 0x20e   :  { %2701 = vmatpush3.msra.mxu0 %v4758_v41  ;;  %2734 = vmatpush3.msra.mxu1 %v4759_v0  ;;  %v2016_v60 = vld [vmem:[%s4473_s5 + $0x1e8] sm:$0xff]  ;;  %v1983_v0 = vld [vmem:[%s4473_s5 + $0xe0] sm:$0xff] }
 0x20f   :  { %2702 = vmatprep.subr.mxu0 %v4760_v1  ;;  %2735 = vmatprep.subr.mxu1 %v4761_v2  ;;  %v1968_v41 = vld [vmem:[%s4473_s5 + $0x68] sm:$0xff]  ;;  %v1967_v1 = vld [vmem:[%s4473_s5 + $0x60] sm:$0xff] }
 0x210   :  { %2703 = vmatpush3.msra.mxu0 %v4762_v3  ;;  %2736 = vmatpush3.msra.mxu1 %v4763_v4  ;;  %v2000_v2 = vld [vmem:[%s4473_s5 + $0x168] sm:$0xff]  ;;  %v1982_v3 = vld [vmem:[%s4473_s5 + $0xd8] sm:$0xff]  ;;  %v2015_v4 = vld [vmem:[%s4473_s5 + $0x1e0] sm:$0xff] }
 0x211   :  { %2704 = vmatprep.subr.mxu0 %v4764_v6  ;;  %2737 = vmatprep.subr.mxu1 %v4765_v7  ;;  %v1966_v6 = vld [vmem:[%s4473_s5 + $0x58] sm:$0xff]  ;;  %v1999_v7 = vld [vmem:[%s4473_s5 + $0x160] sm:$0xff] }
 0x212   :  { %2705 = vmatpush3.msra.mxu0 %v4766_v8  ;;  %2738 = vmatpush3.msra.mxu1 %v4767_v10  ;;  %v1981_v8 = vld [vmem:[%s4473_s5 + $0xd0] sm:$0xff]  ;;  %v2014_v10 = vld [vmem:[%s4473_s5 + $0x1d8] sm:$0xff] }
 0x213   :  { %2706 = vmatprep.subr.mxu0 %v4768_v11  ;;  %2739 = vmatprep.subr.mxu1 %v4769_v12  ;;  %v1965_v11 = vld [vmem:[%s4473_s5 + $0x50] sm:$0xff]  ;;  %v1998_v12 = vld [vmem:[%s4473_s5 + $0x158] sm:$0xff] }
 0x214   :  { %2707 = vmatpush3.msra.mxu0 %v4770_v13  ;;  %2740 = vmatpush3.msra.mxu1 %v4771_v14  ;;  %v1980_v13 = vld [vmem:[%s4473_s5 + $0xc8] sm:$0xff]  ;;  %v2013_v14 = vld [vmem:[%s4473_s5 + $0x1d0] sm:$0xff] }
 0x215   :  { %1137 = vmatmul.mubr.f32.vlgmr.msra.gmra.mxu0 %v3910_v5  ;;  %2741 = vmatprep.subr.mxu1 %v4772_v15  ;;  %v4778_v5 = vld [vmem:[#allocation101_spill] sm:$0xff] }
 0x216   :  { %2742 = vmatpush3.msra.mxu1 %v4773_v16  ;;  %2441 = vmatprep.subr.msk.mxu0 %vm507_vm0, %v4774_v17  ;;  %v1964_v15 = vld [vmem:[%s4473_s5 + $0x48] sm:$0xff]  ;;  %v1997_v16 = vld [vmem:[%s4473_s5 + $0x150] sm:$0xff] }
 0x217   :  { %1207 = vmatmul.mubr.f32.vlgmr.msra.gmra.mxu1 %v3916_v9  ;;  %2444 = vmatprep.subr.msk.mxu1 %vm507_vm0, %v4775_v18 }
 0x218   :  { %2442 = vmatpush1.msk.msra.mxu0 %vm507_vm0, %v4776_v19  ;;  %2445 = vmatpush1.msk.msra.mxu1 %vm507_vm0, %v4777_v20 }
 0x219   :  { %1291 = vmatprep.mubr.f32.mxu0 %v4681_v51  ;;  %1362 = vmatprep.mubr.f32.mxu1 %v4681_v51 }
 0x21a   :  { %2447 = vmatprep.subr.msk.mxu0 %vm507_vm0, %v4778_v5  ;;  %2450 = vmatprep.subr.msk.mxu1 %vm507_vm0, %v4779_v21 }
 0x2b4   :  { %v2638_v22 = vpop.f32.mrf.mxu0 }
 0x2b6   :  { %v2673_v9 = vpop.f32.mrf.mxu1  ;;  %v2639_v24 = vpop.f32.mrf.mxu0 }
 0x2b7   :  { %v2640_v28 = vadd.f32 %v2639_v24, %v2638_v22  ;;  %v1995_v22 = vld [vmem:[%s4473_s5 + $0x140] sm:$0xff]  ;;  %v2010_v24 = vld [vmem:[%s4473_s5 + $0x1b8] sm:$0xff] }
 0x2b8   :  { %v2674_v23 = vpop.f32.mrf.mxu1 }
 0x2b9   :  { %v2675_v25 = vadd.f32 %v2674_v23, %v2673_v9  ;;  %v1962_v9 = vld [vmem:[%s4473_s5 + $0x38] sm:$0xff]  ;;  %v1977_v23 = vld [vmem:[%s4473_s5 + $0xb0] sm:$0xff] }
 0x2bb   :  { %v1069_v34 = vadd.f32 %v2675_v25, %v2640_v28  ;;  %v1961_v25 = vld [vmem:[%s4473_s5 + $0x30] sm:$0xff]  ;;  %v1976_v28 = vld [vmem:[%s4473_s5 + $0xa8] sm:$0xff] }
 0x2d5   :  { %v2708_v26 = vpop.f32.mrf.mxu0 }
 0x2d7   :  { %v2709_v29 = vpop.f32.mrf.mxu0  ;;  %v2743_v33 = vpop.f32.mrf.mxu1 }
 0x2d8   :  { %v2710_v35 = vadd.f32 %v2709_v29, %v2708_v26  ;;  %v1994_v26 = vld [vmem:[%s4473_s5 + $0x138] sm:$0xff]  ;;  %v2009_v29 = vld [vmem:[%s4473_s5 + $0x1b0] sm:$0xff] }
 0x2d9   :  { %v2744_v36 = vpop.f32.mrf.mxu1 }
 0x2da   :  { %v1139_v37 = vadd.f32 %v2710_v35, %v1069_v34  ;;  %v2745_v38 = vadd.f32 %v2744_v36, %v2743_v33  ;;  %v1960_v33 = vld [vmem:[%s4473_s5 + $0x28] sm:$0xff]  ;;  %v1993_v34 = vld [vmem:[%s4473_s5 + $0x130] sm:$0xff]  ;;  %v1975_v35 = vld [vmem:[%s4473_s5 + $0xa0] sm:$0xff] }
 0x2db   :  { %v2008_v36 = vld [vmem:[%s4473_s5 + $0x1a8] sm:$0xff] }
 0x2dc   :  { %v1209_v39 = vadd.f32 %v2745_v38, %v1139_v37  ;;  %v1959_v37 = vld [vmem:[%s4473_s5 + $0x20] sm:$0xff]  ;;  %v1992_v38 = vld [vmem:[%s4473_s5 + $0x128] sm:$0xff] }
 0x2de   :  { %v1212_v40 = vsel %vm485_vm1, %v1209_v39, 0.0  ;;  %v1974_v39 = vld [vmem:[%s4473_s5 + $0x98] sm:$0xff] }
 0x2df   :  { %v1213_v43 = vrot.slane %v1212_v40, 4 }
 0x2e1   :  { %v1214_v44 = vadd.f32 %v1213_v43, %v1212_v40  ;;  %v2007_v40 = vld [vmem:[%s4473_s5 + $0x1a0] sm:$0xff]  ;;  %v1958_v43 = vld [vmem:[%s4473_s5 + $0x18] sm:$0xff] }
 0x2e3   :  { %v1215_v45 = vrot.slane %v1214_v44, 2 }
 0x2e5   :  { %v1216_v46 = vadd.f32 %v1215_v45, %v1214_v44  ;;  %v1991_v44 = vld [vmem:[%s4473_s5 + $0x120] sm:$0xff]  ;;  %v1973_v45 = vld [vmem:[%s4473_s5 + $0x90] sm:$0xff] }
 0x2e7   :  { %v1217_v47 = vrot.slane %v1216_v46, 1 }
 0x2e9   :  { %v1218_v48 = vadd.f32 %v1217_v47, %v1216_v46  ;;  %v2006_v46 = vld [vmem:[%s4473_s5 + $0x198] sm:$0xff]  ;;  %v1957_v47 = vld [vmem:[%s4473_s5 + $0x10] sm:$0xff] }
 0x2eb   :  { %v1219_v50 = vmul.f32 0.001953125, %v1218_v48  ;;  %v1990_v48 = vld [vmem:[%s4473_s5 + $0x118] sm:$0xff] }
 0x2ed   :  { %v1221_v52 = vadd.f32 1e-05, %v1219_v50  ;;  %v1972_v50 = vld [vmem:[%s4473_s5 + $0x88] sm:$0xff] }
 0x2ef   :  { %2895 = vrsqrt.f32 %v1221_v52  ;;  %v2005_v52 = vld [vmem:[%s4473_s5 + $0x190] sm:$0xff] }
 0x2fc   :  { %v2896_v54 = vpop.eup %2895 }
 0x2fd   :  { %v1223_v55 = vmul.f32 %v2896_v54, %v1220_v53  ;;  %v1956_v53 = vld [vmem:[%s4473_s5 + $0x8] sm:$0xff]  ;;  %v1989_v54 = vld [vmem:[%s4473_s5 + $0x110] sm:$0xff] }
 0x2ff   :  { %2443 = vmatmul.mubr.msk.f32.vlgmr.msra.gmra.mxu0 %vm503_vm2, %v1223_v55  ;;  %2446 = vmatmul.mubr.msk.f32.vlgmr.msra.gmra.mxu1 %vm503_vm2, %v1223_v55 }
 0x300   :  { %2448 = vmatpush1.msk.msra.mxu0 %vm507_vm0, %v3784_v59  ;;  %2451 = vmatpush1.msk.msra.mxu1 %vm507_vm0, %v3789_v32 }
 0x301   :  { %1433 = vmatprep.mubr.f32.mxu0 %v4681_v51  ;;  %1504 = vmatprep.mubr.f32.mxu1 %v4681_v51 }
 0x302   :  { %2453 = vmatprep.subr.msk.mxu0 %vm507_vm0, %v4774_v17  ;;  %2456 = vmatprep.subr.msk.mxu1 %vm507_vm0, %v4775_v18  ;;  %v1979_v17 = vld [vmem:[%s4473_s5 + $0xc0] sm:$0xff]  ;;  %v2012_v18 = vld [vmem:[%s4473_s5 + $0x1c8] sm:$0xff] }
 0x303   :  { %2449 = vmatmul.mubr.msk.f32.vlgmr.msra.gmra.mxu0 %vm503_vm2, %v1223_v55  ;;  %2452 = vmatmul.mubr.msk.f32.vlgmr.msra.gmra.mxu1 %vm503_vm2, %v1223_v55  ;;  %v1971_v55 = vld [vmem:[%s4473_s5 + $0x80] sm:$0xff] }
 0x304   :  { %2454 = vmatpush1.msk.msra.mxu0 %vm507_vm0, %v4776_v19  ;;  %2457 = vmatpush1.msk.msra.mxu1 %vm507_vm0, %v4777_v20  ;;  %v1963_v19 = vld [vmem:[%s4473_s5 + $0x40] sm:$0xff]  ;;  %v1996_v20 = vld [vmem:[%s4473_s5 + $0x148] sm:$0xff] }
 0x305   :  { %1579 = vmatprep.mubr.f32.mxu0 %v4681_v51  ;;  %1650 = vmatprep.mubr.f32.mxu1 %v4681_v51 }
 0x306   :  { %2459 = vmatprep.subr.msk.mxu0 %vm507_vm0, %v4778_v5  ;;  %2462 = vmatprep.subr.msk.mxu1 %vm507_vm0, %v4779_v21  ;;  %v1978_v5 = vld [vmem:[%s4473_s5 + $0xb8] sm:$0xff]  ;;  %v2011_v21 = vld [vmem:[%s4473_s5 + $0x1c0] sm:$0xff] }
 0x307   :  { %2455 = vmatmul.mubr.msk.f32.vlgmr.msra.gmra.mxu0 %vm503_vm2, %v1511_v56  ;;  %2458 = vmatmul.mubr.msk.f32.vlgmr.msra.gmra.mxu1 %vm503_vm2, %v1511_v56 }
 0x308   :  { %2460 = vmatpush1.msk.msra.mxu0 %vm507_vm0, %v3784_v59  ;;  %1721 = vmatprep.mubr.f32.mxu0 %v4681_v51  ;;  %v1985_v59 = vld [vmem:[%s4473_s5 + $0xf0] sm:$0xff] }
 0x309   :  { %2463 = vmatpush1.msk.msra.mxu1 %vm507_vm0, %v3789_v32  ;;  %1792 = vmatprep.mubr.f32.mxu1 %v4681_v51  ;;  %v2017_v32 = vld [vmem:[%s4473_s5 + $0x1f0] sm:$0xff] }
 0x30a   :  { %2746 = vmatprep.subr.mxu0 %v1986_v58  ;;  %2781 = vmatprep.subr.mxu1 %v2018_v61  ;;  %v1969_v51 = vld [vmem:[%s4473_s5 + $0x70] sm:$0xff]  ;;  %v1955_v58 = vld [vmem:[%s4473_s5] sm:$0xff]  ;;  %v1988_v61 = vld [vmem:[%s4473_s5 + $0x108] sm:$0xff] }
 0x30b   :  { %2461 = vmatmul.mubr.msk.f32.vlgmr.msra.gmra.mxu0 %vm503_vm2, %v1511_v56  ;;  %2464 = vmatmul.mubr.msk.f32.vlgmr.msra.gmra.mxu1 %vm503_vm2, %v1511_v56  ;;  %v2004_v56 = vld [vmem:[%s4473_s5 + $0x188] sm:$0xff] }
 0x30c   :  { %2747 = vmatpush3.msra.mxu0 %v1970_v30  ;;  %2782 = vmatpush3.msra.mxu1 %v2002_v62  ;;  %v2003_v30 = vld [vmem:[%s4473_s5 + $0x180] sm:$0xff]  ;;  %v2050_v62 = vld [vmem:[%s4473_s5 + $0x2f8] sm:$0xff] }
 0x30d   :  { %2748 = vmatprep.subr.mxu0 %v1985_v59  ;;  %2783 = vmatprep.subr.mxu1 %v2017_v32  ;;  %v1987_v59 = vld [vmem:[%s4473_s5 + $0x100] sm:$0xff]  ;;  %v2082_v32 = vld [vmem:[%s4473_s5 + $0x3f8] sm:$0xff] }
 0x30e   :  { %2749 = vmatpush3.msra.mxu0 %v1969_v51  ;;  %2784 = vmatpush3.msra.mxu1 %v2001_v31 }
 0x30f   :  { %2750 = vmatprep.subr.mxu0 %v1984_v42  ;;  %2785 = vmatprep.subr.mxu1 %v2016_v60 }
 0x310   :  { %2751 = vmatpush3.msra.mxu0 %v1968_v41  ;;  %2786 = vmatpush3.msra.mxu1 %v2000_v2 }
 0x311   :  { %2752 = vmatprep.subr.mxu0 %v1983_v0  ;;  %2787 = vmatprep.subr.mxu1 %v2015_v4 }
 0x312   :  { %2753 = vmatpush3.msra.mxu0 %v1967_v1  ;;  %2788 = vmatpush3.msra.mxu1 %v1999_v7 }
 0x313   :  { %2754 = vmatprep.subr.mxu0 %v1982_v3  ;;  %2789 = vmatprep.subr.mxu1 %v2014_v10 }
 0x314   :  { %2755 = vmatpush3.msra.mxu0 %v1966_v6  ;;  %2790 = vmatpush3.msra.mxu1 %v1998_v12 }
 0x315   :  { %2756 = vmatprep.subr.mxu0 %v1981_v8  ;;  %2791 = vmatprep.subr.mxu1 %v2013_v14 }
 0x316   :  { %2757 = vmatpush3.msra.mxu0 %v1965_v11  ;;  %2792 = vmatpush3.msra.mxu1 %v1997_v16 }
 0x317   :  { %2758 = vmatprep.subr.mxu0 %v1980_v13  ;;  %2793 = vmatprep.subr.mxu1 %v2012_v18 }
 0x318   :  { %2759 = vmatpush3.msra.mxu0 %v1964_v15  ;;  %2794 = vmatpush3.msra.mxu1 %v1996_v20 }
 0x319   :  { %2760 = vmatprep.subr.mxu0 %v1979_v17  ;;  %2795 = vmatprep.subr.mxu1 %v2011_v21 }
 0x31a   :  { %2761 = vmatpush3.msra.mxu0 %v1963_v19  ;;  %2796 = vmatpush3.msra.mxu1 %v1995_v22 }
 0x31b   :  { %2762 = vmatprep.subr.mxu0 %v1978_v5  ;;  %2797 = vmatprep.subr.mxu1 %v2010_v24 }
 0x31c   :  { %2763 = vmatpush3.msra.mxu0 %v1962_v9  ;;  %2798 = vmatpush3.msra.mxu1 %v1994_v26 }
 0x31d   :  { %2764 = vmatprep.subr.mxu0 %v1977_v23  ;;  %2799 = vmatprep.subr.mxu1 %v2009_v29 }
 0x31e   :  { %2765 = vmatpush3.msra.mxu0 %v1961_v25  ;;  %2800 = vmatpush3.msra.mxu1 %v1993_v34 }
 0x31f   :  { %2766 = vmatprep.subr.mxu0 %v1976_v28  ;;  %2801 = vmatprep.subr.mxu1 %v2008_v36 }
 0x320   :  { %2767 = vmatpush3.msra.mxu0 %v1960_v33  ;;  %2802 = vmatpush3.msra.mxu1 %v1992_v38 }
 0x321   :  { %2768 = vmatprep.subr.mxu0 %v1975_v35  ;;  %2803 = vmatprep.subr.mxu1 %v2007_v40 }
 0x322   :  { %2769 = vmatpush3.msra.mxu0 %v1959_v37  ;;  %2804 = vmatpush3.msra.mxu1 %v1991_v44 }
 0x323   :  { %2770 = vmatprep.subr.mxu0 %v1974_v39  ;;  %2805 = vmatprep.subr.mxu1 %v2006_v46 }
 0x324   :  { %2771 = vmatpush3.msra.mxu0 %v1958_v43  ;;  %2806 = vmatpush3.msra.mxu1 %v1990_v48 }
 0x325   :  { %2772 = vmatprep.subr.mxu0 %v1973_v45  ;;  %2807 = vmatprep.subr.mxu1 %v2005_v52 }
 0x326   :  { %2773 = vmatpush3.msra.mxu0 %v1957_v47  ;;  %2808 = vmatpush3.msra.mxu1 %v1989_v54 }
 0x327   :  { %2774 = vmatprep.subr.mxu0 %v1972_v50  ;;  %2809 = vmatprep.subr.mxu1 %v2004_v56 }
 0x328   :  { %2775 = vmatpush3.msra.mxu0 %v1956_v53  ;;  %2810 = vmatpush3.msra.mxu1 %v1988_v61 }
 0x329   :  { %2776 = vmatprep.subr.mxu0 %v1971_v55  ;;  %2811 = vmatprep.subr.mxu1 %v2003_v30 }
 0x32a   :  { %2777 = vmatpush3.msra.mxu0 %v1955_v58  ;;  %2812 = vmatpush3.msra.mxu1 %v1987_v59 }
 0x32b   :  { %2816 = vmatprep.subr.mxu0 %v2050_v62  ;;  %2851 = vmatprep.subr.mxu1 %v2082_v32 }
 0x3bf   :  { %v1293_v51 = vpop.f32.mrf.mxu0  ;;  %v1364_v31 = vpop.f32.mrf.mxu1 }
 0x3c0   :  { %v1802_v1 = vrot.slane %v1293_v51, %v3883_v27  ;;  %v1810_v2 = vrot.slane %v1364_v31, %v3883_v27 }
 0x3c1   :  { %v1295_v42 = vpop.f32.mrf.mxu0  ;;  %v1366_v60 = vpop.f32.mrf.mxu1 }
 0x3c2   :  { %v1806_v41 = vrot.slane %v1295_v42, %v3883_v27  ;;  %v1814_v0 = vrot.slane %v1366_v60, %v3883_v27  ;;  %v2033_v42 = vld [vmem:[%s4473_s5 + $0x270] sm:$0xff]  ;;  %v2066_v60 = vld [vmem:[%s4473_s5 + $0x378] sm:$0xff] }
 0x3c3   :  { %v1435_v3 = vpop.f32.mrf.mxu0  ;;  %v1506_v4 = vpop.f32.mrf.mxu1 }
 0x3c4   :  { %v1839_v6 = vcombine.low %v1802_v1, %v1806_v41  ;;  %v1840_v7 = vcombine.low %v1810_v2, %v1814_v0  ;;  %v1818_v11 = vrot.slane %v1435_v3, %v3883_v27  ;;  %v1826_v12 = vrot.slane %v1506_v4, %v3883_v27  ;;  %v2048_v1 = vld [vmem:[%s4473_s5 + $0x2e8] sm:$0xff]  ;;  %v2081_v2 = vld [vmem:[%s4473_s5 + $0x3f0] sm:$0xff]  ;;  %v2047_v4 = vld [vmem:[%s4473_s5 + $0x2e0] sm:$0xff] }
 0x3c5   :  { %v1437_v8 = vpop.f32.mrf.mxu0  ;;  %v1508_v10 = vpop.f32.mrf.mxu1  ;;  %v2032_v3 = vld [vmem:[%s4473_s5 + $0x268] sm:$0xff] }
 0x3c6   :  { %v1822_v13 = vrot.slane %v1437_v8, %v3883_v27  ;;  %v1830_v14 = vrot.slane %v1508_v10, %v3883_v27  ;;  %v1847_v19 = vrot.slane %v1839_v6, %v4709_v49  ;;  %v1854_v20 = vrot.slane %v1840_v7, %v4709_v49  ;;  %v2080_v7 = vld [vmem:[%s4473_s5 + $0x3e8] sm:$0xff]  ;;  %v2031_v8 = vld [vmem:[%s4473_s5 + $0x260] sm:$0xff] }
 0x3c7   :  { %v1581_v15 = vpop.f32.mrf.mxu0  ;;  %v1652_v16 = vpop.f32.mrf.mxu1  ;;  %v2064_v10 = vld [vmem:[%s4473_s5 + $0x368] sm:$0xff] }
 0x3c8   :  { %v1856_v17 = vcombine.low %v1818_v11, %v1822_v13  ;;  %v1857_v18 = vcombine.low %v1826_v12, %v1830_v14  ;;  %v1880_v9 = vrot.slane %v1581_v15, %v3883_v27  ;;  %v1888_v24 = vrot.slane %v1652_v16, %v3883_v27  ;;  %v2046_v11 = vld [vmem:[%s4473_s5 + $0x2d8] sm:$0xff]  ;;  %v2079_v12 = vld [vmem:[%s4473_s5 + $0x3e0] sm:$0xff]  ;;  %v2045_v15 = vld [vmem:[%s4473_s5 + $0x2d0] sm:$0xff] }
 0x3c9   :  { %v1583_v5 = vpop.f32.mrf.mxu0  ;;  %v1654_v21 = vpop.f32.mrf.mxu1  ;;  %v1855_v36 = vcombine.low %v1847_v19, %v1854_v20  ;;  %v2030_v13 = vld [vmem:[%s4473_s5 + $0x258] sm:$0xff]  ;;  %v2063_v14 = vld [vmem:[%s4473_s5 + $0x360] sm:$0xff]  ;;  %v2044_v19 = vld [vmem:[%s4473_s5 + $0x2c8] sm:$0xff] }
 0x3ca   :  { %v1884_v22 = vrot.slane %v1583_v5, %v3883_v27  ;;  %v1864_v23 = vrot.slane %v1856_v17, %v4709_v49  ;;  %v1892_v25 = vrot.slane %v1654_v21, %v3883_v27  ;;  %v1871_v29 = vrot.slane %v1857_v18, %v4709_v49  ;;  %v2078_v16 = vld [vmem:[%s4473_s5 + $0x3d8] sm:$0xff]  ;;  %v2029_v17 = vld [vmem:[%s4473_s5 + $0x250] sm:$0xff]  ;;  %v2028_v5 = vld [vmem:[%s4473_s5 + $0x248] sm:$0xff] }
 0x3cb   :  { %v1723_v26 = vpop.f32.mrf.mxu0  ;;  %v1794_v28 = vpop.f32.mrf.mxu1  ;;  %v1875_v50 = vmul.f32 %v1855_v36, %v3896_v63  ;;  %v2034_v63 = vld [vmem:[%s4473_s5 + $0x278] sm:$0xff]  ;;  %v2077_v20 = vld [vmem:[%s4473_s5 + $0x3d0] sm:$0xff] }
 0x3cc   :  { %v1917_v33 = vcombine.low %v1880_v9, %v1884_v22  ;;  %v1896_v34 = vrot.slane %v1723_v26, %v3883_v27  ;;  %v1904_v35 = vrot.slane %v1794_v28, %v3883_v27  ;;  %v1918_v37 = vcombine.low %v1888_v24, %v1892_v25  ;;  %v2062_v18 = vld [vmem:[%s4473_s5 + $0x358] sm:$0xff]  ;;  %v2061_v21 = vld [vmem:[%s4473_s5 + $0x350] sm:$0xff]  ;;  %v2043_v9 = vld [vmem:[%s4473_s5 + $0x2c0] sm:$0xff] }
 0x3cd   :  { %v1725_v38 = vpop.f32.mrf.mxu0  ;;  %v1796_v39 = vpop.f32.mrf.mxu1  ;;  %v1872_v46 = vcombine.low %v1864_v23, %v1871_v29  ;;  %v2076_v22 = vld [vmem:[%s4473_s5 + $0x3c8] sm:$0xff]  ;;  %v2027_v23 = vld [vmem:[%s4473_s5 + $0x240] sm:$0xff]  ;;  %v2042_v25 = vld [vmem:[%s4473_s5 + $0x2b8] sm:$0xff] }
 0x3ce   :  { %v1925_v40 = vrot.slane %v1917_v33, %v4709_v49  ;;  %v1900_v43 = vrot.slane %v1725_v38, %v3883_v27  ;;  %v1908_v44 = vrot.slane %v1796_v39, %v3883_v27  ;;  %v1932_v45 = vrot.slane %v1918_v37, %v4709_v49  ;;  %v2060_v24 = vld [vmem:[%s4473_s5 + $0x348] sm:$0xff]  ;;  %v2075_v26 = vld [vmem:[%s4473_s5 + $0x3c0] sm:$0xff]  ;;  %v2026_v28 = vld [vmem:[%s4473_s5 + $0x238] sm:$0xff] }
 0x3cf   :  { %v1876_v56 = vmul.f32 %v1872_v46, %v3903_v57  ;;  %v2049_v57 = vld [vmem:[%s4473_s5 + $0x2f0] sm:$0xff]  ;;  %v2059_v29 = vld [vmem:[%s4473_s5 + $0x340] sm:$0xff]  ;;  %v2058_v36 = vld [vmem:[%s4473_s5 + $0x338] sm:$0xff] }
 0x3d0   :  { %v1934_v47 = vcombine.low %v1896_v34, %v1900_v43  ;;  %v1935_v48 = vcombine.low %v1904_v35, %v1908_v44  ;;  %v1933_v52 = vcombine.low %v1925_v40, %v1932_v45  ;;  %v2041_v33 = vld [vmem:[%s4473_s5 + $0x2b0] sm:$0xff]  ;;  %v2074_v34 = vld [vmem:[%s4473_s5 + $0x3b8] sm:$0xff]  ;;  %v2040_v37 = vld [vmem:[%s4473_s5 + $0x2a8] sm:$0xff] }
 0x3d1   :  { %v2025_v35 = vld [vmem:[%s4473_s5 + $0x230] sm:$0xff]  ;;  %v2024_v39 = vld [vmem:[%s4473_s5 + $0x228] sm:$0xff]  ;;  %v2039_v43 = vld [vmem:[%s4473_s5 + $0x2a0] sm:$0xff] }
 0x3d2   :  { %v1942_v53 = vrot.slane %v1934_v47, %v4709_v49  ;;  %v1949_v54 = vrot.slane %v1935_v48, %v4709_v49  ;;  %v1953_v55 = vadd.f32 %v1933_v52, %v1875_v50  ;;  %v2073_v38 = vld [vmem:[%s4473_s5 + $0x3b0] sm:$0xff]  ;;  %v2072_v44 = vld [vmem:[%s4473_s5 + $0x3a8] sm:$0xff]  ;;  %v2023_v45 = vld [vmem:[%s4473_s5 + $0x220] sm:$0xff] }
 0x3d3   :  { %v2057_v40 = vld [vmem:[%s4473_s5 + $0x330] sm:$0xff]  ;;  %v2056_v46 = vld [vmem:[%s4473_s5 + $0x328] sm:$0xff]  ;;  %v2038_v47 = vld [vmem:[%s4473_s5 + $0x298] sm:$0xff] }
 0x3d4   :  { %v1950_v58 = vcombine.low %v1942_v53, %v1949_v54  ;;  %v2099_v61 = vrot.slane %v1953_v55, %v4709_v49  ;;  %v2092_v30 = vcombine.high %v1953_v55, %v1953_v55  ;;  %v2071_v48 = vld [vmem:[%s4473_s5 + $0x3a0] sm:$0xff]  ;;  %v2022_v50 = vld [vmem:[%s4473_s5 + $0x218] sm:$0xff]  ;;  %v2037_v53 = vld [vmem:[%s4473_s5 + $0x290] sm:$0xff] }
 0x3d5   :  { %v2055_v52 = vld [vmem:[%s4473_s5 + $0x320] sm:$0xff]  ;;  %v2070_v54 = vld [vmem:[%s4473_s5 + $0x398] sm:$0xff]  ;;  %v2021_v55 = vld [vmem:[%s4473_s5 + $0x210] sm:$0xff] }
 0x3d6   :  { %v1954_v27 = vadd.f32 %v1950_v58, %v1876_v56  ;;  %v2107_v62 = vcombine.high %v2099_v61, %v2099_v61  ;;  %v2106_v59 = vrot.slane %v2092_v30, %v4709_v49  ;;  %v2054_v56 = vld [vmem:[%s4473_s5 + $0x318] sm:$0xff]  ;;  %v2036_v58 = vld [vmem:[%s4473_s5 + $0x288] sm:$0xff] }
 0x3d7   :  { %v2020_v30 = vld [vmem:[%s4473_s5 + $0x208] sm:$0xff] }
 0x3d8   :  { %v4268_v32 = vrot.slane %v1954_v27, %v4709_v49  ;;  %v2109_v51 = vcombine.high %v1954_v27, %v1954_v27  ;;  %2198 = vmatprep.mubr.f32.mxu0 %v2107_v62  ;;  %v2108_v31 = vcombine.high %v2106_v59, %v2106_v59  ;;  %v2053_v27 = vld [vmem:[%s4473_s5 + $0x310] sm:$0xff]  ;;  %v2035_v62 = vld [vmem:[%s4473_s5 + $0x280] sm:$0xff] }
 0x3d9   :  { %2199 = vmatmul.mubr.f32.vlgmr.msra.gmra.mxu0 %v2099_v61  ;;  %v2069_v61 = vld [vmem:[%s4473_s5 + $0x390] sm:$0xff] }
 0x3da   :  { %v2124_v41 = vcombine.high %v4268_v32, %v4268_v32  ;;  %v4282_v0 = vrot.slane %v2109_v51, %v4709_v49  ;;  %2817 = vmatpush3.msra.mxu0 %v2034_v63  ;;  %2268 = vmatprep.mubr.f32.mxu1 %v2108_v31  ;;  %v2065_v49 = vld [vmem:[%s4473_s5 + $0x370] sm:$0xff]  ;;  %v2019_v63 = vld [vmem:[%s4473_s5 + $0x200] sm:$0xff]  ;;  %v2052_v51 = vld [vmem:[%s4473_s5 + $0x308] sm:$0xff] }
 0x3db   :  { %2818 = vmatprep.subr.mxu0 %v2049_v57  ;;  %2269 = vmatmul.mubr.f32.vlgmr.msra.gmra.mxu1 %v2106_v59  ;;  %v2068_v59 = vld [vmem:[%s4473_s5 + $0x388] sm:$0xff]  ;;  %v2067_v31 = vld [vmem:[%s4473_s5 + $0x380] sm:$0xff] }
 0x3dc   :  { %2819 = vmatpush3.msra.mxu0 %v2033_v42  ;;  %2852 = vmatpush3.msra.mxu1 %v2066_v60  ;;  %v2125_v6 = vcombine.high %v4282_v0, %v4282_v0  ;;  %v2051_v57 = vld [vmem:[%s4473_s5 + $0x300] sm:$0xff]  ;;  %s2921_s5 = smov [#allocation2]  }
 0x3dd   :  { %2820 = vmatprep.subr.mxu0 %v2048_v1  ;;  %2338 = vmatprep.mubr.f32.mxu0 %v2124_v41  ;;  %s2421_s19 = sshll.u32 %s2921_s5, 4  ;;  %s2422_s19 = int_to_ptr.vmem [resolvable:$true] %s2421_s19 }
 0x3de   :  { %2853 = vmatprep.subr.mxu1 %v2081_v2  ;;  %2821 = vmatpush3.msra.mxu0 %v2032_v3  ;;  %v2465_v2 = vld [vmem:[%s4474_s6] ss:$0 sm:$0xff]  ;;  %s2897_s20 = scalar_lea.vmem %s2422_s19, 32  ;;  %p2902_p1 = scmp.lt.s32.totalorder %s2422_s19, %s2422_s19 }
 0x3df   :  { %2854 = vmatpush3.msra.mxu1 %v2065_v49  ;;  %2822 = vmatprep.subr.mxu0 %v2047_v4  ;;  %p2898_p0 = scmp.ne.s32.totalorder %s2422_s19, %s2897_s20  ;;  %p2903_p2 = scmp.lt.s32.totalorder %s2897_s20, %s2897_s20 }
 0x3e0   :  { %2855 = vmatprep.subr.mxu1 %v2080_v7  ;;  %2408 = vmatprep.mubr.f32.mxu1 %v2125_v6 }
 0x3e1   :  { %2823 = vmatpush3.msra.mxu0 %v2031_v8  ;;  %2856 = vmatpush3.msra.mxu1 %v2064_v10  ;;  %p2904_p3 = por %p2903_p2, %p2902_p1 }
 0x3e2   :  { %2824 = vmatprep.subr.mxu0 %v2046_v11  ;;  %2857 = vmatprep.subr.mxu1 %v2079_v12 }
 0x3e3   :  { %2825 = vmatpush3.msra.mxu0 %v2030_v13  ;;  %2858 = vmatpush3.msra.mxu1 %v2063_v14  ;;  %p2905_p4 = pnand %p2904_p3, %p2898_p0 }
 0x3e4   :  { %2826 = vmatprep.subr.mxu0 %v2045_v15  ;;  %2859 = vmatprep.subr.mxu1 %v2078_v16 }
 0x3e5   :  { %2827 = vmatpush3.msra.mxu0 %v2029_v17  ;;  %2860 = vmatpush3.msra.mxu1 %v2062_v18 }
 0x3e6   :  { %2828 = vmatprep.subr.mxu0 %v2044_v19  ;;  %2861 = vmatprep.subr.mxu1 %v2077_v20 }
 0x3e7   :  { %2829 = vmatpush3.msra.mxu0 %v2028_v5  ;;  %2862 = vmatpush3.msra.mxu1 %v2061_v21 }
 0x3e8   :  { %2830 = vmatprep.subr.mxu0 %v2043_v9  ;;  %2863 = vmatprep.subr.mxu1 %v2076_v22 }
 0x3e9   :  { %2831 = vmatpush3.msra.mxu0 %v2027_v23  ;;  %2864 = vmatpush3.msra.mxu1 %v2060_v24 }
 0x3ea   :  { %2832 = vmatprep.subr.mxu0 %v2042_v25  ;;  %2865 = vmatprep.subr.mxu1 %v2075_v26 }
 0x3eb   :  { %2833 = vmatpush3.msra.mxu0 %v2026_v28  ;;  %2866 = vmatpush3.msra.mxu1 %v2059_v29 }
 0x3ec   :  { %2834 = vmatprep.subr.mxu0 %v2041_v33  ;;  %2867 = vmatprep.subr.mxu1 %v2074_v34 }
 0x3ed   :  { %2835 = vmatpush3.msra.mxu0 %v2025_v35  ;;  %2868 = vmatpush3.msra.mxu1 %v2058_v36 }
 0x3ee   :  { %2836 = vmatprep.subr.mxu0 %v2040_v37  ;;  %2869 = vmatprep.subr.mxu1 %v2073_v38 }
 0x3ef   :  { %2837 = vmatpush3.msra.mxu0 %v2024_v39  ;;  %2870 = vmatpush3.msra.mxu1 %v2057_v40 }
 0x3f0   :  { %2838 = vmatprep.subr.mxu0 %v2039_v43  ;;  %2871 = vmatprep.subr.mxu1 %v2072_v44 }
 0x3f1   :  { %2839 = vmatpush3.msra.mxu0 %v2023_v45  ;;  %2872 = vmatpush3.msra.mxu1 %v2056_v46 }
 0x3f2   :  { %2840 = vmatprep.subr.mxu0 %v2038_v47  ;;  %2873 = vmatprep.subr.mxu1 %v2071_v48 }
 0x3f3   :  { %2841 = vmatpush3.msra.mxu0 %v2022_v50  ;;  %2874 = vmatpush3.msra.mxu1 %v2055_v52 }
 0x3f4   :  { %2842 = vmatprep.subr.mxu0 %v2037_v53  ;;  %2875 = vmatprep.subr.mxu1 %v2070_v54 }
 0x3f5   :  { %2843 = vmatpush3.msra.mxu0 %v2021_v55  ;;  %2876 = vmatpush3.msra.mxu1 %v2054_v56 }
 0x3f6   :  { %2844 = vmatprep.subr.mxu0 %v2036_v58  ;;  %2877 = vmatprep.subr.mxu1 %v2069_v61 }
 0x3f7   :  { %2845 = vmatpush3.msra.mxu0 %v2020_v30  ;;  %2878 = vmatpush3.msra.mxu1 %v2053_v27 }
 0x3f8   :  { %2846 = vmatprep.subr.mxu0 %v2035_v62  ;;  %2879 = vmatprep.subr.mxu1 %v2068_v59 }
 0x3f9   :  { %2847 = vmatpush3.msra.mxu0 %v2019_v63  ;;  %2880 = vmatpush3.msra.mxu1 %v2052_v51 }
 0x3fa   :  { %2339 = vmatmul.mubr.f32.vlgmr.msra.gmra.mxu0 %v4268_v32  ;;  %2881 = vmatprep.subr.mxu1 %v2067_v31 }
 0x3fb   :  { %2882 = vmatpush3.msra.mxu1 %v2051_v57 }
 0x3fc   :  { %2409 = vmatmul.mubr.f32.vlgmr.msra.gmra.mxu1 %v4282_v0 }
 0x499   :  { %v2778_v42 = vpop.f32.mrf.mxu0 }
 0x49b   :  { %v2779_v60 = vpop.f32.mrf.mxu0  ;;  %v2813_v41 = vpop.f32.mrf.mxu1 }
 0x49c   :  { %v2780_v1 = vadd.f32 %v2779_v60, %v2778_v42 }
 0x49d   :  { %v2814_v3 = vpop.f32.mrf.mxu1 }
 0x49e   :  { %v2201_v49 = vadd.f32 %v2780_v1, %v2465_v2  ;;  %v2815_v4 = vadd.f32 %v2814_v3, %v2813_v41 }
 0x4a0   :  { %v2271_v10 = vadd.f32 %v2815_v4, %v2201_v49 }
 0x4ba   :  { %v2848_v6 = vpop.f32.mrf.mxu0 }
 0x4bc   :  { %v2849_v7 = vpop.f32.mrf.mxu0  ;;  %v2883_v8 = vpop.f32.mrf.mxu1 }
 0x4bd   :  { %v2850_v32 = vadd.f32 %v2849_v7, %v2848_v6 }
 0x4be   :  { %v2884_v11 = vpop.f32.mrf.mxu1 }
 0x4bf   :  { %v2341_v0 = vadd.f32 %v2850_v32, %v2271_v10  ;;  %v2885_v12 = vadd.f32 %v2884_v11, %v2883_v8 }
 0x4c1   :  { %v2411_v13 = vadd.f32 %v2885_v12, %v2341_v0 }
 0x4c3   :  { %2414 = vst [vmem:[#allocation2] sm:$0x3] %v2411_v13 }
 0x4c4   :  { %2908 = shalt.err (!%p2905_p4)
}
 0x4c5   :  { %2424 = dma.vmem_to_hbm [thread:$0]  %s2422_s19, 32, %s4475_s7, [#allocation3]  }
 0x4c6   :  { %2917 = dma.done.wait [#allocation3], 32  }
 0x4c7   :  { %2918 = vsyncadd [#allocation3], 4294967264 }
 0x4c8   :  { %2428 = vsyncpa [#allocation3], 1 }

</bundles_post_ra>
